<compile_context>
chip_gen: v7x
topology: tpu7x:2x2x1
jax: 0.10.0
libtpu: 0.0.40
codegen_flags: <defaults>
</compile_context>

<pallas_src>
import functools
import math

import jax
import jax.numpy as jnp
from jax import lax
from jax.experimental import pallas as pl
from jax.experimental.pallas import tpu as pltpu

NEG_SLOPE = 0.3
BN_EPS = 1e-5
LANE = 128
T_TILE_MAX = 2048             # max time-tile (lane) width per kernel invocation
COMPUTE_DTYPE = jnp.bfloat16  # MXU operand dtype; accumulate/epilogue stay f32
VMEM_LIMIT = 32 * 1024 * 1024

# Conv stack: Conv1d(1,16,15,s=5,p=1600)+BN+LReLU -> Conv1d(16,32,15,s=6)+BN+LReLU
#             -> Conv1d(32,64,15,s=6)+BN+LReLU -> Conv1d(64,32,15,s=6)
LAYERS = (
    dict(cin=1,  cout=16, k=15, stride=5, pad=1600, bn=True,  act=True),
    dict(cin=16, cout=32, k=15, stride=6, pad=0,    bn=True,  act=True),
    dict(cin=32, cout=64, k=15, stride=6, pad=0,    bn=True,  act=True),
    dict(cin=64, cout=32, k=15, stride=6, pad=0,    bn=False, act=False),
)


def _round_up(n, m):
    return ((n + m - 1) // m) * m


def _conv_out_len(L, k, stride, pad):
    return (L + 2 * pad - k) // stride + 1


# ----------------------------- layer-1 kernel --------------------------------
def _conv1_kernel(p_ref, w_ref, s_ref, o_ref):
    """Conv1d(1->16, k=15 padded to 16, s=5) + folded BN + LeakyReLU as a GEMM.

    p_ref: (1, 16, TT) bf16  phase-major im2col columns (lane-dense)
    w_ref: (16, 16)    bf16  BN-folded weights (tap 15 is the zero pad)
    s_ref: (16, 1)     f32   folded conv-bias + BN shift
    o_ref: (1, 16, TT)       phase-major output tile
    """
    y = jnp.dot(w_ref[...], p_ref[0], preferred_element_type=jnp.float32)
    y = y + s_ref[...]
    y = jnp.where(y >= 0.0, y, NEG_SLOPE * y)
    o_ref[0] = y.astype(o_ref.dtype)


def conv1_pm(patches_pm, w, shift, *, t_tile):
    """patches_pm: (6, 16, W) -> layer-1 activation, phase-major, (6, 16, W)."""
    PH, Kd, W = patches_pm.shape
    Cout = w.shape[0]
    grid = (PH, W // t_tile)
    flops = 2 * Cout * Kd * PH * W
    bytes_accessed = int(patches_pm.size * 2 + PH * Cout * W * 2
                         + w.size * 2 + shift.size * 4)
    return pl.pallas_call(
        _conv1_kernel,
        out_shape=jax.ShapeDtypeStruct((PH, Cout, W), COMPUTE_DTYPE),
        grid=grid,
        in_specs=[
            pl.BlockSpec((1, Kd, t_tile), lambda j, c: (j, 0, c)),
            pl.BlockSpec((Cout, Kd), lambda j, c: (0, 0)),
            pl.BlockSpec((Cout, 1), lambda j, c: (0, 0)),
        ],
        out_specs=pl.BlockSpec((1, Cout, t_tile), lambda j, c: (j, 0, c)),
        compiler_params=pltpu.CompilerParams(
            dimension_semantics=("parallel", "parallel"),
            vmem_limit_bytes=VMEM_LIMIT),
        cost_estimate=pl.CostEstimate(flops=flops, transcendentals=0,
                                      bytes_accessed=bytes_accessed),
    )(patches_pm, w, shift)


# --------------------------- layers 2-4 kernel --------------------------------
def _conv_pm_kernel(x_ref, h_ref, w_ref, s_ref, o_ref, acc_ref, *, apply_act):
    """Conv1d(k=15, stride=6) + folded BN/bias (+ LeakyReLU) on a phase-major input.

    x_ref: (6*Cin, TT)  bf16  main input block   (pm columns t0 .. t0+TT)
    h_ref: (6*Cin, 128) bf16  halo block         (pm columns t0+TT .. t0+TT+128)
    w_ref: (3, Cout, 6*Cin) bf16  tap-grouped folded weights (r = 6a+q)
    s_ref: (Cout, 1) f32;  o_ref: (Cout, TT);  acc_ref: (Cout, TT) f32 scratch
    """
    tt = acc_ref.shape[1]
    acc_ref[...] = jnp.dot(w_ref[0], x_ref[...], preferred_element_type=jnp.float32)
    for a in (1, 2):
        acc_ref[:, :tt - a] += jnp.dot(w_ref[a], x_ref[:, a:],
                                       preferred_element_type=jnp.float32)
        halo = jnp.dot(w_ref[a], h_ref[...], preferred_element_type=jnp.float32)
        acc_ref[:, tt - a:] += halo[:, :a]
    y = acc_ref[...] + s_ref[...]
    if apply_act:
        y = jnp.where(y >= 0.0, y, NEG_SLOPE * y)
    o_ref[...] = y.astype(o_ref.dtype)


def conv_pm(x_pm, w_g, shift, *, apply_act, t_tile, out_cols, out_dtype):
    """x_pm: (6*Cin, out_cols + t_tile) phase-major -> (Cout, out_cols)."""
    R, W_in = x_pm.shape
    _, Cout, _ = w_g.shape
    assert W_in >= out_cols + t_tile and out_cols % t_tile == 0
    n_tiles = out_cols // t_tile
    kernel = functools.partial(_conv_pm_kernel, apply_act=apply_act)
    flops = 2 * Cout * (3 * R) * out_cols
    bytes_accessed = int(R * (out_cols + n_tiles * LANE) * 2 + w_g.size * 2
                         + Cout * out_cols * jnp.dtype(out_dtype).itemsize)
    return pl.pallas_call(
        kernel,
        out_shape=jax.ShapeDtypeStruct((Cout, out_cols), out_dtype),
        grid=(n_tiles,),
        in_specs=[
            pl.BlockSpec((R, t_tile), lambda c: (0, c)),
            pl.BlockSpec((R, LANE), lambda c: (0, (c + 1) * (t_tile // LANE))),
            pl.BlockSpec((3, Cout, R), lambda c: (0, 0, 0)),
            pl.BlockSpec((Cout, 1), lambda c: (0, 0)),
        ],
        out_specs=pl.BlockSpec((Cout, t_tile), lambda c: (0, c)),
        scratch_shapes=[pltpu.VMEM((Cout, t_tile), jnp.float32)],
        compiler_params=pltpu.CompilerParams(
            dimension_semantics=("parallel",),
            vmem_limit_bytes=VMEM_LIMIT),
        cost_estimate=pl.CostEstimate(flops=flops, transcendentals=0,
                                      bytes_accessed=bytes_accessed),
    )(x_pm, x_pm, w_g, shift)   # same operand passed twice: main block + halo block


# ------------------------------ JAX glue -------------------------------------
def _l1_patches_pm(wav, P, width, dtype):
    """Phase-major im2col for layer 1.

    Returns (6, 16, width) with patches[j, r, b*P + u] = xpad[b, 30u + 5j + r]
    (r = 15 is the Kd zero-pad row), xpad = pad(wav, 1600) per batch element.
    Built from strided slices only (no gather); ~1x the original raw signal."""
    B, _ = wav.shape
    k, pad = 15, 1600
    xp = jnp.pad(wav, ((0, 0), (pad, pad))).astype(dtype)
    need = 30 * (P - 1) + 5 * 5 + (k - 1) + 1
    if need > xp.shape[1]:
        xp = jnp.pad(xp, ((0, 0), (0, need - xp.shape[1])))
    span = 30 * (P - 1) + 1
    phases = []
    for j in range(6):
        taps = []
        for r in range(k):
            st = 5 * j + r
            taps.append(lax.slice_in_dim(xp, st, st + span, stride=30, axis=1))
        taps.append(jnp.zeros_like(taps[0]))           # Kd 15 -> 16 zero row
        phases.append(jnp.stack(taps, axis=0))          # (16, B, P)
    p = jnp.stack(phases, axis=0).reshape(6, 16, B * P)  # (6, 16, B*P)
    if width > B * P:
        p = jnp.pad(p, ((0, 0), (0, 0), (0, width - B * P)))
    return p


def _phase_split(x, P, width, dtype):
    """x: (C, B, T) natural activation -> (6*C, width) phase-major:
       out[q*C + ci, b*P + u] = x[ci, b, 6u + q]  (zero padded beyond T / B*P)."""
    C, B, T = x.shape
    need = 6 * P
    if need > T:
        x = jnp.pad(x, ((0, 0), (0, 0), (0, need - T)))
    else:
        x = x[:, :, :need]
    pm = x.reshape(C, B, P, 6).transpose(3, 0, 1, 2).reshape(6 * C, B * P)
    pm = pm.astype(dtype)
    if width > B * P:
        pm = jnp.pad(pm, ((0, 0), (0, width - B * P)))
    return pm


def init_params(key):
    """Fresh PyTorch-style init: Conv1d ~ U(+-1/sqrt(fan_in)); BatchNorm1d (eval):
    gamma=1, beta=0, running_mean=0, running_var=1."""
    params = []
    for cfg in LAYERS:
        key, kw, kb = jax.random.split(key, 3)
        fan_in = cfg["cin"] * cfg["k"]
        bound = 1.0 / math.sqrt(fan_in)
        w = jax.random.uniform(kw, (cfg["cout"], cfg["cin"], cfg["k"]),
                               minval=-bound, maxval=bound, dtype=jnp.float32)
        b = jax.random.uniform(kb, (cfg["cout"],),
                               minval=-bound, maxval=bound, dtype=jnp.float32)
        bn = None
        if cfg["bn"]:
            bn = dict(gamma=jnp.ones((cfg["cout"],), jnp.float32),
                      beta=jnp.zeros((cfg["cout"],), jnp.float32),
                      mean=jnp.zeros((cfg["cout"],), jnp.float32),
                      var=jnp.ones((cfg["cout"],), jnp.float32))
        params.append(dict(w=w, b=b, bn=bn))
    return params


def fold_params(params):
    """Fold eval-mode BatchNorm and conv bias:
         y = conv(x, w*s) + ((b - mean)*s + beta),  s = gamma/sqrt(var+eps).
    Kernel form: layer 1 -> w (16,16) [Kd padded], layers 2-4 -> w (3, Cout, 6*Cin)
    with tap r = 6a+q placed at [a, :, q*Cin+ci].  Keeps w_conv for the reference."""
    folded = []
    for li, (cfg, p) in enumerate(zip(LAYERS, params)):
        if p["bn"] is not None:
            s = p["bn"]["gamma"] / jnp.sqrt(p["bn"]["var"] + BN_EPS)
            shift = (p["b"] - p["bn"]["mean"]) * s + p["bn"]["beta"]
        else:
            s = jnp.ones_like(p["b"])
            shift = p["b"]
        wf = p["w"] * s[:, None, None]                     # (Cout, Cin, K) folded
        entry = dict(shift=shift[:, None].astype(jnp.float32),
                     w_conv=wf.astype(COMPUTE_DTYPE))
        if li == 0:
            w16 = jnp.pad(wf.reshape(cfg["cout"], cfg["k"]), ((0, 0), (0, 1)))
            entry["w"] = w16.astype(COMPUTE_DTYPE)
        else:
            cout, cin, k = wf.shape
            wg = jnp.zeros((3, cout, 6, cin), jnp.float32)
            for a in range(3):
                for q in range(6):
                    r = 6 * a + q
                    if r < k:
                        wg = wg.at[a, :, q, :].set(wf[:, :, r])
            entry["w"] = wg.reshape(3, cout, 6 * cin).astype(COMPUTE_DTYPE)
        folded.append(entry)
    return folded


@jax.jit
def wav_encoder_forward(wav_data, folded_params):
    """wav_data: (B, L) float32 -> (B, T_out, 32) float32 (out_dim=None path)."""
    B, L = wav_data.shape
    T = [L]
    for cfg in LAYERS:
        T.append(_conv_out_len(T[-1], cfg["k"], cfg["stride"], cfg["pad"]))
    T1, T2, T3, T4 = T[1], T[2], T[3], T[4]
    # per-batch phase-major column budgets at the three stride-6 interfaces
    P = [T2 + 2, T3 + 2, T4 + 2]

    def tiles(cols):
        tt = min(T_TILE_MAX, _round_up(cols, LANE))
        return tt, _round_up(cols, tt)

    # --- layer 1: phase-major im2col (wrapper) + GEMM kernel -> a1 phase-major ---
    tt1, oc1 = tiles(B * P[0])
    patches1 = _l1_patches_pm(wav_data, P[0], oc1, COMPUTE_DTYPE)
    a1 = conv1_pm(patches1, folded_params[0]["w"], folded_params[0]["shift"],
                  t_tile=tt1)                                    # (6, 16, oc1)
    a1_pm = jnp.pad(a1.reshape(6 * 16, oc1), ((0, 0), (0, tt1)))  # + halo tile

    # --- layer 2 (no materialised im2col: 3 grouped GEMMs on the pm input) ---
    out2 = conv_pm(a1_pm, folded_params[1]["w"], folded_params[1]["shift"],
                   apply_act=True, t_tile=tt1, out_cols=oc1,
                   out_dtype=COMPUTE_DTYPE)                       # (32, oc1)
    x2 = out2[:, :B * P[0]].reshape(32, B, P[0])

    # --- layer 3 ---
    tt3, oc3 = tiles(B * P[1])
    a2_pm = _phase_split(x2, P[1], oc3 + tt3, COMPUTE_DTYPE)
    out3 = conv_pm(a2_pm, folded_params[2]["w"], folded_params[2]["shift"],
                   apply_act=True, t_tile=tt3, out_cols=oc3,
                   out_dtype=COMPUTE_DTYPE)                       # (64, oc3)
    x3 = out3[:, :B * P[1]].reshape(64, B, P[1])

    # --- layer 4 (bias only, no activation, f32 out) ---
    tt4, oc4 = tiles(B * P[2])
    a3_pm = _phase_split(x3, P[2], oc4 + tt4, COMPUTE_DTYPE)
    out4 = conv_pm(a3_pm, folded_params[3]["w"], folded_params[3]["shift"],
                   apply_act=False, t_tile=tt4, out_cols=oc4,
                   out_dtype=jnp.float32)                         # (32, oc4)
    x4 = out4[:, :B * P[2]].reshape(32, B, P[2])[:, :, :T4]       # (32, B, T4)

    # out.transpose(1, 2): (B, C, T) -> (B, T, C)
    # TODO(synk): the module's optional nn.Linear(34, out_dim) head is dimensionally
    # inconsistent with the 32-channel feature axis; only out_dim=None is implemented.
    return jnp.transpose(x4, (1, 2, 0)).astype(jnp.float32)


# Pure-JAX reference (lax.conv) using the SAME folded weights and the same
# bf16-operand / f32-accumulate per-layer precision policy as the kernel path.
@jax.jit
def _ref_forward(wav_data, folded_params):
    x = wav_data[:, None, :].astype(jnp.float32)
    for cfg, p in zip(LAYERS, folded_params):
        y = lax.conv_general_dilated(
            x.astype(COMPUTE_DTYPE), p["w_conv"], window_strides=(cfg["stride"],),
            padding=[(cfg["pad"], cfg["pad"])],
            dimension_numbers=("NCH", "OIH", "NCH"),
            preferred_element_type=jnp.float32)
        y = y + p["shift"][None, :, :]
        if cfg["act"]:
            y = jnp.where(y >= 0.0, y, NEG_SLOPE * y)
        x = y
    return x.transpose(0, 2, 1)


if __name__ == "__main__":
    key = jax.random.PRNGKey(0)
    key, kp, kx = jax.random.split(key, 3)
    params = init_params(kp)
    folded = fold_params(params)

    B, L = 2, 512   # per-layer output lengths: 740 -> 121 -> 18 -> 1
    wav = jax.random.normal(kx, (B, L), dtype=jnp.float32)

    out = jax.block_until_ready(wav_encoder_forward(wav, folded))
    ref = jax.block_until_ready(_ref_forward(wav, folded))

    assert out.shape == ref.shape == (B, 1, 32), (out.shape, ref.shape)
    err = float(jnp.max(jnp.abs(out - ref)))
    assert jnp.allclose(out, ref, atol=1e-2, rtol=1e-2), err

    print("KERNEL_OK")
</pallas_src>

<mosaic_0001>
module attributes {stable_mosaic.version = 11 : i64} {
  func.func @_conv1_kernel(%arg0: i32, %arg1: i32, %arg2: memref<1x16x256xbf16, #tpu.memory_space<vmem>>, %arg3: memref<16x16xbf16, #tpu.memory_space<vmem>>, %arg4: memref<16x1xf32, #tpu.memory_space<vmem>>, %arg5: memref<1x16x256xbf16, #tpu.memory_space<vmem>>) attributes {dimension_semantics = [#tpu.dimension_semantics<parallel>, #tpu.dimension_semantics<parallel>], iteration_bounds = array<i64: 6, 1>, scalar_prefetch = 0 : i64, scratch_operands = 0 : i64, tpu.core_type = #tpu.core_type<tc>, window_params = [{transform_indices = @transform_0, window_bounds = array<i64: 1, 16, 256>}, {pipeline_mode = #tpu.pipeline_mode<synchronous>, transform_indices = @transform_1, window_bounds = array<i64: 16, 16>}, {pipeline_mode = #tpu.pipeline_mode<synchronous>, transform_indices = @transform_2, window_bounds = array<i64: 16, 1>}, {transform_indices = @transform_3, window_bounds = array<i64: 1, 16, 256>}]} {
    %c0 = arith.constant 0 : index
    %c0_0 = arith.constant 0 : index
    %0 = vector.load %arg3[%c0, %c0_0] : memref<16x16xbf16, #tpu.memory_space<vmem>>, vector<16x16xbf16>
    %c0_1 = arith.constant 0 : index
    %c0_2 = arith.constant 0 : index
    %c0_3 = arith.constant 0 : index
    %1 = vector.load %arg2[%c0_1, %c0_2, %c0_3] : memref<1x16x256xbf16, #tpu.memory_space<vmem>>, vector<1x16x256xbf16>
    %2 = vector.shape_cast %1 : vector<1x16x256xbf16> to vector<16x256xbf16>
    %cst = arith.constant dense<0.000000e+00> : vector<16x256xf32>
    %3 = tpu.matmul %0, %2, %cst {dimension_numbers = #tpu.dot_dimension_numbers<[1], [0], [0], [1], [0, 0, 1, 1], [], []>} : vector<16x16xbf16>, vector<16x256xbf16>, vector<16x256xf32> -> vector<16x256xf32>
    %c0_4 = arith.constant 0 : index
    %c0_5 = arith.constant 0 : index
    %4 = vector.load %arg4[%c0_4, %c0_5] : memref<16x1xf32, #tpu.memory_space<vmem>>, vector<16x1xf32>
    %5 = vector.broadcast %4 : vector<16x1xf32> to vector<16x256xf32>
    %6 = arith.addf %3, %5 : vector<16x256xf32>
    %cst_6 = arith.constant 0.000000e+00 : f32
    %7 = vector.broadcast %cst_6 : f32 to vector<16x256xf32>
    %8 = arith.cmpf oge, %6, %7 : vector<16x256xf32>
    %cst_7 = arith.constant 3.000000e-01 : f32
    %9 = vector.broadcast %cst_7 : f32 to vector<16x256xf32>
    %10 = arith.mulf %9, %6 : vector<16x256xf32>
    %11 = arith.select %8, %6, %10 : vector<16x256xi1>, vector<16x256xf32>
    %12 = arith.truncf %11 : vector<16x256xf32> to vector<16x256xbf16>
    %c0_8 = arith.constant 0 : index
    %c0_9 = arith.constant 0 : index
    %c0_10 = arith.constant 0 : index
    %13 = vector.load %arg5[%c0_8, %c0_9, %c0_10] : memref<1x16x256xbf16, #tpu.memory_space<vmem>>, vector<1x16x256xbf16>
    %14 = vector.shape_cast %13 : vector<1x16x256xbf16> to vector<16x256xbf16>
    %15 = vector.shape_cast %12 : vector<16x256xbf16> to vector<1x16x256xbf16>
    tpu.vector_store %arg5[%c0_8, %c0_9, %c0_10], %15 {strides = array<i32>} : memref<1x16x256xbf16, #tpu.memory_space<vmem>>, vector<1x16x256xbf16>,
    return
  }
  func.func @transform_0(%arg0: i32, %arg1: i32) -> (i32, i32, i32) {
    %c0_i32 = arith.constant 0 : i32
    %c0_i32_0 = arith.constant 0 : i32
    return %arg0, %c0_i32, %arg1 : i32, i32, i32
  }
  func.func @transform_1(%arg0: i32, %arg1: i32) -> (i32, i32) {
    %c0_i32 = arith.constant 0 : i32
    %c0_i32_0 = arith.constant 0 : i32
    %c0_i32_1 = arith.constant 0 : i32
    return %c0_i32, %c0_i32_0 : i32, i32
  }
  func.func @transform_2(%arg0: i32, %arg1: i32) -> (i32, i32) {
    %c0_i32 = arith.constant 0 : i32
    %c0_i32_0 = arith.constant 0 : i32
    %c0_i32_1 = arith.constant 0 : i32
    return %c0_i32, %c0_i32_0 : i32, i32
  }
  func.func @transform_3(%arg0: i32, %arg1: i32) -> (i32, i32, i32) {
    %c0_i32 = arith.constant 0 : i32
    %c0_i32_0 = arith.constant 0 : i32
    return %arg0, %c0_i32, %arg1 : i32, i32, i32
  }
}

module attributes {stable_mosaic.version = 11 : i64} {
  func.func @_conv_pm_kernel(%arg0: i32, %arg1: memref<96x256xbf16, #tpu.memory_space<vmem>>, %arg2: memref<96x128xbf16, #tpu.memory_space<vmem>>, %arg3: memref<3x32x96xbf16, #tpu.memory_space<vmem>>, %arg4: memref<32x1xf32, #tpu.memory_space<vmem>>, %arg5: memref<32x256xbf16, #tpu.memory_space<vmem>>, %arg6: memref<32x256xf32, #tpu.memory_space<vmem>>) attributes {dimension_semantics = [#tpu.dimension_semantics<parallel>], iteration_bounds = array<i64: 1>, scalar_prefetch = 0 : i64, scratch_operands = 1 : i64, tpu.core_type = #tpu.core_type<tc>, window_params = [{transform_indices = @transform_0, window_bounds = array<i64: 96, 256>}, {transform_indices = @transform_1, window_bounds = array<i64: 96, 128>}, {pipeline_mode = #tpu.pipeline_mode<synchronous>, transform_indices = @transform_2, window_bounds = array<i64: 3, 32, 96>}, {pipeline_mode = #tpu.pipeline_mode<synchronous>, transform_indices = @transform_3, window_bounds = array<i64: 32, 1>}, {transform_indices = @transform_4, window_bounds = array<i64: 32, 256>}]} {
    %c0 = arith.constant 0 : index
    %c0_0 = arith.constant 0 : index
    %c0_1 = arith.constant 0 : index
    %0 = vector.load %arg3[%c0, %c0_0, %c0_1] : memref<3x32x96xbf16, #tpu.memory_space<vmem>>, vector<1x32x96xbf16>
    %1 = vector.shape_cast %0 : vector<1x32x96xbf16> to vector<32x96xbf16>
    %c0_2 = arith.constant 0 : index
    %c0_3 = arith.constant 0 : index
    %2 = vector.load %arg1[%c0_2, %c0_3] : memref<96x256xbf16, #tpu.memory_space<vmem>>, vector<96x256xbf16>
    %cst = arith.constant dense<0.000000e+00> : vector<32x256xf32>
    %3 = tpu.matmul %1, %2, %cst {dimension_numbers = #tpu.dot_dimension_numbers<[1], [0], [0], [1], [0, 0, 1, 1], [], []>} : vector<32x96xbf16>, vector<96x256xbf16>, vector<32x256xf32> -> vector<32x256xf32>
    %c0_4 = arith.constant 0 : index
    %c0_5 = arith.constant 0 : index
    %4 = vector.load %arg6[%c0_4, %c0_5] : memref<32x256xf32, #tpu.memory_space<vmem>>, vector<32x256xf32>
    tpu.vector_store %arg6[%c0_4, %c0_5], %3 {strides = array<i32>} : memref<32x256xf32, #tpu.memory_space<vmem>>, vector<32x256xf32>,
    %c0_6 = arith.constant 0 : index
    %c0_7 = arith.constant 0 : index
    %5 = vector.load %arg6[%c0_6, %c0_7] : memref<32x256xf32, #tpu.memory_space<vmem>>, vector<32x255xf32>
    %c1 = arith.constant 1 : index
    %c0_8 = arith.constant 0 : index
    %c0_9 = arith.constant 0 : index
    %6 = vector.load %arg3[%c1, %c0_8, %c0_9] : memref<3x32x96xbf16, #tpu.memory_space<vmem>>, vector<1x32x96xbf16>
    %7 = vector.shape_cast %6 : vector<1x32x96xbf16> to vector<32x96xbf16>
    %c0_10 = arith.constant 0 : index
    %c1_11 = arith.constant 1 : index
    %8 = vector.load %arg1[%c0_10, %c1_11] : memref<96x256xbf16, #tpu.memory_space<vmem>>, vector<96x255xbf16>
    %cst_12 = arith.constant dense<0.000000e+00> : vector<32x255xf32>
    %9 = tpu.matmul %7, %8, %cst_12 {dimension_numbers = #tpu.dot_dimension_numbers<[1], [0], [0], [1], [0, 0, 1, 1], [], []>} : vector<32x96xbf16>, vector<96x255xbf16>, vector<32x255xf32> -> vector<32x255xf32>
    %10 = arith.addf %5, %9 : vector<32x255xf32>
    %c0_13 = arith.constant 0 : index
    %c0_14 = arith.constant 0 : index
    %11 = vector.load %arg6[%c0_13, %c0_14] : memref<32x256xf32, #tpu.memory_space<vmem>>, vector<32x255xf32>
    tpu.vector_store %arg6[%c0_13, %c0_14], %10 {strides = array<i32>} : memref<32x256xf32, #tpu.memory_space<vmem>>, vector<32x255xf32>,
    %c1_15 = arith.constant 1 : index
    %c0_16 = arith.constant 0 : index
    %c0_17 = arith.constant 0 : index
    %12 = vector.load %arg3[%c1_15, %c0_16, %c0_17] : memref<3x32x96xbf16, #tpu.memory_space<vmem>>, vector<1x32x96xbf16>
    %13 = vector.shape_cast %12 : vector<1x32x96xbf16> to vector<32x96xbf16>
    %c0_18 = arith.constant 0 : index
    %c0_19 = arith.constant 0 : index
    %14 = vector.load %arg2[%c0_18, %c0_19] : memref<96x128xbf16, #tpu.memory_space<vmem>>, vector<96x128xbf16>
    %cst_20 = arith.constant dense<0.000000e+00> : vector<32x128xf32>
    %15 = tpu.matmul %13, %14, %cst_20 {dimension_numbers = #tpu.dot_dimension_numbers<[1], [0], [0], [1], [0, 0, 1, 1], [], []>} : vector<32x96xbf16>, vector<96x128xbf16>, vector<32x128xf32> -> vector<32x128xf32>
    %c0_21 = arith.constant 0 : index
    %c255 = arith.constant 255 : index
    %16 = vector.load %arg6[%c0_21, %c255] : memref<32x256xf32, #tpu.memory_space<vmem>>, vector<32x1xf32>
    %17 = vector.extract_strided_slice %15 {offsets = [0, 0], sizes = [32, 1], strides = [1, 1]} : vector<32x128xf32> to vector<32x1xf32>
    %18 = arith.addf %16, %17 : vector<32x1xf32>
    %c0_22 = arith.constant 0 : index
    %c255_23 = arith.constant 255 : index
    %19 = vector.load %arg6[%c0_22, %c255_23] : memref<32x256xf32, #tpu.memory_space<vmem>>, vector<32x1xf32>
    tpu.vector_store %arg6[%c0_22, %c255_23], %18 {strides = array<i32>} : memref<32x256xf32, #tpu.memory_space<vmem>>, vector<32x1xf32>,
    %c0_24 = arith.constant 0 : index
    %c0_25 = arith.constant 0 : index
    %20 = vector.load %arg6[%c0_24, %c0_25] : memref<32x256xf32, #tpu.memory_space<vmem>>, vector<32x254xf32>
    %c2 = arith.constant 2 : index
    %c0_26 = arith.constant 0 : index
    %c0_27 = arith.constant 0 : index
    %21 = vector.load %arg3[%c2, %c0_26, %c0_27] : memref<3x32x96xbf16, #tpu.memory_space<vmem>>, vector<1x32x96xbf16>
    %22 = vector.shape_cast %21 : vector<1x32x96xbf16> to vector<32x96xbf16>
    %c0_28 = arith.constant 0 : index
    %c2_29 = arith.constant 2 : index
    %23 = vector.load %arg1[%c0_28, %c2_29] : memref<96x256xbf16, #tpu.memory_space<vmem>>, vector<96x254xbf16>
    %cst_30 = arith.constant dense<0.000000e+00> : vector<32x254xf32>
    %24 = tpu.matmul %22, %23, %cst_30 {dimension_numbers = #tpu.dot_dimension_numbers<[1], [0], [0], [1], [0, 0, 1, 1], [], []>} : vector<32x96xbf16>, vector<96x254xbf16>, vector<32x254xf32> -> vector<32x254xf32>
    %25 = arith.addf %20, %24 : vector<32x254xf32>
    %c0_31 = arith.constant 0 : index
    %c0_32 = arith.constant 0 : index
    %26 = vector.load %arg6[%c0_31, %c0_32] : memref<32x256xf32, #tpu.memory_space<vmem>>, vector<32x254xf32>
    tpu.vector_store %arg6[%c0_31, %c0_32], %25 {strides = array<i32>} : memref<32x256xf32, #tpu.memory_space<vmem>>, vector<32x254xf32>,
    %c2_33 = arith.constant 2 : index
    %c0_34 = arith.constant 0 : index
    %c0_35 = arith.constant 0 : index
    %27 = vector.load %arg3[%c2_33, %c0_34, %c0_35] : memref<3x32x96xbf16, #tpu.memory_space<vmem>>, vector<1x32x96xbf16>
    %28 = vector.shape_cast %27 : vector<1x32x96xbf16> to vector<32x96xbf16>
    %c0_36 = arith.constant 0 : index
    %c0_37 = arith.constant 0 : index
    %29 = vector.load %arg2[%c0_36, %c0_37] : memref<96x128xbf16, #tpu.memory_space<vmem>>, vector<96x128xbf16>
    %cst_38 = arith.constant dense<0.000000e+00> : vector<32x128xf32>
    %30 = tpu.matmul %28, %29, %cst_38 {dimension_numbers = #tpu.dot_dimension_numbers<[1], [0], [0], [1], [0, 0, 1, 1], [], []>} : vector<32x96xbf16>, vector<96x128xbf16>, vector<32x128xf32> -> vector<32x128xf32>
    %c0_39 = arith.constant 0 : index
    %c254 = arith.constant 254 : index
    %31 = vector.load %arg6[%c0_39, %c254] : memref<32x256xf32, #tpu.memory_space<vmem>>, vector<32x2xf32>
    %32 = vector.extract_strided_slice %30 {offsets = [0, 0], sizes = [32, 2], strides = [1, 1]} : vector<32x128xf32> to vector<32x2xf32>
    %33 = arith.addf %31, %32 : vector<32x2xf32>
    %c0_40 = arith.constant 0 : index
    %c254_41 = arith.constant 254 : index
    %34 = vector.load %arg6[%c0_40, %c254_41] : memref<32x256xf32, #tpu.memory_space<vmem>>, vector<32x2xf32>
    tpu.vector_store %arg6[%c0_40, %c254_41], %33 {strides = array<i32>} : memref<32x256xf32, #tpu.memory_space<vmem>>, vector<32x2xf32>,
    %c0_42 = arith.constant 0 : index
    %c0_43 = arith.constant 0 : index
    %35 = vector.load %arg6[%c0_42, %c0_43] : memref<32x256xf32, #tpu.memory_space<vmem>>, vector<32x256xf32>
    %c0_44 = arith.constant 0 : index
    %c0_45 = arith.constant 0 : index
    %36 = vector.load %arg4[%c0_44, %c0_45] : memref<32x1xf32, #tpu.memory_space<vmem>>, vector<32x1xf32>
    %37 = vector.broadcast %36 : vector<32x1xf32> to vector<32x256xf32>
    %38 = arith.addf %35, %37 : vector<32x256xf32>
    %cst_46 = arith.constant 0.000000e+00 : f32
    %39 = vector.broadcast %cst_46 : f32 to vector<32x256xf32>
    %40 = arith.cmpf oge, %38, %39 : vector<32x256xf32>
    %cst_47 = arith.constant 3.000000e-01 : f32
    %41 = vector.broadcast %cst_47 : f32 to vector<32x256xf32>
    %42 = arith.mulf %41, %38 : vector<32x256xf32>
    %43 = arith.select %40, %38, %42 : vector<32x256xi1>, vector<32x256xf32>
    %44 = arith.truncf %43 : vector<32x256xf32> to vector<32x256xbf16>
    %c0_48 = arith.constant 0 : index
    %c0_49 = arith.constant 0 : index
    %45 = vector.load %arg5[%c0_48, %c0_49] : memref<32x256xbf16, #tpu.memory_space<vmem>>, vector<32x256xbf16>
    tpu.vector_store %arg5[%c0_48, %c0_49], %44 {strides = array<i32>} : memref<32x256xbf16, #tpu.memory_space<vmem>>, vector<32x256xbf16>,
    return
  }
  func.func @transform_0(%arg0: i32) -> (i32, i32) {
    %c0_i32 = arith.constant 0 : i32
    %c0_i32_0 = arith.constant 0 : i32
    return %c0_i32, %arg0 : i32, i32
  }
  func.func @transform_1(%arg0: i32) -> (i32, i32) {
    %c1_i32 = arith.constant 1 : i32
    %0 = arith.addi %arg0, %c1_i32 : i32
    %c2_i32 = arith.constant 2 : i32
    %1 = arith.muli %0, %c2_i32 : i32
    %c0_i32 = arith.constant 0 : i32
    %c0_i32_0 = arith.constant 0 : i32
    return %c0_i32, %1 : i32, i32
  }
  func.func @transform_2(%arg0: i32) -> (i32, i32, i32) {
    %c0_i32 = arith.constant 0 : i32
    %c0_i32_0 = arith.constant 0 : i32
    %c0_i32_1 = arith.constant 0 : i32
    %c0_i32_2 = arith.constant 0 : i32
    return %c0_i32, %c0_i32_0, %c0_i32_1 : i32, i32, i32
  }
  func.func @transform_3(%arg0: i32) -> (i32, i32) {
    %c0_i32 = arith.constant 0 : i32
    %c0_i32_0 = arith.constant 0 : i32
    %c0_i32_1 = arith.constant 0 : i32
    return %c0_i32, %c0_i32_0 : i32, i32
  }
  func.func @transform_4(%arg0: i32) -> (i32, i32) {
    %c0_i32 = arith.constant 0 : i32
    %c0_i32_0 = arith.constant 0 : i32
    return %c0_i32, %arg0 : i32, i32
  }
}

module attributes {stable_mosaic.version = 11 : i64} {
  func.func @_conv_pm_kernel(%arg0: i32, %arg1: memref<192x128xbf16, #tpu.memory_space<vmem>>, %arg2: memref<192x128xbf16, #tpu.memory_space<vmem>>, %arg3: memref<3x64x192xbf16, #tpu.memory_space<vmem>>, %arg4: memref<64x1xf32, #tpu.memory_space<vmem>>, %arg5: memref<64x128xbf16, #tpu.memory_space<vmem>>, %arg6: memref<64x128xf32, #tpu.memory_space<vmem>>) attributes {dimension_semantics = [#tpu.dimension_semantics<parallel>], iteration_bounds = array<i64: 1>, scalar_prefetch = 0 : i64, scratch_operands = 1 : i64, tpu.core_type = #tpu.core_type<tc>, window_params = [{transform_indices = @transform_0, window_bounds = array<i64: 192, 128>}, {transform_indices = @transform_1, window_bounds = array<i64: 192, 128>}, {pipeline_mode = #tpu.pipeline_mode<synchronous>, transform_indices = @transform_2, window_bounds = array<i64: 3, 64, 192>}, {pipeline_mode = #tpu.pipeline_mode<synchronous>, transform_indices = @transform_3, window_bounds = array<i64: 64, 1>}, {transform_indices = @transform_4, window_bounds = array<i64: 64, 128>}]} {
    %c0 = arith.constant 0 : index
    %c0_0 = arith.constant 0 : index
    %c0_1 = arith.constant 0 : index
    %0 = vector.load %arg3[%c0, %c0_0, %c0_1] : memref<3x64x192xbf16, #tpu.memory_space<vmem>>, vector<1x64x192xbf16>
    %1 = vector.shape_cast %0 : vector<1x64x192xbf16> to vector<64x192xbf16>
    %c0_2 = arith.constant 0 : index
    %c0_3 = arith.constant 0 : index
    %2 = vector.load %arg1[%c0_2, %c0_3] : memref<192x128xbf16, #tpu.memory_space<vmem>>, vector<192x128xbf16>
    %cst = arith.constant dense<0.000000e+00> : vector<64x128xf32>
    %3 = tpu.matmul %1, %2, %cst {dimension_numbers = #tpu.dot_dimension_numbers<[1], [0], [0], [1], [0, 0, 1, 1], [], []>} : vector<64x192xbf16>, vector<192x128xbf16>, vector<64x128xf32> -> vector<64x128xf32>
    %c0_4 = arith.constant 0 : index
    %c0_5 = arith.constant 0 : index
    %4 = vector.load %arg6[%c0_4, %c0_5] : memref<64x128xf32, #tpu.memory_space<vmem>>, vector<64x128xf32>
    tpu.vector_store %arg6[%c0_4, %c0_5], %3 {strides = array<i32>} : memref<64x128xf32, #tpu.memory_space<vmem>>, vector<64x128xf32>,
    %c0_6 = arith.constant 0 : index
    %c0_7 = arith.constant 0 : index
    %5 = vector.load %arg6[%c0_6, %c0_7] : memref<64x128xf32, #tpu.memory_space<vmem>>, vector<64x127xf32>
    %c1 = arith.constant 1 : index
    %c0_8 = arith.constant 0 : index
    %c0_9 = arith.constant 0 : index
    %6 = vector.load %arg3[%c1, %c0_8, %c0_9] : memref<3x64x192xbf16, #tpu.memory_space<vmem>>, vector<1x64x192xbf16>
    %7 = vector.shape_cast %6 : vector<1x64x192xbf16> to vector<64x192xbf16>
    %c0_10 = arith.constant 0 : index
    %c1_11 = arith.constant 1 : index
    %8 = vector.load %arg1[%c0_10, %c1_11] : memref<192x128xbf16, #tpu.memory_space<vmem>>, vector<192x127xbf16>
    %cst_12 = arith.constant dense<0.000000e+00> : vector<64x127xf32>
    %9 = tpu.matmul %7, %8, %cst_12 {dimension_numbers = #tpu.dot_dimension_numbers<[1], [0], [0], [1], [0, 0, 1, 1], [], []>} : vector<64x192xbf16>, vector<192x127xbf16>, vector<64x127xf32> -> vector<64x127xf32>
    %10 = arith.addf %5, %9 : vector<64x127xf32>
    %c0_13 = arith.constant 0 : index
    %c0_14 = arith.constant 0 : index
    %11 = vector.load %arg6[%c0_13, %c0_14] : memref<64x128xf32, #tpu.memory_space<vmem>>, vector<64x127xf32>
    tpu.vector_store %arg6[%c0_13, %c0_14], %10 {strides = array<i32>} : memref<64x128xf32, #tpu.memory_space<vmem>>, vector<64x127xf32>,
    %c1_15 = arith.constant 1 : index
    %c0_16 = arith.constant 0 : index
    %c0_17 = arith.constant 0 : index
    %12 = vector.load %arg3[%c1_15, %c0_16, %c0_17] : memref<3x64x192xbf16, #tpu.memory_space<vmem>>, vector<1x64x192xbf16>
    %13 = vector.shape_cast %12 : vector<1x64x192xbf16> to vector<64x192xbf16>
    %c0_18 = arith.constant 0 : index
    %c0_19 = arith.constant 0 : index
    %14 = vector.load %arg2[%c0_18, %c0_19] : memref<192x128xbf16, #tpu.memory_space<vmem>>, vector<192x128xbf16>
    %cst_20 = arith.constant dense<0.000000e+00> : vector<64x128xf32>
    %15 = tpu.matmul %13, %14, %cst_20 {dimension_numbers = #tpu.dot_dimension_numbers<[1], [0], [0], [1], [0, 0, 1, 1], [], []>} : vector<64x192xbf16>, vector<192x128xbf16>, vector<64x128xf32> -> vector<64x128xf32>
    %c0_21 = arith.constant 0 : index
    %c127 = arith.constant 127 : index
    %16 = vector.load %arg6[%c0_21, %c127] : memref<64x128xf32, #tpu.memory_space<vmem>>, vector<64x1xf32>
    %17 = vector.extract_strided_slice %15 {offsets = [0, 0], sizes = [64, 1], strides = [1, 1]} : vector<64x128xf32> to vector<64x1xf32>
    %18 = arith.addf %16, %17 : vector<64x1xf32>
    %c0_22 = arith.constant 0 : index
    %c127_23 = arith.constant 127 : index
    %19 = vector.load %arg6[%c0_22, %c127_23] : memref<64x128xf32, #tpu.memory_space<vmem>>, vector<64x1xf32>
    tpu.vector_store %arg6[%c0_22, %c127_23], %18 {strides = array<i32>} : memref<64x128xf32, #tpu.memory_space<vmem>>, vector<64x1xf32>,
    %c0_24 = arith.constant 0 : index
    %c0_25 = arith.constant 0 : index
    %20 = vector.load %arg6[%c0_24, %c0_25] : memref<64x128xf32, #tpu.memory_space<vmem>>, vector<64x126xf32>
    %c2 = arith.constant 2 : index
    %c0_26 = arith.constant 0 : index
    %c0_27 = arith.constant 0 : index
    %21 = vector.load %arg3[%c2, %c0_26, %c0_27] : memref<3x64x192xbf16, #tpu.memory_space<vmem>>, vector<1x64x192xbf16>
    %22 = vector.shape_cast %21 : vector<1x64x192xbf16> to vector<64x192xbf16>
    %c0_28 = arith.constant 0 : index
    %c2_29 = arith.constant 2 : index
    %23 = vector.load %arg1[%c0_28, %c2_29] : memref<192x128xbf16, #tpu.memory_space<vmem>>, vector<192x126xbf16>
    %cst_30 = arith.constant dense<0.000000e+00> : vector<64x126xf32>
    %24 = tpu.matmul %22, %23, %cst_30 {dimension_numbers = #tpu.dot_dimension_numbers<[1], [0], [0], [1], [0, 0, 1, 1], [], []>} : vector<64x192xbf16>, vector<192x126xbf16>, vector<64x126xf32> -> vector<64x126xf32>
    %25 = arith.addf %20, %24 : vector<64x126xf32>
    %c0_31 = arith.constant 0 : index
    %c0_32 = arith.constant 0 : index
    %26 = vector.load %arg6[%c0_31, %c0_32] : memref<64x128xf32, #tpu.memory_space<vmem>>, vector<64x126xf32>
    tpu.vector_store %arg6[%c0_31, %c0_32], %25 {strides = array<i32>} : memref<64x128xf32, #tpu.memory_space<vmem>>, vector<64x126xf32>,
    %c2_33 = arith.constant 2 : index
    %c0_34 = arith.constant 0 : index
    %c0_35 = arith.constant 0 : index
    %27 = vector.load %arg3[%c2_33, %c0_34, %c0_35] : memref<3x64x192xbf16, #tpu.memory_space<vmem>>, vector<1x64x192xbf16>
    %28 = vector.shape_cast %27 : vector<1x64x192xbf16> to vector<64x192xbf16>
    %c0_36 = arith.constant 0 : index
    %c0_37 = arith.constant 0 : index
    %29 = vector.load %arg2[%c0_36, %c0_37] : memref<192x128xbf16, #tpu.memory_space<vmem>>, vector<192x128xbf16>
    %cst_38 = arith.constant dense<0.000000e+00> : vector<64x128xf32>
    %30 = tpu.matmul %28, %29, %cst_38 {dimension_numbers = #tpu.dot_dimension_numbers<[1], [0], [0], [1], [0, 0, 1, 1], [], []>} : vector<64x192xbf16>, vector<192x128xbf16>, vector<64x128xf32> -> vector<64x128xf32>
    %c0_39 = arith.constant 0 : index
    %c126 = arith.constant 126 : index
    %31 = vector.load %arg6[%c0_39, %c126] : memref<64x128xf32, #tpu.memory_space<vmem>>, vector<64x2xf32>
    %32 = vector.extract_strided_slice %30 {offsets = [0, 0], sizes = [64, 2], strides = [1, 1]} : vector<64x128xf32> to vector<64x2xf32>
    %33 = arith.addf %31, %32 : vector<64x2xf32>
    %c0_40 = arith.constant 0 : index
    %c126_41 = arith.constant 126 : index
    %34 = vector.load %arg6[%c0_40, %c126_41] : memref<64x128xf32, #tpu.memory_space<vmem>>, vector<64x2xf32>
    tpu.vector_store %arg6[%c0_40, %c126_41], %33 {strides = array<i32>} : memref<64x128xf32, #tpu.memory_space<vmem>>, vector<64x2xf32>,
    %c0_42 = arith.constant 0 : index
    %c0_43 = arith.constant 0 : index
    %35 = vector.load %arg6[%c0_42, %c0_43] : memref<64x128xf32, #tpu.memory_space<vmem>>, vector<64x128xf32>
    %c0_44 = arith.constant 0 : index
    %c0_45 = arith.constant 0 : index
    %36 = vector.load %arg4[%c0_44, %c0_45] : memref<64x1xf32, #tpu.memory_space<vmem>>, vector<64x1xf32>
    %37 = vector.broadcast %36 : vector<64x1xf32> to vector<64x128xf32>
    %38 = arith.addf %35, %37 : vector<64x128xf32>
    %cst_46 = arith.constant 0.000000e+00 : f32
    %39 = vector.broadcast %cst_46 : f32 to vector<64x128xf32>
    %40 = arith.cmpf oge, %38, %39 : vector<64x128xf32>
    %cst_47 = arith.constant 3.000000e-01 : f32
    %41 = vector.broadcast %cst_47 : f32 to vector<64x128xf32>
    %42 = arith.mulf %41, %38 : vector<64x128xf32>
    %43 = arith.select %40, %38, %42 : vector<64x128xi1>, vector<64x128xf32>
    %44 = arith.truncf %43 : vector<64x128xf32> to vector<64x128xbf16>
    %c0_48 = arith.constant 0 : index
    %c0_49 = arith.constant 0 : index
    %45 = vector.load %arg5[%c0_48, %c0_49] : memref<64x128xbf16, #tpu.memory_space<vmem>>, vector<64x128xbf16>
    tpu.vector_store %arg5[%c0_48, %c0_49], %44 {strides = array<i32>} : memref<64x128xbf16, #tpu.memory_space<vmem>>, vector<64x128xbf16>,
    return
  }
  func.func @transform_0(%arg0: i32) -> (i32, i32) {
    %c0_i32 = arith.constant 0 : i32
    %c0_i32_0 = arith.constant 0 : i32
    return %c0_i32, %arg0 : i32, i32
  }
  func.func @transform_1(%arg0: i32) -> (i32, i32) {
    %c1_i32 = arith.constant 1 : i32
    %0 = arith.addi %arg0, %c1_i32 : i32
    %c1_i32_0 = arith.constant 1 : i32
    %1 = arith.muli %0, %c1_i32_0 : i32
    %c0_i32 = arith.constant 0 : i32
    %c0_i32_1 = arith.constant 0 : i32
    return %c0_i32, %1 : i32, i32
  }
  func.func @transform_2(%arg0: i32) -> (i32, i32, i32) {
    %c0_i32 = arith.constant 0 : i32
    %c0_i32_0 = arith.constant 0 : i32
    %c0_i32_1 = arith.constant 0 : i32
    %c0_i32_2 = arith.constant 0 : i32
    return %c0_i32, %c0_i32_0, %c0_i32_1 : i32, i32, i32
  }
  func.func @transform_3(%arg0: i32) -> (i32, i32) {
    %c0_i32 = arith.constant 0 : i32
    %c0_i32_0 = arith.constant 0 : i32
    %c0_i32_1 = arith.constant 0 : i32
    return %c0_i32, %c0_i32_0 : i32, i32
  }
  func.func @transform_4(%arg0: i32) -> (i32, i32) {
    %c0_i32 = arith.constant 0 : i32
    %c0_i32_0 = arith.constant 0 : i32
    return %c0_i32, %arg0 : i32, i32
  }
}

module attributes {stable_mosaic.version = 11 : i64} {
  func.func @_conv_pm_kernel(%arg0: i32, %arg1: memref<384x128xbf16, #tpu.memory_space<vmem>>, %arg2: memref<384x128xbf16, #tpu.memory_space<vmem>>, %arg3: memref<3x32x384xbf16, #tpu.memory_space<vmem>>, %arg4: memref<32x1xf32, #tpu.memory_space<vmem>>, %arg5: memref<32x128xf32, #tpu.memory_space<vmem>>, %arg6: memref<32x128xf32, #tpu.memory_space<vmem>>) attributes {dimension_semantics = [#tpu.dimension_semantics<parallel>], iteration_bounds = array<i64: 1>, scalar_prefetch = 0 : i64, scratch_operands = 1 : i64, tpu.core_type = #tpu.core_type<tc>, window_params = [{transform_indices = @transform_0, window_bounds = array<i64: 384, 128>}, {transform_indices = @transform_1, window_bounds = array<i64: 384, 128>}, {pipeline_mode = #tpu.pipeline_mode<synchronous>, transform_indices = @transform_2, window_bounds = array<i64: 3, 32, 384>}, {pipeline_mode = #tpu.pipeline_mode<synchronous>, transform_indices = @transform_3, window_bounds = array<i64: 32, 1>}, {transform_indices = @transform_4, window_bounds = array<i64: 32, 128>}]} {
    %c0 = arith.constant 0 : index
    %c0_0 = arith.constant 0 : index
    %c0_1 = arith.constant 0 : index
    %0 = vector.load %arg3[%c0, %c0_0, %c0_1] : memref<3x32x384xbf16, #tpu.memory_space<vmem>>, vector<1x32x384xbf16>
    %1 = vector.shape_cast %0 : vector<1x32x384xbf16> to vector<32x384xbf16>
    %c0_2 = arith.constant 0 : index
    %c0_3 = arith.constant 0 : index
    %2 = vector.load %arg1[%c0_2, %c0_3] : memref<384x128xbf16, #tpu.memory_space<vmem>>, vector<384x128xbf16>
    %cst = arith.constant dense<0.000000e+00> : vector<32x128xf32>
    %3 = tpu.matmul %1, %2, %cst {dimension_numbers = #tpu.dot_dimension_numbers<[1], [0], [0], [1], [0, 0, 1, 1], [], []>} : vector<32x384xbf16>, vector<384x128xbf16>, vector<32x128xf32> -> vector<32x128xf32>
    %c0_4 = arith.constant 0 : index
    %c0_5 = arith.constant 0 : index
    %4 = vector.load %arg6[%c0_4, %c0_5] : memref<32x128xf32, #tpu.memory_space<vmem>>, vector<32x128xf32>
    tpu.vector_store %arg6[%c0_4, %c0_5], %3 {strides = array<i32>} : memref<32x128xf32, #tpu.memory_space<vmem>>, vector<32x128xf32>,
    %c0_6 = arith.constant 0 : index
    %c0_7 = arith.constant 0 : index
    %5 = vector.load %arg6[%c0_6, %c0_7] : memref<32x128xf32, #tpu.memory_space<vmem>>, vector<32x127xf32>
    %c1 = arith.constant 1 : index
    %c0_8 = arith.constant 0 : index
    %c0_9 = arith.constant 0 : index
    %6 = vector.load %arg3[%c1, %c0_8, %c0_9] : memref<3x32x384xbf16, #tpu.memory_space<vmem>>, vector<1x32x384xbf16>
    %7 = vector.shape_cast %6 : vector<1x32x384xbf16> to vector<32x384xbf16>
    %c0_10 = arith.constant 0 : index
    %c1_11 = arith.constant 1 : index
    %8 = vector.load %arg1[%c0_10, %c1_11] : memref<384x128xbf16, #tpu.memory_space<vmem>>, vector<384x127xbf16>
    %cst_12 = arith.constant dense<0.000000e+00> : vector<32x127xf32>
    %9 = tpu.matmul %7, %8, %cst_12 {dimension_numbers = #tpu.dot_dimension_numbers<[1], [0], [0], [1], [0, 0, 1, 1], [], []>} : vector<32x384xbf16>, vector<384x127xbf16>, vector<32x127xf32> -> vector<32x127xf32>
    %10 = arith.addf %5, %9 : vector<32x127xf32>
    %c0_13 = arith.constant 0 : index
    %c0_14 = arith.constant 0 : index
    %11 = vector.load %arg6[%c0_13, %c0_14] : memref<32x128xf32, #tpu.memory_space<vmem>>, vector<32x127xf32>
    tpu.vector_store %arg6[%c0_13, %c0_14], %10 {strides = array<i32>} : memref<32x128xf32, #tpu.memory_space<vmem>>, vector<32x127xf32>,
    %c1_15 = arith.constant 1 : index
    %c0_16 = arith.constant 0 : index
    %c0_17 = arith.constant 0 : index
    %12 = vector.load %arg3[%c1_15, %c0_16, %c0_17] : memref<3x32x384xbf16, #tpu.memory_space<vmem>>, vector<1x32x384xbf16>
    %13 = vector.shape_cast %12 : vector<1x32x384xbf16> to vector<32x384xbf16>
    %c0_18 = arith.constant 0 : index
    %c0_19 = arith.constant 0 : index
    %14 = vector.load %arg2[%c0_18, %c0_19] : memref<384x128xbf16, #tpu.memory_space<vmem>>, vector<384x128xbf16>
    %cst_20 = arith.constant dense<0.000000e+00> : vector<32x128xf32>
    %15 = tpu.matmul %13, %14, %cst_20 {dimension_numbers = #tpu.dot_dimension_numbers<[1], [0], [0], [1], [0, 0, 1, 1], [], []>} : vector<32x384xbf16>, vector<384x128xbf16>, vector<32x128xf32> -> vector<32x128xf32>
    %c0_21 = arith.constant 0 : index
    %c127 = arith.constant 127 : index
    %16 = vector.load %arg6[%c0_21, %c127] : memref<32x128xf32, #tpu.memory_space<vmem>>, vector<32x1xf32>
    %17 = vector.extract_strided_slice %15 {offsets = [0, 0], sizes = [32, 1], strides = [1, 1]} : vector<32x128xf32> to vector<32x1xf32>
    %18 = arith.addf %16, %17 : vector<32x1xf32>
    %c0_22 = arith.constant 0 : index
    %c127_23 = arith.constant 127 : index
    %19 = vector.load %arg6[%c0_22, %c127_23] : memref<32x128xf32, #tpu.memory_space<vmem>>, vector<32x1xf32>
    tpu.vector_store %arg6[%c0_22, %c127_23], %18 {strides = array<i32>} : memref<32x128xf32, #tpu.memory_space<vmem>>, vector<32x1xf32>,
    %c0_24 = arith.constant 0 : index
    %c0_25 = arith.constant 0 : index
    %20 = vector.load %arg6[%c0_24, %c0_25] : memref<32x128xf32, #tpu.memory_space<vmem>>, vector<32x126xf32>
    %c2 = arith.constant 2 : index
    %c0_26 = arith.constant 0 : index
    %c0_27 = arith.constant 0 : index
    %21 = vector.load %arg3[%c2, %c0_26, %c0_27] : memref<3x32x384xbf16, #tpu.memory_space<vmem>>, vector<1x32x384xbf16>
    %22 = vector.shape_cast %21 : vector<1x32x384xbf16> to vector<32x384xbf16>
    %c0_28 = arith.constant 0 : index
    %c2_29 = arith.constant 2 : index
    %23 = vector.load %arg1[%c0_28, %c2_29] : memref<384x128xbf16, #tpu.memory_space<vmem>>, vector<384x126xbf16>
    %cst_30 = arith.constant dense<0.000000e+00> : vector<32x126xf32>
    %24 = tpu.matmul %22, %23, %cst_30 {dimension_numbers = #tpu.dot_dimension_numbers<[1], [0], [0], [1], [0, 0, 1, 1], [], []>} : vector<32x384xbf16>, vector<384x126xbf16>, vector<32x126xf32> -> vector<32x126xf32>
    %25 = arith.addf %20, %24 : vector<32x126xf32>
    %c0_31 = arith.constant 0 : index
    %c0_32 = arith.constant 0 : index
    %26 = vector.load %arg6[%c0_31, %c0_32] : memref<32x128xf32, #tpu.memory_space<vmem>>, vector<32x126xf32>
    tpu.vector_store %arg6[%c0_31, %c0_32], %25 {strides = array<i32>} : memref<32x128xf32, #tpu.memory_space<vmem>>, vector<32x126xf32>,
    %c2_33 = arith.constant 2 : index
    %c0_34 = arith.constant 0 : index
    %c0_35 = arith.constant 0 : index
    %27 = vector.load %arg3[%c2_33, %c0_34, %c0_35] : memref<3x32x384xbf16, #tpu.memory_space<vmem>>, vector<1x32x384xbf16>
    %28 = vector.shape_cast %27 : vector<1x32x384xbf16> to vector<32x384xbf16>
    %c0_36 = arith.constant 0 : index
    %c0_37 = arith.constant 0 : index
    %29 = vector.load %arg2[%c0_36, %c0_37] : memref<384x128xbf16, #tpu.memory_space<vmem>>, vector<384x128xbf16>
    %cst_38 = arith.constant dense<0.000000e+00> : vector<32x128xf32>
    %30 = tpu.matmul %28, %29, %cst_38 {dimension_numbers = #tpu.dot_dimension_numbers<[1], [0], [0], [1], [0, 0, 1, 1], [], []>} : vector<32x384xbf16>, vector<384x128xbf16>, vector<32x128xf32> -> vector<32x128xf32>
    %c0_39 = arith.constant 0 : index
    %c126 = arith.constant 126 : index
    %31 = vector.load %arg6[%c0_39, %c126] : memref<32x128xf32, #tpu.memory_space<vmem>>, vector<32x2xf32>
    %32 = vector.extract_strided_slice %30 {offsets = [0, 0], sizes = [32, 2], strides = [1, 1]} : vector<32x128xf32> to vector<32x2xf32>
    %33 = arith.addf %31, %32 : vector<32x2xf32>
    %c0_40 = arith.constant 0 : index
    %c126_41 = arith.constant 126 : index
    %34 = vector.load %arg6[%c0_40, %c126_41] : memref<32x128xf32, #tpu.memory_space<vmem>>, vector<32x2xf32>
    tpu.vector_store %arg6[%c0_40, %c126_41], %33 {strides = array<i32>} : memref<32x128xf32, #tpu.memory_space<vmem>>, vector<32x2xf32>,
    %c0_42 = arith.constant 0 : index
    %c0_43 = arith.constant 0 : index
    %35 = vector.load %arg6[%c0_42, %c0_43] : memref<32x128xf32, #tpu.memory_space<vmem>>, vector<32x128xf32>
    %c0_44 = arith.constant 0 : index
    %c0_45 = arith.constant 0 : index
    %36 = vector.load %arg4[%c0_44, %c0_45] : memref<32x1xf32, #tpu.memory_space<vmem>>, vector<32x1xf32>
    %37 = vector.broadcast %36 : vector<32x1xf32> to vector<32x128xf32>
    %38 = arith.addf %35, %37 : vector<32x128xf32>
    %c0_46 = arith.constant 0 : index
    %c0_47 = arith.constant 0 : index
    %39 = vector.load %arg5[%c0_46, %c0_47] : memref<32x128xf32, #tpu.memory_space<vmem>>, vector<32x128xf32>
    tpu.vector_store %arg5[%c0_46, %c0_47], %38 {strides = array<i32>} : memref<32x128xf32, #tpu.memory_space<vmem>>, vector<32x128xf32>,
    return
  }
  func.func @transform_0(%arg0: i32) -> (i32, i32) {
    %c0_i32 = arith.constant 0 : i32
    %c0_i32_0 = arith.constant 0 : i32
    return %c0_i32, %arg0 : i32, i32
  }
  func.func @transform_1(%arg0: i32) -> (i32, i32) {
    %c1_i32 = arith.constant 1 : i32
    %0 = arith.addi %arg0, %c1_i32 : i32
    %c1_i32_0 = arith.constant 1 : i32
    %1 = arith.muli %0, %c1_i32_0 : i32
    %c0_i32 = arith.constant 0 : i32
    %c0_i32_1 = arith.constant 0 : i32
    return %c0_i32, %1 : i32, i32
  }
  func.func @transform_2(%arg0: i32) -> (i32, i32, i32) {
    %c0_i32 = arith.constant 0 : i32
    %c0_i32_0 = arith.constant 0 : i32
    %c0_i32_1 = arith.constant 0 : i32
    %c0_i32_2 = arith.constant 0 : i32
    return %c0_i32, %c0_i32_0, %c0_i32_1 : i32, i32, i32
  }
  func.func @transform_3(%arg0: i32) -> (i32, i32) {
    %c0_i32 = arith.constant 0 : i32
    %c0_i32_0 = arith.constant 0 : i32
    %c0_i32_1 = arith.constant 0 : i32
    return %c0_i32, %c0_i32_0 : i32, i32
  }
  func.func @transform_4(%arg0: i32) -> (i32, i32) {
    %c0_i32 = arith.constant 0 : i32
    %c0_i32_0 = arith.constant 0 : i32
    return %c0_i32, %arg0 : i32, i32
  }
}

</mosaic_0001>

<bundles_post_ra>
// kernel: wav_encoder_forward.4
= control target key start
LH: loop header
LB: loop body
LE: loop exit
PB: predicated region body
PF: predicated region fallthrough
CT: control target
= control target key end

     0   :  { %s498_s12 = smov 0   ;;  %s500_s13 = smov 0   ;;  %s543_s0 = inlined_call_operand.vmem [shape: bf16[6,16,256], index: 0, kind: input, shape index: {}]   ;;  %s544_s1 = inlined_call_operand.vmem [shape: bf16[16,16], index: 1, kind: input, shape index: {}]   ;;  %s545_s2 = inlined_call_operand.vmem [shape: f32[16,1], index: 2, kind: input, shape index: {}]   ;;  %s546_s3 = inlined_call_operand.vmem [shape: bf16[6,16,256], index: 3, kind: output, shape index: {}]  }
   0x1   :  { %s502_s14 = smov 0  }
   0x2 LB: > { %s25_s15 = sadd.s32 1, %s471_s13  ;;  %p406_p0 = scmp.ge.s32.totalorder %s475_s14, 1  ;;  %s475_s14 = sphi %s502_s14, %s13_s14   ;;  %s471_s13 = sphi %s500_s13, %s548_s13   ;;  %s467_s12 = sphi %s498_s12, %s547_s12  }
   0x3   : > { %p27_p1 = scmp.ge.s32.totalorder %s25_s15, 6  ;;  %p158_p2 = scmp.lt.s32.totalorder %s475_s14, 7 }
   0x5   : > { %s550_s15 = smov (%p27_p1, %s25_s15), 0  ;;  %p159_p3 = pnand %p406_p0, %p158_p2 }
   0x6   : > { %p191_p4 = scmp.lt.s32.totalorder (!%p159_p3), %s467_s12, 5  ;;  %v477_v0 = vmov (!%p159_p3), 0   ;;  %v215_v1 = vld [vmem:[%s545_s2] sm:$0xff] (!%p159_p3)  ;;  %v216_v2 = vld [vmem:[%s545_s2 + $0x8] sm:$0xff] (!%p159_p3)  ;;  %vm242_vm0 = vcmask (!%p159_p3), 130048  }
   0x7   : > { %162 = sbr.rel (%p159_p3) target bundleno = 245 (0xf5), region = 32  ;;  %278 = vmatprep.mubr.bf16.mxu0 (!%p159_p3), %v477_v0  ;;  %448 = vset.pattern.permute.xlu0 (!%p159_p3), %v477_v0  ;;  %v452_v5 = vld [vmem:[%s544_s1] sm:$0xff] (!%p159_p3)  }
   0x8   : > { %219 = vperm.xlu0 (!%p159_p3), %448, %v215_v1  }
   0xc   : > { %224 = vperm.xlu0 (!%p159_p3), %448, %v216_v2  }
   0xe   : > { %s552_s12 = smov (!%p191_p4, %s467_s12), 5 }
   0xf   : > { %s419_s20 = sshll.u32 %s552_s12, 4 }
  0x10   : > { %s198_s23 = scalar_lea.vmem %s543_s0, %s419_s20  ;;  %s208_s28 = scalar_lea.vmem %s546_s3, %s419_s20 }
  0x11   : > { %v449_v3 = vld [vmem:[%s198_s23 + $0x4] ss:$8 sps:$4 sm:$0xff]   ;;  %v451_v4 = vld [vmem:[%s198_s23] ss:$8 sps:$4 sm:$0xff]  }
  0x12   : > { %246 = vmatprep.subr.bf16.mxu0 %v449_v3 }
  0x13   : > { %247 = vmatpush1.bf16.msra.mxu0 %v451_v4 }
  0x16   : > { %414 = vmatmul.mubr.msk.bf16.vlgmr.msra.gmra.mrb[0].mxu0 %vm242_vm0, %v452_v5 }
  0x87   : > { %v220_v6 = vpop.permute.xlu0 %219 }
  0x8b   : > { %v225_v10 = vpop.permute.xlu0 %224 }
  0xe9   : > { %v280_v7 = vpop.f32.mrb[0].mxu0 }
  0xea   : > { %v281_v8 = vadd.f32 %v280_v7, %v220_v6  ;;  %v282_v9 = vpop.f32.mrb[1].mxu0 }
  0xeb   : > { %v283_v11 = vadd.f32 %v282_v9, %v220_v6  ;;  %v284_v12 = vpop.f32.mrb[2].mxu0 }
  0xec   : > { %vm289_vm1 = vcmp.ge.f32.partialorder %v281_v8, 0.0  ;;  %v293_v13 = vmul.f32 0.3, %v281_v8  ;;  %v285_v14 = vadd.f32 %v284_v12, %v225_v10  ;;  %v286_v15 = vpop.f32.mrb[3].mxu0 }
  0xed   : > { %vm290_vm2 = vcmp.ge.f32.partialorder %v283_v11, 0.0  ;;  %v294_v16 = vmul.f32 0.3, %v283_v11  ;;  %v287_v17 = vadd.f32 %v286_v15, %v225_v10 }
  0xee   : > { %v297_v18 = vsel %vm289_vm1, %v281_v8, %v293_v13  ;;  %vm291_vm3 = vcmp.ge.f32.partialorder %v285_v14, 0.0  ;;  %v295_v19 = vmul.f32 0.3, %v285_v14 }
  0xef   : > { %v298_v20 = vsel %vm290_vm2, %v283_v11, %v294_v16  ;;  %vm292_vm4 = vcmp.ge.f32.partialorder %v287_v17, 0.0  ;;  %v296_v21 = vmul.f32 0.3, %v287_v17 }
  0xf0   : > { %v421_v22 = vpack.c.bf16 %v298_v20, %v297_v18  ;;  %v299_v23 = vsel %vm291_vm3, %v285_v14, %v295_v19 }
  0xf1   : > { %v300_v24 = vsel %vm292_vm4, %v287_v17, %v296_v21 }
  0xf2   : > { %313 = vst [vmem:[%s208_s28] sm:$0xff] %v421_v22  ;;  %v422_v25 = vpack.c.bf16 %v300_v24, %v299_v23 }
  0xf4   : > { %314 = vst [vmem:[%s208_s28 + $0x8] sm:$0xff] %v422_v25 }
  0xf5 PF: > { %s13_s14 = sadd.s32 1, %s475_s14   ;;  %s547_s12 = smov %s471_s13 }
  0xf6   : > { %p10_p5 = scmp.ge.s32.totalorder %s13_s14, 8   ;;  %s548_s13 = smov %s550_s15 }
  0xf8   :  { %12 = sbr.rel (!%p10_p5) target bundleno = 2 (0x2), region = 62 }

// kernel: wav_encoder_forward.5
= control target key start
LH: loop header
LB: loop body
LE: loop exit
PB: predicated region body
PF: predicated region fallthrough
CT: control target
= control target key end

     0   :  { %v1339_v2 = vmov 0   ;;  %s1340_s23 = smov 127   ;;  %vm273_vm0 = vcmask 785408   ;;  %vm448_vm1 = vcmask 1039360   ;;  %vm796_vm2 = vcmask 1031168   ;;  %s1607_s0 = inlined_call_operand.vmem [shape: bf16[96,512], index: 0, kind: input, shape index: {}, may-alias: {0,1}]   ;;  %s1608_s1 = inlined_call_operand.vmem [shape: bf16[96,512], index: 1, kind: input, shape index: {}, may-alias: {0,1}]   ;;  %s1609_s2 = inlined_call_operand.vmem [shape: bf16[3,32,96], index: 2, kind: input, shape index: {}]   ;;  %s1610_s3 = inlined_call_operand.vmem [shape: f32[32,1], index: 3, kind: input, shape index: {}]   ;;  %s1611_s4 = inlined_call_operand.vmem [shape: bf16[32,256], index: 4, kind: output, shape index: {}]  }
   0x1   :  { %v1370_v0 = vld [vmem:[%s1607_s0 + $0x4] ss:$16 sps:$4 sm:$0xff]   ;;  %v1375_v1 = vld [vmem:[%s1607_s0] ss:$16 sps:$4 sm:$0xff]   ;;  %312 = vmatprep.mubr.bf16.mxu0 %v1339_v2  ;;  %505 = vmatprep.mubr.bf16.mxu1 %v1339_v2  ;;  %v1142_v9 = vld [vmem:[%s1608_s1 + $0x8] sm:$0xf] }
   0x2   :  { %280 = vmatprep.subr.bf16.mxu0 %v1370_v0  ;;  %v1383_v3 = vld [vmem:[%s1607_s0 + $0x20] ss:$16 sps:$4 sm:$0xff]   ;;  %v1388_v4 = vld [vmem:[%s1607_s0 + $0x24] ss:$16 sps:$4 sm:$0xff]   ;;  %1297 = vset.pattern.permute.xlu0 %v1339_v2  ;;  %v1143_v10 = vld [vmem:[%s1608_s1 + $0x18] sm:$0xf] }
   0x3   :  { %424 = vrot.lane.b32.xlu0 %v1375_v1, %s1340_s23  ;;  %281 = vmatpush1.bf16.msra.mxu0 %v1375_v1  ;;  %v1400_v5 = vld [vmem:[%s1607_s0 + $0x44] ss:$16 sps:$4 sm:$0xff]   ;;  %v1409_v6 = vld [vmem:[%s1607_s0 + $0x40] ss:$16 sps:$4 sm:$0xff]   ;;  %v1144_v11 = vld [vmem:[%s1608_s1 + $0x28] sm:$0xf] }
   0x4   :  { %428 = vrot.lane.b32.xlu1 %v1383_v3, %s1340_s23  ;;  %282 = vmatprep.subr.bf16.mxu0 %v1388_v4  ;;  %v1417_v7 = vld [vmem:[%s1607_s0 + $0x64] ss:$16 sps:$4 sm:$0xff]   ;;  %v1422_v8 = vld [vmem:[%s1607_s0 + $0x60] ss:$16 sps:$4 sm:$0xff]   ;;  %109 = vst [vmem:[#allocation4] sm:$0xf] %v1142_v9 }
   0x5   :  { %1298 = vset.pattern.permute.xlu1 %v1339_v2  ;;  %111 = vst [vmem:[#allocation4 + $0x4] sm:$0xf] %v1143_v10  ;;  %113 = vst [vmem:[#allocation4 + $0x8] sm:$0xf] %v1144_v11  ;;  %v1145_v12 = vld [vmem:[%s1608_s1 + $0x38] sm:$0xf] }
   0x6   :  { %v1146_v13 = vld [vmem:[%s1608_s1 + $0x48] sm:$0xf]  ;;  %v1147_v14 = vld [vmem:[%s1608_s1 + $0x58] sm:$0xf]  ;;  %115 = vst [vmem:[#allocation4 + $0xc] sm:$0xf] %v1145_v12 }
   0x7   :  { %426 = vrot.lane.b32.xlu0 %v1370_v0, %s1340_s23  ;;  %283 = vmatpush1.bf16.msra.mxu0 %v1383_v3  ;;  %117 = vst [vmem:[#allocation4 + $0x10] sm:$0xf] %v1146_v13  ;;  %119 = vst [vmem:[#allocation4 + $0x14] sm:$0xf] %v1147_v14  ;;  %v1148_v15 = vld [vmem:[%s1608_s1 + $0x68] sm:$0xf] }
   0x8   :  { %430 = vrot.lane.b32.xlu1 %v1388_v4, %s1340_s23  ;;  %284 = vmatprep.subr.bf16.mxu0 %v1400_v5  ;;  %v1149_v16 = vld [vmem:[%s1608_s1 + $0x78] sm:$0xf]  ;;  %v1311_v17 = vld [vmem:[%s1607_s0 + $0x84] ss:$16 sps:$4 sm:$0xff]   ;;  %121 = vst [vmem:[#allocation4 + $0x18] sm:$0xf] %v1148_v15 }
   0x9   :  { %123 = vst [vmem:[#allocation4 + $0x1c] sm:$0xf] %v1149_v16  ;;  %v1150_v18 = vld [vmem:[%s1608_s1 + $0x88] sm:$0xf]  ;;  %v1151_v19 = vld [vmem:[%s1608_s1 + $0x98] sm:$0xf] }
   0xa   :  { %125 = vst [vmem:[#allocation4 + $0x20] sm:$0xf] %v1150_v18  ;;  %v1152_v20 = vld [vmem:[%s1608_s1 + $0xa8] sm:$0xf]  ;;  %v1153_v21 = vld [vmem:[%s1608_s1 + $0xb8] sm:$0xf] }
   0xb   :  { %285 = vmatpush1.bf16.msra.mxu0 %v1409_v6  ;;  %432 = vrot.lane.b32.xlu0 %v1409_v6, %s1340_s23  ;;  %127 = vst [vmem:[#allocation4 + $0x24] sm:$0xf] %v1151_v19  ;;  %129 = vst [vmem:[#allocation4 + $0x28] sm:$0xf] %v1152_v20  ;;  %v1313_v22 = vld [vmem:[%s1607_s0 + $0x80] ss:$16 sps:$4 sm:$0xff]  }
   0xc   :  { %434 = vrot.lane.b32.xlu1 %v1400_v5, %s1340_s23  ;;  %286 = vmatprep.subr.bf16.mxu0 %v1417_v7  ;;  %131 = vst [vmem:[#allocation4 + $0x2c] sm:$0xf] %v1153_v21  ;;  %v1314_v23 = vld [vmem:[%s1607_s0 + $0xa4] ss:$16 sps:$4 sm:$0xff]   ;;  %v1316_v24 = vld [vmem:[%s1607_s0 + $0xa0] ss:$16 sps:$4 sm:$0xff]  }
   0xd   :  { %v1318_v25 = vld [vmem:[#allocation4] sm:$0xff]   ;;  %v1319_v27 = vld [vmem:[#allocation4 + $0x8] sm:$0xff]   ;;  %s1341_s0 = smov 126   ;;  %v1325_v31 = vld [vmem:[%s1609_s2 + $0x10] sm:$0xff]   ;;  %vm684_vm3 = vcmask 1048568   ;;  %vm1032_vm4 = vcmask 1048560  }
   0xe   :  { %v1317_v26 = vld [vmem:[%s1609_s2] sm:$0xff]   ;;  %v1320_v28 = vld [vmem:[#allocation4 + $0x10] sm:$0xff]   ;;  %v1322_v29 = vld [vmem:[%s1609_s2 + $0x8] sm:$0xff]  }
   0xf   :  { %287 = vmatpush1.bf16.msra.mxu0 %v1422_v8  ;;  %436 = vrot.lane.b32.xlu0 %v1422_v8, %s1340_s23  ;;  %v1327_v34 = vld [vmem:[#allocation4] sm:$0xff]   ;;  %v1326_v35 = vld [vmem:[%s1609_s2 + $0x18] sm:$0xff]   ;;  %v1328_v37 = vld [vmem:[#allocation4 + $0x8] sm:$0xff]  }
  0x10   :  { %438 = vrot.lane.b32.xlu1 %v1417_v7, %s1340_s23  ;;  %288 = vmatprep.subr.bf16.mxu0 %v1311_v17  ;;  %v1321_v30 = vld [vmem:[#allocation4 + $0x18] sm:$0xff]   ;;  %v1333_v36 = vld [vmem:[%s1609_s2 + $0x20] sm:$0xff]   ;;  %v1329_v38 = vld [vmem:[#allocation4 + $0x10] sm:$0xff]  }
  0x11   :  { %v1330_v39 = vld [vmem:[#allocation4 + $0x18] sm:$0xff]   ;;  %v1334_v42 = vld [vmem:[%s1609_s2 + $0x28] sm:$0xff]   ;;  %v1335_v63 = vld [vmem:[%s1609_s2 + $0x10] sm:$0xff]  }
  0x12   :  { %v1323_v32 = vld [vmem:[#allocation4 + $0x20] sm:$0xff]   ;;  %v1338_v19 = vld [vmem:[%s1609_s2 + $0x28] sm:$0xff]  }
  0x13   :  { %289 = vmatpush1.bf16.msra.mxu0 %v1313_v22  ;;  %440 = vrot.lane.b32.xlu0 %v1313_v22, %s1340_s23  ;;  %v1324_v33 = vld [vmem:[#allocation4 + $0x28] sm:$0xff]   ;;  %v1331_v40 = vld [vmem:[#allocation4 + $0x20] sm:$0xff]  }
  0x14   :  { %442 = vrot.lane.b32.xlu1 %v1311_v17, %s1340_s23  ;;  %290 = vmatprep.subr.bf16.mxu0 %v1314_v23  ;;  %v1332_v41 = vld [vmem:[#allocation4 + $0x28] sm:$0xff]   ;;  %v1337_v18 = vld [vmem:[%s1609_s2 + $0x20] sm:$0xff]  }
  0x17   :  { %291 = vmatpush1.bf16.msra.mxu0 %v1316_v24  ;;  %444 = vrot.lane.b32.xlu0 %v1316_v24, %s1340_s23 }
  0x18   :  { %446 = vrot.lane.b32.xlu1 %v1314_v23, %s1340_s23  ;;  %1262 = vmatprep.subr.bf16.mxu0 %v1318_v25 }
  0x1a   :  { %1168 = vmatmul.mubr.msk.bf16.vlgmr.msra.gmra.mrb[0].mxu0 %vm273_vm0, %v1317_v26 }
  0x1b   :  { %1263 = vmatpush3.bf16.msra.mxu0 %v1318_v25  ;;  %772 = vrot.lane.b32.xlu0 %v1375_v1, %s1341_s0 }
  0x1c   :  { %774 = vrot.lane.b32.xlu1 %v1370_v0, %s1341_s0  ;;  %1264 = vmatprep.subr.bf16.mxu0 %v1319_v27 }
  0x1d   :  { %322 = vmatprep.mubr.bf16.mxu0 %v1339_v2 }
  0x1f   :  { %1265 = vmatpush3.bf16.msra.mxu0 %v1319_v27  ;;  %776 = vrot.lane.b32.xlu0 %v1383_v3, %s1341_s0 }
  0x20   :  { %778 = vrot.lane.b32.xlu1 %v1388_v4, %s1341_s0  ;;  %1266 = vmatprep.subr.bf16.mxu0 %v1320_v28 }
  0x22   :  { %1169 = vmatmul.mubr.msk.bf16.gmra.mrb[4].mxu0 %vm273_vm0, %v1322_v29 }
  0x23   :  { %1267 = vmatpush3.bf16.msra.mxu0 %v1320_v28  ;;  %780 = vrot.lane.b32.xlu0 %v1409_v6, %s1341_s0 }
  0x24   :  { %782 = vrot.lane.b32.xlu1 %v1400_v5, %s1341_s0  ;;  %1268 = vmatprep.subr.bf16.mxu0 %v1321_v30 }
  0x25   :  { %1274 = vmatprep.mubr.msk.bf16.mxu0 %vm273_vm0, %v1325_v31  ;;  %v1045_v31 = vld [vmem:[%s1610_s3] sm:$0xff] }
  0x27   :  { %1269 = vmatpush3.bf16.msra.mxu0 %v1321_v30  ;;  %784 = vrot.lane.b32.xlu0 %v1422_v8, %s1341_s0 }
  0x28   :  { %786 = vrot.lane.b32.xlu1 %v1417_v7, %s1341_s0  ;;  %1270 = vmatprep.subr.bf16.mxu0 %v1323_v32  ;;  %v1336_v7 = vld [vmem:[%s1609_s2 + $0x18] sm:$0xff]  }
  0x2b   :  { %1271 = vmatpush3.bf16.msra.mxu0 %v1323_v32  ;;  %788 = vrot.lane.b32.xlu0 %v1313_v22, %s1341_s0  ;;  %v1046_v32 = vld [vmem:[%s1610_s3 + $0x8] sm:$0xff] }
  0x2c   :  { %790 = vrot.lane.b32.xlu1 %v1311_v17, %s1341_s0  ;;  %1272 = vmatprep.subr.bf16.mxu0 %v1324_v33 }
  0x2f   :  { %1273 = vmatpush3.bf16.msra.mxu0 %v1324_v33  ;;  %792 = vrot.lane.b32.xlu0 %v1316_v24, %s1341_s0 }
  0x30   :  { %794 = vrot.lane.b32.xlu1 %v1314_v23, %s1341_s0  ;;  %1278 = vmatprep.subr.bf16.mxu0 %v1327_v34 }
  0x32   :  { %1275 = vmatmul.mubr.msk.bf16.vlgmr.msra.gmra.mrb[8].mxu0 %vm273_vm0, %v1326_v35 }
  0x33   :  { %1279 = vmatpush3.bf16.msra.mxu0 %v1327_v34  ;;  %1290 = vmatprep.mubr.msk.bf16.mxu0 %vm273_vm0, %v1333_v36 }
  0x34   :  { %1280 = vmatprep.subr.bf16.mxu0 %v1328_v37 }
  0x37   :  { %1281 = vmatpush3.bf16.msra.mxu0 %v1328_v37  ;;  %v1048_v37 = vld [vmem:[%s1610_s3 + $0x18] sm:$0xff] }
  0x38   :  { %1282 = vmatprep.subr.bf16.mxu0 %v1329_v38 }
  0x3b   :  { %1283 = vmatpush3.bf16.msra.mxu0 %v1329_v38  ;;  %v1047_v38 = vld [vmem:[%s1610_s3 + $0x10] sm:$0xff] }
  0x3c   :  { %1284 = vmatprep.subr.bf16.mxu0 %v1330_v39 }
  0x3f   :  { %1285 = vmatpush3.bf16.msra.mxu0 %v1330_v39 }
  0x40   :  { %1286 = vmatprep.subr.bf16.mxu0 %v1331_v40 }
  0x43   :  { %1287 = vmatpush3.bf16.msra.mxu0 %v1331_v40 }
  0x44   :  { %1288 = vmatprep.subr.bf16.mxu0 %v1332_v41 }
  0x47   :  { %1289 = vmatpush3.bf16.msra.mxu0 %v1332_v41 }
  0x4a   :  { %1291 = vmatmul.mubr.msk.bf16.vlgmr.msra.gmra.mrb[12].mxu0 %vm273_vm0, %v1334_v42 }
  0x75   :  { %v425_v43 = vpop.permute.xlu0 %424 }
  0x76   :  { %v429_v44 = vpop.permute.xlu1 %428 }
  0x79   :  { %v427_v45 = vpop.permute.xlu0 %426 }
  0x7a   :  { %473 = vmatprep.subr.bf16.mxu1 %v427_v45  ;;  %v449_v46 = vsel %vm448_vm1, %v425_v43, %v427_v45  ;;  %v431_v47 = vpop.permute.xlu1 %430 }
  0x7b   :  { %474 = vmatpush1.bf16.msra.mxu1 %v449_v46  ;;  %v450_v48 = vsel %vm448_vm1, %v429_v44, %v431_v47 }
  0x7c   :  { %475 = vmatprep.subr.bf16.mxu1 %v431_v47 }
  0x7d   :  { %v433_v49 = vpop.permute.xlu0 %432 }
  0x7e   :  { %v435_v50 = vpop.permute.xlu1 %434 }
  0x7f   :  { %476 = vmatpush1.bf16.msra.mxu1 %v450_v48  ;;  %v451_v51 = vsel %vm448_vm1, %v433_v49, %v435_v50 }
  0x80   :  { %477 = vmatprep.subr.bf16.mxu1 %v435_v50 }
  0x81   :  { %v437_v52 = vpop.permute.xlu0 %436 }
  0x82   :  { %v439_v53 = vpop.permute.xlu1 %438 }
  0x83   :  { %478 = vmatpush1.bf16.msra.mxu1 %v451_v51  ;;  %v452_v54 = vsel %vm448_vm1, %v437_v52, %v439_v53 }
  0x84   :  { %479 = vmatprep.subr.bf16.mxu1 %v439_v53 }
  0x85   :  { %v441_v55 = vpop.permute.xlu0 %440 }
  0x86   :  { %v443_v56 = vpop.permute.xlu1 %442 }
  0x87   :  { %480 = vmatpush1.bf16.msra.mxu1 %v452_v54  ;;  %v453_v57 = vsel %vm448_vm1, %v441_v55, %v443_v56 }
  0x88   :  { %481 = vmatprep.subr.bf16.mxu1 %v443_v56 }
  0x89   :  { %v445_v58 = vpop.permute.xlu0 %444 }
  0x8a   :  { %v447_v59 = vpop.permute.xlu1 %446 }
  0x8b   :  { %482 = vmatpush1.bf16.msra.mxu1 %v453_v57  ;;  %v454_v60 = vsel %vm448_vm1, %v445_v58, %v447_v59 }
  0x8c   :  { %483 = vmatprep.subr.bf16.mxu1 %v447_v59 }
  0x8d   :  { %v773_v61 = vpop.permute.xlu0 %772 }
  0x8e   :  { %v775_v62 = vpop.permute.xlu1 %774 }
  0x8f   :  { %484 = vmatpush1.bf16.msra.mxu1 %v454_v60  ;;  %v797_v0 = vsel %vm796_vm2, %v773_v61, %v775_v62 }
  0x90   :  { %821 = vmatprep.subr.bf16.mxu1 %v775_v62 }
  0x91   :  { %v777_v1 = vpop.permute.xlu0 %776 }
  0x92   :  { %1188 = vmatmul.mubr.msk.bf16.vlgmr.msra.gmra.mrb[0].mxu1 %vm273_vm0, %v1335_v63  ;;  %v779_v3 = vpop.permute.xlu1 %778 }
  0x93   :  { %822 = vmatpush1.bf16.msra.mxu1 %v797_v0  ;;  %515 = vmatprep.mubr.bf16.mxu1 %v1339_v2  ;;  %v798_v4 = vsel %vm796_vm2, %v777_v1, %v779_v3 }
  0x94   :  { %823 = vmatprep.subr.bf16.mxu1 %v779_v3 }
  0x95   :  { %v781_v5 = vpop.permute.xlu0 %780 }
  0x96   :  { %v783_v6 = vpop.permute.xlu1 %782 }
  0x97   :  { %824 = vmatpush1.bf16.msra.mxu1 %v798_v4  ;;  %v799_v8 = vsel %vm796_vm2, %v781_v5, %v783_v6 }
  0x98   :  { %825 = vmatprep.subr.bf16.mxu1 %v783_v6 }
  0x99   :  { %v785_v9 = vpop.permute.xlu0 %784 }
  0x9a   :  { %1189 = vmatmul.mubr.msk.bf16.gmra.mrb[4].mxu1 %vm273_vm0, %v1336_v7  ;;  %v787_v10 = vpop.permute.xlu1 %786 }
  0x9b   :  { %826 = vmatpush1.bf16.msra.mxu1 %v799_v8  ;;  %853 = vmatprep.mubr.bf16.mxu1 %v1339_v2  ;;  %v800_v11 = vsel %vm796_vm2, %v785_v9, %v787_v10 }
  0x9c   :  { %827 = vmatprep.subr.bf16.mxu1 %v787_v10 }
  0x9d   :  { %v789_v12 = vpop.permute.xlu0 %788 }
  0x9e   :  { %v791_v13 = vpop.permute.xlu1 %790 }
  0x9f   :  { %828 = vmatpush1.bf16.msra.mxu1 %v800_v11  ;;  %v801_v14 = vsel %vm796_vm2, %v789_v12, %v791_v13 }
  0xa0   :  { %829 = vmatprep.subr.bf16.mxu1 %v791_v13 }
  0xa1   :  { %v793_v15 = vpop.permute.xlu0 %792 }
  0xa2   :  { %v795_v16 = vpop.permute.xlu1 %794 }
  0xa3   :  { %830 = vmatpush1.bf16.msra.mxu1 %v801_v14  ;;  %v802_v17 = vsel %vm796_vm2, %v793_v15, %v795_v16 }
  0xa4   :  { %831 = vmatprep.subr.bf16.mxu1 %v795_v16 }
  0xa7   :  { %832 = vmatpush1.bf16.msra.mxu1 %v802_v17 }
  0xaa   :  { %1222 = vmatmul.mubr.msk.bf16.vlgmr.msra.gmra.mrb[8].mxu1 %vm273_vm0, %v1337_v18 }
  0xab   :  { %863 = vmatprep.mubr.bf16.mxu1 %v1339_v2 }
  0xb2   :  { %1223 = vmatmul.mubr.msk.bf16.gmra.mrb[12].mxu1 %vm273_vm0, %v1338_v19 }
  0xed   :  { %v314_v20 = vpop.f32.mrb[0].mxu0 }
  0xee   :  { %v316_v21 = vpop.f32.mrb[1].mxu0 }
  0xef   :  { %334 = vst [vmem:[#allocation2 + $0x8] sm:$0xff] %v316_v21  ;;  %v318_v22 = vpop.f32.mrb[2].mxu0 }
  0xf0   :  { %v320_v23 = vpop.f32.mrb[3].mxu0 }
  0xf1   :  { %336 = vst [vmem:[#allocation2 + $0x18] sm:$0xff] %v320_v23 }
  0xf5   :  { %v324_v24 = vpop.f32.mrb[4].mxu0 }
  0xf6   :  { %v326_v25 = vpop.f32.mrb[5].mxu0 }
  0xf7   :  { %338 = vst [vmem:[#allocation2 + $0x28] sm:$0xff] %v326_v25  ;;  %v328_v26 = vpop.f32.mrb[6].mxu0 }
  0xf8   :  { %v330_v27 = vpop.f32.mrb[7].mxu0 }
  0xf9   :  { %340 = vst [vmem:[#allocation2 + $0x38] sm:$0xff] %v330_v27 }
 0x105   :  { %v1276_v28 = vpop.f32.mrb[8].mxu0 }
 0x106   :  { %v645_v2 = vpop.f32.mrb[9].mxu0 }
 0x107   :  { %668 = vrot.lane.b32.xlu0 %v645_v2, %s1340_s23  ;;  %v1277_v29 = vpop.f32.mrb[10].mxu0 }
 0x108   :  { %v648_v30 = vpop.f32.mrb[11].mxu0 }
 0x109   :  { %670 = vrot.lane.b32.xlu1 %v648_v30, %s1340_s23 }
 0x10b   :  { %672 = vrot.lane.b32.xlu0 %v1276_v28, %s1340_s23 }
 0x10d   :  { %674 = vrot.lane.b32.xlu1 %v1277_v29, %s1340_s23 }
 0x10f   :  { %1051 = vperm.xlu0 %1297, %v1045_v31  }
 0x111   :  { %1056 = vperm.xlu1 %1298, %v1046_v32  }
 0x11d   :  { %v1292_v33 = vpop.f32.mrb[12].mxu0 }
 0x11e   :  { %1020 = vrot.lane.b32.xlu0 %v1292_v33, %s1341_s0  ;;  %v993_v34 = vpop.f32.mrb[13].mxu0 }
 0x11f   :  { %v1293_v35 = vpop.f32.mrb[14].mxu0 }
 0x120   :  { %1022 = vrot.lane.b32.xlu1 %v1293_v35, %s1341_s0  ;;  %v996_v36 = vpop.f32.mrb[15].mxu0 }
 0x122   :  { %1016 = vrot.lane.b32.xlu0 %v993_v34, %s1341_s0 }
 0x124   :  { %1018 = vrot.lane.b32.xlu1 %v996_v36, %s1341_s0 }
 0x126   :  { %1066 = vperm.xlu0 %1297, %v1048_v37  }
 0x128   :  { %1061 = vperm.xlu1 %1298, %v1047_v38  }
 0x165   :  { %v507_v39 = vpop.f32.mrb[0].mxu1 }
 0x166   :  { %v526_v40 = vadd.f32 %v507_v39, %v314_v20  ;;  %v509_v41 = vpop.f32.mrb[1].mxu1 }
 0x167   :  { %v527_v42 = vadd.f32 %v509_v41, %v316_v21  ;;  %v511_v43 = vpop.f32.mrb[2].mxu1 }
 0x168   :  { %v528_v44 = vadd.f32 %v511_v43, %v318_v22  ;;  %v513_v45 = vpop.f32.mrb[3].mxu1 }
 0x169   :  { %536 = vst.msk [vmem:[#allocation2 + $0x8] sm:$0xff] %vm448_vm1, %v527_v42  ;;  %v529_v46 = vadd.f32 %v513_v45, %v320_v23 }
 0x16b   :  { %538 = vst.msk [vmem:[#allocation2 + $0x18] sm:$0xff] %vm448_vm1, %v529_v46 }
 0x16d   :  { %v517_v47 = vpop.f32.mrb[4].mxu1 }
 0x16e   :  { %v530_v48 = vadd.f32 %v517_v47, %v324_v24  ;;  %v519_v49 = vpop.f32.mrb[5].mxu1 }
 0x16f   :  { %v531_v50 = vadd.f32 %v519_v49, %v326_v25  ;;  %v521_v51 = vpop.f32.mrb[6].mxu1 }
 0x170   :  { %v532_v52 = vadd.f32 %v521_v51, %v328_v26  ;;  %v523_v53 = vpop.f32.mrb[7].mxu1  ;;  %v660_v55 = vld [vmem:[#allocation2 + $0x8] sm:$0xff] }
 0x171   :  { %540 = vst.msk [vmem:[#allocation2 + $0x28] sm:$0xff] %vm448_vm1, %v531_v50  ;;  %v533_v54 = vadd.f32 %v523_v53, %v330_v27 }
 0x172   :  { %v661_v58 = vld [vmem:[#allocation2 + $0x18] sm:$0xff] }
 0x173   :  { %542 = vst.msk [vmem:[#allocation2 + $0x38] sm:$0xff] %vm448_vm1, %v533_v54 }
 0x178   :  { %v662_v62 = vld [vmem:[#allocation2 + $0x28] sm:$0xff] }
 0x179   :  { %v669_v56 = vpop.permute.xlu0 %668 }
 0x17a   :  { %v680_v57 = vadd.f32 %v669_v56, %v660_v55  ;;  %v663_v6 = vld [vmem:[#allocation2 + $0x38] sm:$0xff] }
 0x17b   :  { %v671_v59 = vpop.permute.xlu1 %670 }
 0x17c   :  { %685 = vst.msk [vmem:[#allocation2 + $0x8] sm:$0xff] %vm684_vm3, %v680_v57  ;;  %v681_v60 = vadd.f32 %v671_v59, %v661_v58 }
 0x17d   :  { %v855_v61 = vpop.f32.mrb[8].mxu1  ;;  %v673_v63 = vpop.permute.xlu0 %672 }
 0x17e   :  { %686 = vst.msk [vmem:[#allocation2 + $0x18] sm:$0xff] %vm684_vm3, %v681_v60  ;;  %v874_v0 = vadd.f32 %v855_v61, %v526_v40  ;;  %v857_v1 = vpop.f32.mrb[9].mxu1  ;;  %v682_v3 = vadd.f32 %v673_v63, %v662_v62 }
 0x17f   :  { %v859_v4 = vpop.f32.mrb[10].mxu1  ;;  %v675_v5 = vpop.permute.xlu1 %674 }
 0x180   :  { %687 = vst.msk [vmem:[#allocation2 + $0x28] sm:$0xff] %vm684_vm3, %v682_v3  ;;  %v876_v7 = vadd.f32 %v859_v4, %v528_v44  ;;  %v683_v8 = vadd.f32 %v675_v5, %v663_v6  ;;  %v861_v9 = vpop.f32.mrb[11].mxu1 }
 0x182   :  { %688 = vst.msk [vmem:[#allocation2 + $0x38] sm:$0xff] %vm684_vm3, %v683_v8 }
 0x183   :  { %v690_v10 = vld [vmem:[#allocation2 + $0x8] sm:$0xff] }
 0x184   :  { %v875_v11 = vadd.f32 %v857_v1, %v690_v10 }
 0x185   :  { %v692_v12 = vld [vmem:[#allocation2 + $0x18] sm:$0xff]  ;;  %v865_v13 = vpop.f32.mrb[12].mxu1 }
 0x186   :  { %884 = vst.msk [vmem:[#allocation2 + $0x8] sm:$0xff] %vm796_vm2, %v875_v11  ;;  %v877_v14 = vadd.f32 %v861_v9, %v692_v12  ;;  %v878_v15 = vadd.f32 %v865_v13, %v530_v48  ;;  %v867_v16 = vpop.f32.mrb[13].mxu1 }
 0x187   :  { %v694_v17 = vld [vmem:[#allocation2 + $0x28] sm:$0xff]  ;;  %v869_v18 = vpop.f32.mrb[14].mxu1 }
 0x188   :  { %886 = vst.msk [vmem:[#allocation2 + $0x18] sm:$0xff] %vm796_vm2, %v877_v14  ;;  %v879_v19 = vadd.f32 %v867_v16, %v694_v17  ;;  %v880_v20 = vadd.f32 %v869_v18, %v532_v52  ;;  %v871_v21 = vpop.f32.mrb[15].mxu1 }
 0x189   :  { %v696_v22 = vld [vmem:[#allocation2 + $0x38] sm:$0xff] }
 0x18a   :  { %888 = vst.msk [vmem:[#allocation2 + $0x28] sm:$0xff] %vm796_vm2, %v879_v19  ;;  %v881_v23 = vadd.f32 %v871_v21, %v696_v22 }
 0x18c   :  { %890 = vst.msk [vmem:[#allocation2 + $0x38] sm:$0xff] %vm796_vm2, %v881_v23 }
 0x18d   :  { %v1008_v31 = vld [vmem:[#allocation2 + $0x8] sm:$0xff] }
 0x18e   :  { %v1052_v24 = vpop.permute.xlu0 %1051 }
 0x18f   :  { %v1009_v34 = vld [vmem:[#allocation2 + $0x18] sm:$0xff]  ;;  %v1069_v37 = vadd.f32 %v1052_v24, %v874_v0 }
 0x190   :  { %v1057_v25 = vpop.permute.xlu1 %1056 }
 0x191   :  { %v1010_v26 = vld [vmem:[#allocation2 + $0x28] sm:$0xff]  ;;  %v1071_v38 = vadd.f32 %v1057_v25, %v876_v7  ;;  %v1085_v40 = vmul.f32 0.3, %v1069_v37  ;;  %vm1077_vm5 = vcmp.ge.f32.partialorder %v1069_v37, 0.0 }
 0x192   :  { %v1021_v27 = vpop.permute.xlu0 %1020 }
 0x193   :  { %v1030_v28 = vadd.f32 %v1021_v27, %v1010_v26  ;;  %v1011_v2 = vld [vmem:[#allocation2 + $0x38] sm:$0xff]  ;;  %v1087_v43 = vmul.f32 0.3, %v1071_v38  ;;  %vm1079_vm7 = vcmp.ge.f32.partialorder %v1071_v38, 0.0  ;;  %v1093_v46 = vsel %vm1077_vm5, %v1069_v37, %v1085_v40 }
 0x194   :  { %v1023_v29 = vpop.permute.xlu1 %1022 }
 0x195   :  { %1035 = vst.msk [vmem:[#allocation2 + $0x28] sm:$0xff] %vm1032_vm4, %v1030_v28  ;;  %v1031_v30 = vadd.f32 %v1023_v29, %v1011_v2  ;;  %v1095_v54 = vsel %vm1079_vm7, %v1071_v38, %v1087_v43 }
 0x196   :  { %v1017_v32 = vpop.permute.xlu0 %1016 }
 0x197   :  { %1036 = vst.msk [vmem:[#allocation2 + $0x38] sm:$0xff] %vm1032_vm4, %v1031_v30  ;;  %v1028_v33 = vadd.f32 %v1017_v32, %v1008_v31 }
 0x198   :  { %v1019_v35 = vpop.permute.xlu1 %1018 }
 0x199   :  { %1033 = vst.msk [vmem:[#allocation2 + $0x8] sm:$0xff] %vm1032_vm4, %v1028_v33  ;;  %v1029_v36 = vadd.f32 %v1019_v35, %v1009_v34 }
 0x19b   :  { %1034 = vst.msk [vmem:[#allocation2 + $0x18] sm:$0xff] %vm1032_vm4, %v1029_v36 }
 0x19c   :  { %v1042_v59 = vld [vmem:[#allocation2 + $0x28] sm:$0xff] }
 0x19e   :  { %v1044_v50 = vld [vmem:[#allocation2 + $0x38] sm:$0xff] }
 0x1a0   :  { %v1038_v39 = vld [vmem:[#allocation2 + $0x8] sm:$0xff] }
 0x1a1   :  { %v1070_v41 = vadd.f32 %v1052_v24, %v1038_v39 }
 0x1a2   :  { %v1040_v42 = vld [vmem:[#allocation2 + $0x18] sm:$0xff] }
 0x1a3   :  { %vm1078_vm6 = vcmp.ge.f32.partialorder %v1070_v41, 0.0  ;;  %v1086_v44 = vmul.f32 0.3, %v1070_v41  ;;  %v1072_v45 = vadd.f32 %v1057_v25, %v1040_v42 }
 0x1a5   :  { %v1094_v47 = vsel %vm1078_vm6, %v1070_v41, %v1086_v44  ;;  %vm1080_vm8 = vcmp.ge.f32.partialorder %v1072_v45, 0.0  ;;  %v1088_v48 = vmul.f32 0.3, %v1072_v45  ;;  %v1067_v49 = vpop.permute.xlu0 %1066 }
 0x1a6   :  { %v1242_v51 = vpack.c.bf16 %v1094_v47, %v1093_v46  ;;  %v1075_v52 = vadd.f32 %v1067_v49, %v880_v20  ;;  %v1076_v53 = vadd.f32 %v1067_v49, %v1044_v50 }
 0x1a7   :  { %v1096_v55 = vsel %vm1080_vm8, %v1072_v45, %v1088_v48  ;;  %v1062_v56 = vpop.permute.xlu1 %1061 }
 0x1a8   :  { %1125 = vst [vmem:[%s1611_s4] sm:$0xff] %v1242_v51  ;;  %v1243_v57 = vpack.c.bf16 %v1096_v55, %v1095_v54  ;;  %vm1083_vm9 = vcmp.ge.f32.partialorder %v1075_v52, 0.0  ;;  %vm1084_vm10 = vcmp.ge.f32.partialorder %v1076_v53, 0.0  ;;  %v1091_v58 = vmul.f32 0.3, %v1075_v52 }
 0x1a9   :  { %v1092_v60 = vmul.f32 0.3, %v1076_v53  ;;  %v1073_v61 = vadd.f32 %v1062_v56, %v878_v15  ;;  %v1074_v62 = vadd.f32 %v1062_v56, %v1042_v59 }
 0x1aa   :  { %1126 = vst [vmem:[%s1611_s4 + $0x8] sm:$0xff] %v1243_v57  ;;  %v1099_v63 = vsel %vm1083_vm9, %v1075_v52, %v1091_v58 }
 0x1ab   :  { %v1100_v0 = vsel %vm1084_vm10, %v1076_v53, %v1092_v60  ;;  %vm1081_vm11 = vcmp.ge.f32.partialorder %v1073_v61, 0.0  ;;  %vm1082_vm12 = vcmp.ge.f32.partialorder %v1074_v62, 0.0  ;;  %v1089_v1 = vmul.f32 0.3, %v1073_v61 }
 0x1ac   :  { %v1245_v3 = vpack.c.bf16 %v1100_v0, %v1099_v63  ;;  %v1090_v4 = vmul.f32 0.3, %v1074_v62 }
 0x1ad   :  { %v1097_v5 = vsel %vm1081_vm11, %v1073_v61, %v1089_v1 }
 0x1ae   :  { %1128 = vst [vmem:[%s1611_s4 + $0x18] sm:$0xff] %v1245_v3  ;;  %v1098_v6 = vsel %vm1082_vm12, %v1074_v62, %v1090_v4 }
 0x1af   :  { %v1244_v7 = vpack.c.bf16 %v1098_v6, %v1097_v5 }
 0x1b1   :  { %1127 = vst [vmem:[%s1611_s4 + $0x10] sm:$0xff] %v1244_v7 }

// kernel: wav_encoder_forward.6
= control target key start
LH: loop header
LB: loop body
LE: loop exit
PB: predicated region body
PF: predicated region fallthrough
CT: control target
= control target key end

     0   :  { %v2077_v2 = vmov 0   ;;  %s2078_s9 = smov 127   ;;  %vm428_vm0 = vcmask 523264   ;;  %vm772_vm1 = vcmask 1039360   ;;  %vm1046_vm2 = vcmask 1048568   ;;  %s2661_s0 = inlined_call_operand.vmem [shape: bf16[192,256], index: 0, kind: input, shape index: {}, may-alias: {0,1}]   ;;  %s2662_s1 = inlined_call_operand.vmem [shape: bf16[192,256], index: 1, kind: input, shape index: {}, may-alias: {0,1}]   ;;  %s2663_s2 = inlined_call_operand.vmem [shape: bf16[3,64,192], index: 2, kind: input, shape index: {}]   ;;  %s2664_s3 = inlined_call_operand.vmem [shape: f32[64,1], index: 3, kind: input, shape index: {}]   ;;  %s2665_s4 = inlined_call_operand.vmem [shape: bf16[64,128], index: 4, kind: output, shape index: {}]  }
   0x1   :  { %v26_v0 = vld [vmem:[%s2661_s0] sm:$0xf]  ;;  %v28_v1 = vld [vmem:[%s2661_s0 + $0x8] sm:$0xf]  ;;  %441 = vmatprep.subr.bf16.mxu0 %v2077_v2  ;;  %v30_v3 = vld [vmem:[%s2661_s0 + $0x10] sm:$0xf]  ;;  %699 = vmatprep.subr.bf16.mxu1 %v2077_v2 }
   0x2   :  { %27 = vst [vmem:[#allocation3] sm:$0xf] %v26_v0  ;;  %29 = vst [vmem:[#allocation3 + $0x4] sm:$0xf] %v28_v1  ;;  %v32_v4 = vld [vmem:[%s2661_s0 + $0x18] sm:$0xf]  ;;  %1979 = vset.pattern.permute.xlu0 %v2077_v2  ;;  %1980 = vset.pattern.permute.xlu1 %v2077_v2 }
   0x3   :  { %v34_v5 = vld [vmem:[%s2661_s0 + $0x20] sm:$0xf]  ;;  %31 = vst [vmem:[#allocation3 + $0x8] sm:$0xf] %v30_v3  ;;  %33 = vst [vmem:[#allocation3 + $0xc] sm:$0xf] %v32_v4 }
   0x4   :  { %35 = vst [vmem:[#allocation3 + $0x10] sm:$0xf] %v34_v5  ;;  %v36_v6 = vld [vmem:[%s2661_s0 + $0x28] sm:$0xf]  ;;  %v38_v7 = vld [vmem:[%s2661_s0 + $0x30] sm:$0xf] }
   0x5   :  { %v40_v8 = vld [vmem:[%s2661_s0 + $0x38] sm:$0xf]  ;;  %37 = vst [vmem:[#allocation3 + $0x14] sm:$0xf] %v36_v6  ;;  %39 = vst [vmem:[#allocation3 + $0x18] sm:$0xf] %v38_v7 }
   0x6   :  { %41 = vst [vmem:[#allocation3 + $0x1c] sm:$0xf] %v40_v8  ;;  %v42_v9 = vld [vmem:[%s2661_s0 + $0x40] sm:$0xf]  ;;  %v44_v10 = vld [vmem:[%s2661_s0 + $0x48] sm:$0xf] }
   0x7   :  { %v46_v11 = vld [vmem:[%s2661_s0 + $0x50] sm:$0xf]  ;;  %43 = vst [vmem:[#allocation3 + $0x20] sm:$0xf] %v42_v9  ;;  %45 = vst [vmem:[#allocation3 + $0x24] sm:$0xf] %v44_v10 }
   0x8   :  { %47 = vst [vmem:[#allocation3 + $0x28] sm:$0xf] %v46_v11  ;;  %v48_v12 = vld [vmem:[%s2661_s0 + $0x58] sm:$0xf]  ;;  %v50_v13 = vld [vmem:[%s2661_s0 + $0x60] sm:$0xf] }
   0x9   :  { %v52_v14 = vld [vmem:[%s2661_s0 + $0x68] sm:$0xf]  ;;  %49 = vst [vmem:[#allocation3 + $0x2c] sm:$0xf] %v48_v12  ;;  %51 = vst [vmem:[#allocation3 + $0x30] sm:$0xf] %v50_v13 }
   0xa   :  { %53 = vst [vmem:[#allocation3 + $0x34] sm:$0xf] %v52_v14  ;;  %v54_v15 = vld [vmem:[%s2661_s0 + $0x70] sm:$0xf]  ;;  %v56_v16 = vld [vmem:[%s2661_s0 + $0x78] sm:$0xf] }
   0xb   :  { %v58_v17 = vld [vmem:[%s2661_s0 + $0x80] sm:$0xf]  ;;  %55 = vst [vmem:[#allocation3 + $0x38] sm:$0xf] %v54_v15  ;;  %57 = vst [vmem:[#allocation3 + $0x3c] sm:$0xf] %v56_v16 }
   0xc   :  { %59 = vst [vmem:[#allocation3 + $0x40] sm:$0xf] %v58_v17  ;;  %v60_v18 = vld [vmem:[%s2661_s0 + $0x88] sm:$0xf]  ;;  %v62_v19 = vld [vmem:[%s2661_s0 + $0x90] sm:$0xf] }
   0xd   :  { %v64_v20 = vld [vmem:[%s2661_s0 + $0x98] sm:$0xf]  ;;  %61 = vst [vmem:[#allocation3 + $0x44] sm:$0xf] %v60_v18  ;;  %63 = vst [vmem:[#allocation3 + $0x48] sm:$0xf] %v62_v19 }
   0xe   :  { %65 = vst [vmem:[#allocation3 + $0x4c] sm:$0xf] %v64_v20  ;;  %v66_v21 = vld [vmem:[%s2661_s0 + $0xa0] sm:$0xf]  ;;  %v68_v22 = vld [vmem:[%s2661_s0 + $0xa8] sm:$0xf] }
   0xf   :  { %v70_v23 = vld [vmem:[%s2661_s0 + $0xb0] sm:$0xf]  ;;  %v1981_v24 = vld [vmem:[#allocation3] sm:$0xff]   ;;  %67 = vst [vmem:[#allocation3 + $0x50] sm:$0xf] %v66_v21  ;;  %v1983_v26 = vld [vmem:[#allocation3 + $0x8] sm:$0xff]  }
  0x10   :  { %69 = vst [vmem:[#allocation3 + $0x54] sm:$0xf] %v68_v22  ;;  %71 = vst [vmem:[#allocation3 + $0x58] sm:$0xf] %v70_v23  ;;  %v1982_v25 = vld [vmem:[#allocation3] sm:$0xff]   ;;  %651 = vrot.lane.b32.xlu0 %v1981_v24, %s2078_s9  ;;  %v1984_v27 = vld [vmem:[#allocation3 + $0x8] sm:$0xff]  }
  0x11   :  { %442 = vmatpush1.bf16.msra.mxu0 %v1982_v25  ;;  %v1985_v28 = vld [vmem:[#allocation3 + $0x10] sm:$0xff]   ;;  %v1987_v29 = vld [vmem:[#allocation3 + $0x18] sm:$0xff]   ;;  %v1989_v31 = vld [vmem:[#allocation3 + $0x20] sm:$0xff]   ;;  %vm1313_vm3 = vcmask 1031168   ;;  %vm1587_vm4 = vcmask 1048560  }
  0x12   :  { %443 = vmatprep.subr.bf16.mxu0 %v2077_v2  ;;  %655 = vrot.lane.b32.xlu1 %v1985_v28, %s2078_s9  ;;  %v1986_v30 = vld [vmem:[#allocation3 + $0x10] sm:$0xff]   ;;  %v1991_v32 = vld [vmem:[#allocation3 + $0x28] sm:$0xff]   ;;  %v1988_v33 = vld [vmem:[#allocation3 + $0x18] sm:$0xff]  }
  0x13   :  { %v1993_v34 = vld [vmem:[#allocation3 + $0x30] sm:$0xff]   ;;  %v1995_v35 = vld [vmem:[#allocation3 + $0x38] sm:$0xff]   ;;  %v1990_v36 = vld [vmem:[#allocation3 + $0x20] sm:$0xff]  }
  0x14   :  { %653 = vrot.lane.b32.xlu0 %v1983_v26, %s2078_s9  ;;  %v1997_v37 = vld [vmem:[#allocation3 + $0x40] sm:$0xff]   ;;  %v1992_v39 = vld [vmem:[#allocation3 + $0x28] sm:$0xff]   ;;  %v72_v41 = vld [vmem:[%s2661_s0 + $0xb8] sm:$0xf]  ;;  %s2079_s0 = smov 126  }
  0x15   :  { %444 = vmatpush1.bf16.msra.mxu0 %v1984_v27  ;;  %v1999_v38 = vld [vmem:[#allocation3 + $0x48] sm:$0xff]   ;;  %v1994_v42 = vld [vmem:[#allocation3 + $0x30] sm:$0xff]   ;;  %73 = vst [vmem:[#allocation3 + $0x5c] sm:$0xf] %v72_v41  ;;  %v2008_v44 = vld [vmem:[#allocation3] sm:$0xff]  }
  0x16   :  { %445 = vmatprep.subr.bf16.mxu0 %v2077_v2  ;;  %657 = vrot.lane.b32.xlu1 %v1987_v29, %s2078_s9  ;;  %v2007_v43 = vld [vmem:[%s2663_s2 + $0x4] ss:$8 sps:$4 sm:$0xff]   ;;  %v1996_v47 = vld [vmem:[#allocation3 + $0x38] sm:$0xff]   ;;  %v1739_v48 = vld [vmem:[%s2662_s1 + $0x14] sm:$0xf] }
  0x17   :  { %v2001_v40 = vld [vmem:[#allocation3 + $0x50] sm:$0xff]   ;;  %v1737_v45 = vld [vmem:[%s2662_s1 + $0x4] sm:$0xf]  ;;  %v1738_v46 = vld [vmem:[%s2662_s1 + $0xc] sm:$0xf]  ;;  %1781 = vmatprep.mubr.msk.bf16.mxu0 %vm428_vm0, %v2007_v43 }
  0x18   :  { %659 = vrot.lane.b32.xlu0 %v1989_v31, %s2078_s9  ;;  %163 = vst [vmem:[#allocation4] sm:$0xf] %v1737_v45  ;;  %165 = vst [vmem:[#allocation4 + $0x4] sm:$0xf] %v1738_v46  ;;  %v1740_v49 = vld [vmem:[%s2662_s1 + $0x1c] sm:$0xf] }
  0x19   :  { %446 = vmatpush1.bf16.msra.mxu0 %v1986_v30  ;;  %167 = vst [vmem:[#allocation4 + $0x8] sm:$0xf] %v1739_v48  ;;  %169 = vst [vmem:[#allocation4 + $0xc] sm:$0xf] %v1740_v49  ;;  %v2012_v50 = vld [vmem:[#allocation3 + $0x10] sm:$0xff]   ;;  %v1998_v54 = vld [vmem:[#allocation3 + $0x40] sm:$0xff]  }
  0x1a   :  { %447 = vmatprep.subr.bf16.mxu0 %v2077_v2  ;;  %661 = vrot.lane.b32.xlu1 %v1991_v32, %s2078_s9  ;;  %v1741_v51 = vld [vmem:[%s2662_s1 + $0x24] sm:$0xf]  ;;  %v1742_v52 = vld [vmem:[%s2662_s1 + $0x2c] sm:$0xf]  ;;  %v1743_v56 = vld [vmem:[%s2662_s1 + $0x34] sm:$0xf] }
  0x1b   :  { %171 = vst [vmem:[#allocation4 + $0x10] sm:$0xf] %v1741_v51  ;;  %173 = vst [vmem:[#allocation4 + $0x14] sm:$0xf] %v1742_v52  ;;  %v2010_v55 = vld [vmem:[#allocation3 + $0x8] sm:$0xff]   ;;  %v2016_v59 = vld [vmem:[#allocation3 + $0x20] sm:$0xff]  }
  0x1c   :  { %663 = vrot.lane.b32.xlu0 %v1993_v34, %s2078_s9  ;;  %v2003_v53 = vld [vmem:[#allocation3 + $0x58] sm:$0xff]   ;;  %175 = vst [vmem:[#allocation4 + $0x18] sm:$0xf] %v1743_v56  ;;  %v2000_v58 = vld [vmem:[#allocation3 + $0x48] sm:$0xff]   ;;  %v1745_v60 = vld [vmem:[%s2662_s1 + $0x44] sm:$0xf] }
  0x1d   :  { %448 = vmatpush1.bf16.msra.mxu0 %v1988_v33  ;;  %v1744_v57 = vld [vmem:[%s2662_s1 + $0x3c] sm:$0xf]  ;;  %v1746_v61 = vld [vmem:[%s2662_s1 + $0x4c] sm:$0xf]  ;;  %179 = vst [vmem:[#allocation4 + $0x20] sm:$0xf] %v1745_v60 }
  0x1e   :  { %449 = vmatprep.subr.bf16.mxu0 %v2077_v2  ;;  %665 = vrot.lane.b32.xlu1 %v1995_v35, %s2078_s9  ;;  %177 = vst [vmem:[#allocation4 + $0x1c] sm:$0xf] %v1744_v57  ;;  %v2014_v62 = vld [vmem:[#allocation3 + $0x18] sm:$0xff]   ;;  %181 = vst [vmem:[#allocation4 + $0x24] sm:$0xf] %v1746_v61  ;;  %v2002_v1 = vld [vmem:[#allocation3 + $0x50] sm:$0xff]  }
  0x1f   :  { %v1747_v63 = vld [vmem:[%s2662_s1 + $0x54] sm:$0xf]  ;;  %v1748_v0 = vld [vmem:[%s2662_s1 + $0x5c] sm:$0xf]  ;;  %v2018_v3 = vld [vmem:[#allocation3 + $0x28] sm:$0xff]  }
  0x20   :  { %667 = vrot.lane.b32.xlu0 %v1997_v37, %s2078_s9  ;;  %183 = vst [vmem:[#allocation4 + $0x28] sm:$0xf] %v1747_v63  ;;  %185 = vst [vmem:[#allocation4 + $0x2c] sm:$0xf] %v1748_v0  ;;  %v2023_v4 = vld [vmem:[#allocation3 + $0x30] sm:$0xff]   ;;  %v2004_v5 = vld [vmem:[#allocation3 + $0x58] sm:$0xff]  }
  0x21   :  { %450 = vmatpush1.bf16.msra.mxu0 %v1990_v36  ;;  %v1749_v6 = vld [vmem:[%s2662_s1 + $0x64] sm:$0xf]  ;;  %v1750_v7 = vld [vmem:[%s2662_s1 + $0x6c] sm:$0xf]  ;;  %v2025_v8 = vld [vmem:[#allocation3 + $0x38] sm:$0xff]  }
  0x22   :  { %451 = vmatprep.subr.bf16.mxu0 %v2077_v2  ;;  %669 = vrot.lane.b32.xlu1 %v1999_v38, %s2078_s9  ;;  %187 = vst [vmem:[#allocation4 + $0x30] sm:$0xf] %v1749_v6  ;;  %189 = vst [vmem:[#allocation4 + $0x34] sm:$0xf] %v1750_v7  ;;  %v1751_v9 = vld [vmem:[%s2662_s1 + $0x74] sm:$0xf] }
  0x23   :  { %191 = vst [vmem:[#allocation4 + $0x38] sm:$0xf] %v1751_v9  ;;  %v1752_v10 = vld [vmem:[%s2662_s1 + $0x7c] sm:$0xf]  ;;  %v2005_v11 = vld [vmem:[%s2663_s2] ss:$8 sps:$4 sm:$0xff]  }
  0x24   :  { %671 = vrot.lane.b32.xlu0 %v2001_v40, %s2078_s9  ;;  %193 = vst [vmem:[#allocation4 + $0x3c] sm:$0xf] %v1752_v10  ;;  %v2009_v12 = vld [vmem:[#allocation4] sm:$0xff]   ;;  %v2020_v13 = vld [vmem:[%s2663_s2 + $0x14] ss:$8 sps:$4 sm:$0xff]   ;;  %v2032_v17 = vld [vmem:[#allocation3 + $0x48] sm:$0xff]  }
  0x25   :  { %452 = vmatpush1.bf16.msra.mxu0 %v1992_v39  ;;  %v2030_v14 = vld [vmem:[#allocation3 + $0x40] sm:$0xff]   ;;  %v1754_v16 = vld [vmem:[%s2662_s1 + $0x8c] sm:$0xf]  ;;  %v1755_v18 = vld [vmem:[%s2662_s1 + $0x94] sm:$0xf] }
  0x26   :  { %453 = vmatprep.subr.bf16.mxu0 %v2077_v2  ;;  %673 = vrot.lane.b32.xlu1 %v2003_v53, %s2078_s9  ;;  %v1753_v15 = vld [vmem:[%s2662_s1 + $0x84] sm:$0xf]  ;;  %197 = vst [vmem:[#allocation4 + $0x44] sm:$0xf] %v1754_v16  ;;  %v1756_v19 = vld [vmem:[%s2662_s1 + $0x9c] sm:$0xf] }
  0x27   :  { %195 = vst [vmem:[#allocation4 + $0x40] sm:$0xf] %v1753_v15  ;;  %v2011_v20 = vld [vmem:[#allocation4 + $0x8] sm:$0xff]   ;;  %199 = vst [vmem:[#allocation4 + $0x48] sm:$0xf] %v1755_v18  ;;  %v2013_v21 = vld [vmem:[#allocation4 + $0x10] sm:$0xff]  }
  0x28   :  { %1192 = vrot.lane.b32.xlu0 %v2008_v44, %s2079_s0  ;;  %201 = vst [vmem:[#allocation4 + $0x4c] sm:$0xf] %v1756_v19  ;;  %v2022_v22 = vld [vmem:[%s2663_s2 + $0x10] ss:$8 sps:$4 sm:$0xff]   ;;  %v2027_v23 = vld [vmem:[%s2663_s2 + $0x24] ss:$8 sps:$4 sm:$0xff]  }
  0x29   :  { %454 = vmatpush1.bf16.msra.mxu0 %v1994_v42  ;;  %v2037_v24 = vld [vmem:[#allocation3 + $0x50] sm:$0xff]   ;;  %v1757_v25 = vld [vmem:[%s2662_s1 + $0xa4] sm:$0xf]  ;;  %v1758_v26 = vld [vmem:[%s2662_s1 + $0xac] sm:$0xf] }
  0x2a   :  { %455 = vmatprep.subr.bf16.mxu0 %v2077_v2  ;;  %1194 = vrot.lane.b32.xlu1 %v2010_v55, %s2079_s0  ;;  %203 = vst [vmem:[#allocation4 + $0x50] sm:$0xf] %v1757_v25  ;;  %205 = vst [vmem:[#allocation4 + $0x54] sm:$0xf] %v1758_v26  ;;  %v2039_v27 = vld [vmem:[#allocation3 + $0x58] sm:$0xff]   ;;  %v2017_v32 = vld [vmem:[#allocation4 + $0x20] sm:$0xff]  }
  0x2b   :  { %v2015_v28 = vld [vmem:[#allocation4 + $0x18] sm:$0xff]   ;;  %v1759_v29 = vld [vmem:[%s2662_s1 + $0xb4] sm:$0xf]  ;;  %v2043_v31 = vld [vmem:[%s2663_s2 + $0x44] ss:$8 sps:$4 sm:$0xff]  }
  0x2c   :  { %1196 = vrot.lane.b32.xlu0 %v2012_v50, %s2079_s0  ;;  %v1760_v30 = vld [vmem:[%s2662_s1 + $0xbc] sm:$0xf]  ;;  %207 = vst [vmem:[#allocation4 + $0x58] sm:$0xf] %v1759_v29  ;;  %v2029_v33 = vld [vmem:[%s2663_s2 + $0x20] ss:$8 sps:$4 sm:$0xff]   ;;  %1813 = vmatprep.mubr.msk.bf16.mxu1 %vm428_vm0, %v2043_v31 }
  0x2d   :  { %456 = vmatpush1.bf16.msra.mxu0 %v1996_v47  ;;  %209 = vst [vmem:[#allocation4 + $0x5c] sm:$0xf] %v1760_v30  ;;  %v2034_v34 = vld [vmem:[%s2663_s2 + $0x34] ss:$8 sps:$4 sm:$0xff]   ;;  %v2019_v35 = vld [vmem:[#allocation4 + $0x28] sm:$0xff]   ;;  %v2338_v44 = vld [vmem:[#allocation4] sm:$0xff]  }
  0x2e   :  { %457 = vmatprep.subr.bf16.mxu0 %v2077_v2  ;;  %1198 = vrot.lane.b32.xlu1 %v2014_v62, %s2079_s0  ;;  %v2036_v36 = vld [vmem:[%s2663_s2 + $0x30] ss:$8 sps:$4 sm:$0xff]   ;;  %v2031_v39 = vld [vmem:[#allocation4 + $0x40] sm:$0xff]   ;;  %v2343_v45 = vld [vmem:[%s2663_s2 + $0x54] ss:$8 sps:$4 sm:$0xff]  }
  0x2f   :  { %v2024_v37 = vld [vmem:[#allocation4 + $0x30] sm:$0xff]   ;;  %v2026_v38 = vld [vmem:[#allocation4 + $0x38] sm:$0xff]   ;;  %v2033_v40 = vld [vmem:[#allocation4 + $0x48] sm:$0xff]  }
  0x30   :  { %1200 = vrot.lane.b32.xlu0 %v2016_v59, %s2079_s0  ;;  %v2336_v43 = vld [vmem:[%s2663_s2 + $0x40] ss:$8 sps:$4 sm:$0xff]   ;;  %v2356_v47 = vld [vmem:[%s2663_s2 + $0x50] ss:$8 sps:$4 sm:$0xff]   ;;  %v2364_v49 = vld [vmem:[%s2663_s2 + $0x64] ss:$8 sps:$4 sm:$0xff]  }
  0x31   :  { %458 = vmatpush1.bf16.msra.mxu0 %v1998_v54  ;;  %v2038_v41 = vld [vmem:[#allocation4 + $0x50] sm:$0xff]   ;;  %v2348_v46 = vld [vmem:[#allocation4 + $0x8] sm:$0xff]   ;;  %v2369_v50 = vld [vmem:[#allocation4 + $0x18] sm:$0xff]  }
  0x32   :  { %459 = vmatprep.subr.bf16.mxu0 %v2077_v2  ;;  %1202 = vrot.lane.b32.xlu1 %v2018_v3, %s2079_s0  ;;  %v2359_v48 = vld [vmem:[#allocation4 + $0x10] sm:$0xff]   ;;  %v2377_v51 = vld [vmem:[%s2663_s2 + $0x60] ss:$8 sps:$4 sm:$0xff]   ;;  %v2413_v61 = vld [vmem:[#allocation4 + $0x38] sm:$0xff]  }
  0x33   :  { %v2380_v52 = vld [vmem:[#allocation4 + $0x20] sm:$0xff]   ;;  %v2385_v53 = vld [vmem:[%s2663_s2 + $0x74] ss:$8 sps:$4 sm:$0xff]   ;;  %v2390_v54 = vld [vmem:[#allocation4 + $0x28] sm:$0xff]  }
  0x34   :  { %1204 = vrot.lane.b32.xlu0 %v2023_v4, %s2079_s0  ;;  %v2040_v42 = vld [vmem:[#allocation4 + $0x58] sm:$0xff]   ;;  %v2402_v57 = vld [vmem:[#allocation4 + $0x30] sm:$0xff]   ;;  %v2420_v63 = vld [vmem:[#allocation4 + $0x40] sm:$0xff]  }
  0x35   :  { %460 = vmatpush1.bf16.msra.mxu0 %v2000_v58  ;;  %v2399_v56 = vld [vmem:[%s2663_s2 + $0x70] ss:$8 sps:$4 sm:$0xff]   ;;  %v2407_v58 = vld [vmem:[%s2663_s2 + $0x84] ss:$8 sps:$4 sm:$0xff]   ;;  %v2448_v10 = vld [vmem:[%s2663_s2 + $0x80] ss:$8 sps:$4 sm:$0xff]  }
  0x36   :  { %461 = vmatprep.subr.bf16.mxu0 %v2077_v2  ;;  %1206 = vrot.lane.b32.xlu1 %v2025_v8, %s2079_s0  ;;  %v2430_v4 = vld [vmem:[#allocation4 + $0x50] sm:$0xff]   ;;  %v2435_v6 = vld [vmem:[#allocation4 + $0x58] sm:$0xff]   ;;  %v1604_v7 = vld [vmem:[%s2664_s3] sm:$0xff] }
  0x37   :  { %v1605_v8 = vld [vmem:[%s2664_s3 + $0x8] sm:$0xff]  ;;  %v2070_v16 = vld [vmem:[%s2663_s2 + $0x90] ss:$8 sps:$4 sm:$0xff]  }
  0x38   :  { %1208 = vrot.lane.b32.xlu0 %v2030_v14, %s2079_s0 }
  0x39   :  { %462 = vmatpush1.bf16.msra.mxu0 %v2002_v1  ;;  %v2425_v1 = vld [vmem:[#allocation4 + $0x48] sm:$0xff]  }
  0x3a   :  { %463 = vmatprep.subr.bf16.mxu0 %v2077_v2  ;;  %1210 = vrot.lane.b32.xlu1 %v2032_v17, %s2079_s0 }
  0x3c   :  { %1212 = vrot.lane.b32.xlu0 %v2037_v24, %s2079_s0 }
  0x3d   :  { %464 = vmatpush1.bf16.msra.mxu0 %v2004_v5 }
  0x3e   :  { %933 = vmatprep.subr.bf16.mxu0 %v2077_v2  ;;  %1214 = vrot.lane.b32.xlu1 %v2039_v27, %s2079_s0 }
  0x40   :  { %474 = vmatmul.mubr.bf16.vlgmr.msra.gmra.mrb[0].mxu0 %v2005_v11  ;;  %1614 = vperm.xlu0 %1979, %v1604_v7   ;;  %v1607_v11 = vld [vmem:[%s2664_s3 + $0x18] sm:$0xff] }
  0x41   :  { %934 = vmatpush1.bf16.msra.mxu0 %v2009_v12  ;;  %1782 = vmatprep.mubr.msk.bf16.mxu0 %vm428_vm0, %v2020_v13  ;;  %v2457_v12 = vld [vmem:[%s2663_s2 + $0x94] ss:$8 sps:$4 sm:$0xff]  }
  0x42   :  { %935 = vmatprep.subr.bf16.mxu0 %v2077_v2  ;;  %1619 = vperm.xlu1 %1980, %v1605_v8   ;;  %v1606_v13 = vld [vmem:[%s2664_s3 + $0x10] sm:$0xff] }
  0x44   :  { %1629 = vperm.xlu0 %1979, %v1607_v11  }
  0x45   :  { %936 = vmatpush1.bf16.msra.mxu0 %v2011_v20 }
  0x46   :  { %937 = vmatprep.subr.bf16.mxu0 %v2077_v2  ;;  %1624 = vperm.xlu1 %1980, %v1606_v13  }
  0x48   :  { %482 = vmatmul.mubr.bf16.gmra.mrb[4].mxu0 %v2022_v22 }
  0x49   :  { %938 = vmatpush1.bf16.msra.mxu0 %v2013_v21  ;;  %1783 = vmatprep.mubr.msk.bf16.mxu0 %vm428_vm0, %v2027_v23 }
  0x4a   :  { %939 = vmatprep.subr.bf16.mxu0 %v2077_v2 }
  0x4d   :  { %940 = vmatpush1.bf16.msra.mxu0 %v2015_v28 }
  0x4e   :  { %941 = vmatprep.subr.bf16.mxu0 %v2077_v2 }
  0x50   :  { %490 = vmatmul.mubr.bf16.gmra.mrb[8].mxu0 %v2029_v33  ;;  %v2074_v33 = vld [vmem:[%s2663_s2 + $0xb4] ss:$8 sps:$4 sm:$0xff]  }
  0x51   :  { %942 = vmatpush1.bf16.msra.mxu0 %v2017_v32  ;;  %1784 = vmatprep.mubr.msk.bf16.mxu0 %vm428_vm0, %v2034_v34  ;;  %v2073_v32 = vld [vmem:[%s2663_s2 + $0xa0] ss:$8 sps:$4 sm:$0xff]   ;;  %v2076_v34 = vld [vmem:[%s2663_s2 + $0xb0] ss:$8 sps:$4 sm:$0xff]  }
  0x52   :  { %943 = vmatprep.subr.bf16.mxu0 %v2077_v2 }
  0x55   :  { %944 = vmatpush1.bf16.msra.mxu0 %v2019_v35 }
  0x56   :  { %945 = vmatprep.subr.bf16.mxu0 %v2077_v2 }
  0x58   :  { %498 = vmatmul.mubr.bf16.gmra.mrb[12].mxu0 %v2036_v36 }
  0x59   :  { %946 = vmatpush1.bf16.msra.mxu0 %v2024_v37  ;;  %1845 = vmatprep.mubr.msk.bf16.mxu0 %vm428_vm0, %v2043_v31  ;;  %v2071_v31 = vld [vmem:[%s2663_s2 + $0xa4] ss:$8 sps:$4 sm:$0xff]  }
  0x5a   :  { %947 = vmatprep.subr.bf16.mxu0 %v2077_v2 }
  0x5d   :  { %948 = vmatpush1.bf16.msra.mxu0 %v2026_v38 }
  0x5e   :  { %949 = vmatprep.subr.bf16.mxu0 %v2077_v2 }
  0x61   :  { %950 = vmatpush1.bf16.msra.mxu0 %v2031_v39 }
  0x62   :  { %951 = vmatprep.subr.bf16.mxu0 %v2077_v2 }
  0x65   :  { %952 = vmatpush1.bf16.msra.mxu0 %v2033_v40 }
  0x66   :  { %953 = vmatprep.subr.bf16.mxu0 %v2077_v2 }
  0x69   :  { %954 = vmatpush1.bf16.msra.mxu0 %v2038_v41 }
  0x6a   :  { %955 = vmatprep.subr.bf16.mxu0 %v2077_v2 }
  0x6d   :  { %956 = vmatpush1.bf16.msra.mxu0 %v2040_v42 }
  0x6e   :  { %1474 = vmatprep.subr.bf16.mxu0 %v2077_v2 }
  0x70   :  { %966 = vmatmul.mubr.bf16.vlgmr.msra.gmra.mrb[16].mxu0 %v2336_v43 }
  0x71   :  { %1475 = vmatpush1.bf16.msra.mxu0 %v2338_v44  ;;  %1846 = vmatprep.mubr.msk.bf16.mxu0 %vm428_vm0, %v2343_v45 }
  0x72   :  { %1476 = vmatprep.subr.bf16.mxu0 %v2077_v2 }
  0x75   :  { %1477 = vmatpush1.bf16.msra.mxu0 %v2348_v46 }
  0x76   :  { %1478 = vmatprep.subr.bf16.mxu0 %v2077_v2 }
  0x78   :  { %974 = vmatmul.mubr.bf16.gmra.mrb[20].mxu0 %v2356_v47 }
  0x79   :  { %1479 = vmatpush1.bf16.msra.mxu0 %v2359_v48  ;;  %1847 = vmatprep.mubr.msk.bf16.mxu0 %vm428_vm0, %v2364_v49 }
  0x7a   :  { %1480 = vmatprep.subr.bf16.mxu0 %v2077_v2 }
  0x7d   :  { %1481 = vmatpush1.bf16.msra.mxu0 %v2369_v50 }
  0x7e   :  { %1482 = vmatprep.subr.bf16.mxu0 %v2077_v2 }
  0x80   :  { %982 = vmatmul.mubr.bf16.gmra.mrb[24].mxu0 %v2377_v51 }
  0x81   :  { %1483 = vmatpush1.bf16.msra.mxu0 %v2380_v52  ;;  %1848 = vmatprep.mubr.msk.bf16.mxu0 %vm428_vm0, %v2385_v53 }
  0x82   :  { %v652_v55 = vpop.permute.xlu0 %651  ;;  %1484 = vmatprep.subr.bf16.mxu0 %v2077_v2 }
  0x83   :  { %700 = vmatpush1.bf16.msra.mxu1 %v652_v55 }
  0x84   :  { %701 = vmatprep.subr.bf16.mxu1 %v2077_v2  ;;  %v656_v60 = vpop.permute.xlu1 %655 }
  0x85   :  { %1485 = vmatpush1.bf16.msra.mxu0 %v2390_v54 }
  0x86   :  { %v654_v59 = vpop.permute.xlu0 %653  ;;  %1486 = vmatprep.subr.bf16.mxu0 %v2077_v2 }
  0x87   :  { %702 = vmatpush1.bf16.msra.mxu1 %v654_v59 }
  0x88   :  { %990 = vmatmul.mubr.bf16.gmra.mrb[28].mxu0 %v2399_v56  ;;  %703 = vmatprep.subr.bf16.mxu1 %v2077_v2  ;;  %v658_v62 = vpop.permute.xlu1 %657 }
  0x89   :  { %1487 = vmatpush1.bf16.msra.mxu0 %v2402_v57  ;;  %1909 = vmatprep.mubr.msk.bf16.mxu0 %vm428_vm0, %v2407_v58 }
  0x8a   :  { %1488 = vmatprep.subr.bf16.mxu0 %v2077_v2  ;;  %v660_v0 = vpop.permute.xlu0 %659 }
  0x8b   :  { %704 = vmatpush1.bf16.msra.mxu1 %v656_v60 }
  0x8c   :  { %705 = vmatprep.subr.bf16.mxu1 %v2077_v2  ;;  %v662_v3 = vpop.permute.xlu1 %661 }
  0x8d   :  { %1489 = vmatpush1.bf16.msra.mxu0 %v2413_v61 }
  0x8e   :  { %1490 = vmatprep.subr.bf16.mxu0 %v2077_v2  ;;  %v664_v5 = vpop.permute.xlu0 %663 }
  0x8f   :  { %706 = vmatpush1.bf16.msra.mxu1 %v658_v62 }
  0x90   :  { %707 = vmatprep.subr.bf16.mxu1 %v2077_v2  ;;  %v666_v9 = vpop.permute.xlu1 %665 }
  0x91   :  { %1491 = vmatpush1.bf16.msra.mxu0 %v2420_v63 }
  0x92   :  { %1492 = vmatprep.subr.bf16.mxu0 %v2077_v2  ;;  %v668_v14 = vpop.permute.xlu0 %667 }
  0x93   :  { %708 = vmatpush1.bf16.msra.mxu1 %v660_v0 }
  0x94   :  { %709 = vmatprep.subr.bf16.mxu1 %v2077_v2  ;;  %v670_v15 = vpop.permute.xlu1 %669 }
  0x95   :  { %1493 = vmatpush1.bf16.msra.mxu0 %v2425_v1 }
  0x96   :  { %1494 = vmatprep.subr.bf16.mxu0 %v2077_v2  ;;  %v672_v17 = vpop.permute.xlu0 %671 }
  0x97   :  { %710 = vmatpush1.bf16.msra.mxu1 %v662_v3 }
  0x98   :  { %711 = vmatprep.subr.bf16.mxu1 %v2077_v2  ;;  %v674_v18 = vpop.permute.xlu1 %673 }
  0x99   :  { %1495 = vmatpush1.bf16.msra.mxu0 %v2430_v4 }
  0x9a   :  { %1496 = vmatprep.subr.bf16.mxu0 %v2077_v2  ;;  %v1193_v19 = vpop.permute.xlu0 %1192 }
  0x9b   :  { %712 = vmatpush1.bf16.msra.mxu1 %v664_v5 }
  0x9c   :  { %713 = vmatprep.subr.bf16.mxu1 %v2077_v2  ;;  %v1195_v20 = vpop.permute.xlu1 %1194 }
  0x9d   :  { %1497 = vmatpush1.bf16.msra.mxu0 %v2435_v6 }
  0x9e   :  { %v1197_v21 = vpop.permute.xlu0 %1196 }
  0x9f   :  { %714 = vmatpush1.bf16.msra.mxu1 %v666_v9 }
  0xa0   :  { %1507 = vmatmul.mubr.bf16.vlgmr.msra.gmra.mrb[32].mxu0 %v2448_v10  ;;  %715 = vmatprep.subr.bf16.mxu1 %v2077_v2  ;;  %v1199_v22 = vpop.permute.xlu1 %1198 }
  0xa1   :  { %1910 = vmatprep.mubr.msk.bf16.mxu0 %vm428_vm0, %v2457_v12 }
  0xa2   :  { %v1201_v23 = vpop.permute.xlu0 %1200 }
  0xa3   :  { %716 = vmatpush1.bf16.msra.mxu1 %v668_v14 }
  0xa4   :  { %717 = vmatprep.subr.bf16.mxu1 %v2077_v2  ;;  %v1203_v24 = vpop.permute.xlu1 %1202 }
  0xa6   :  { %v1205_v25 = vpop.permute.xlu0 %1204 }
  0xa7   :  { %718 = vmatpush1.bf16.msra.mxu1 %v670_v15 }
  0xa8   :  { %1515 = vmatmul.mubr.bf16.gmra.mrb[36].mxu0 %v2070_v16  ;;  %719 = vmatprep.subr.bf16.mxu1 %v2077_v2  ;;  %v1207_v26 = vpop.permute.xlu1 %1206 }
  0xaa   :  { %v1209_v27 = vpop.permute.xlu0 %1208 }
  0xab   :  { %720 = vmatpush1.bf16.msra.mxu1 %v672_v17 }
  0xac   :  { %721 = vmatprep.subr.bf16.mxu1 %v2077_v2  ;;  %v1211_v28 = vpop.permute.xlu1 %1210 }
  0xae   :  { %v1213_v29 = vpop.permute.xlu0 %1212 }
  0xaf   :  { %722 = vmatpush1.bf16.msra.mxu1 %v674_v18 }
  0xb0   :  { %1240 = vmatprep.subr.bf16.mxu1 %v2077_v2  ;;  %v1215_v30 = vpop.permute.xlu1 %1214 }
  0xb2   :  { %732 = vmatmul.mubr.bf16.vlgmr.msra.gmra.mrb[0].mxu1 %v2336_v43 }
  0xb3   :  { %1241 = vmatpush1.bf16.msra.mxu1 %v1193_v19  ;;  %1814 = vmatprep.mubr.msk.bf16.mxu1 %vm428_vm0, %v2343_v45 }
  0xb4   :  { %1242 = vmatprep.subr.bf16.mxu1 %v2077_v2 }
  0xb7   :  { %1243 = vmatpush1.bf16.msra.mxu1 %v1195_v20 }
  0xb8   :  { %1244 = vmatprep.subr.bf16.mxu1 %v2077_v2 }
  0xba   :  { %740 = vmatmul.mubr.bf16.gmra.mrb[4].mxu1 %v2356_v47 }
  0xbb   :  { %1245 = vmatpush1.bf16.msra.mxu1 %v1197_v21  ;;  %1815 = vmatprep.mubr.msk.bf16.mxu1 %vm428_vm0, %v2364_v49 }
  0xbc   :  { %1246 = vmatprep.subr.bf16.mxu1 %v2077_v2 }
  0xbf   :  { %1247 = vmatpush1.bf16.msra.mxu1 %v1199_v22 }
  0xc0   :  { %1248 = vmatprep.subr.bf16.mxu1 %v2077_v2 }
  0xc2   :  { %748 = vmatmul.mubr.bf16.gmra.mrb[8].mxu1 %v2377_v51 }
  0xc3   :  { %1249 = vmatpush1.bf16.msra.mxu1 %v1201_v23  ;;  %1816 = vmatprep.mubr.msk.bf16.mxu1 %vm428_vm0, %v2385_v53 }
  0xc4   :  { %1250 = vmatprep.subr.bf16.mxu1 %v2077_v2 }
  0xc7   :  { %1251 = vmatpush1.bf16.msra.mxu1 %v1203_v24 }
  0xc8   :  { %1252 = vmatprep.subr.bf16.mxu1 %v2077_v2 }
  0xca   :  { %756 = vmatmul.mubr.bf16.gmra.mrb[12].mxu1 %v2399_v56 }
  0xcb   :  { %1253 = vmatpush1.bf16.msra.mxu1 %v1205_v25  ;;  %1877 = vmatprep.mubr.msk.bf16.mxu1 %vm428_vm0, %v2407_v58 }
  0xcc   :  { %1254 = vmatprep.subr.bf16.mxu1 %v2077_v2 }
  0xcf   :  { %1255 = vmatpush1.bf16.msra.mxu1 %v1207_v26 }
  0xd0   :  { %1256 = vmatprep.subr.bf16.mxu1 %v2077_v2 }
  0xd3   :  { %1257 = vmatpush1.bf16.msra.mxu1 %v1209_v27 }
  0xd4   :  { %1258 = vmatprep.subr.bf16.mxu1 %v2077_v2 }
  0xd7   :  { %1259 = vmatpush1.bf16.msra.mxu1 %v1211_v28 }
  0xd8   :  { %1260 = vmatprep.subr.bf16.mxu1 %v2077_v2 }
  0xdb   :  { %1261 = vmatpush1.bf16.msra.mxu1 %v1213_v29 }
  0xdc   :  { %1262 = vmatprep.subr.bf16.mxu1 %v2077_v2 }
  0xdf   :  { %1263 = vmatpush1.bf16.msra.mxu1 %v1215_v30 }
  0xe0   :  { %1952 = vmatprep.subr.bf16.mxu1 %v2077_v2 }
  0xe2   :  { %1273 = vmatmul.mubr.bf16.vlgmr.msra.gmra.mrb[16].mxu1 %v2448_v10 }
  0xe3   :  { %1964 = vmatpush1.bf16.msra.mxu1 %v2338_v44  ;;  %1878 = vmatprep.mubr.msk.bf16.mxu1 %vm428_vm0, %v2457_v12 }
  0xe4   :  { %1953 = vmatprep.subr.bf16.mxu1 %v2077_v2 }
  0xe7   :  { %1965 = vmatpush1.bf16.msra.mxu1 %v2348_v46 }
  0xe8   :  { %1954 = vmatprep.subr.bf16.mxu1 %v2077_v2 }
  0xea   :  { %1281 = vmatmul.mubr.bf16.gmra.mrb[20].mxu1 %v2070_v16 }
  0xeb   :  { %1966 = vmatpush1.bf16.msra.mxu1 %v2359_v48  ;;  %1879 = vmatprep.mubr.msk.bf16.mxu1 %vm428_vm0, %v2071_v31 }
  0xec   :  { %1955 = vmatprep.subr.bf16.mxu1 %v2077_v2 }
  0xef   :  { %1967 = vmatpush1.bf16.msra.mxu1 %v2369_v50 }
  0xf0   :  { %1956 = vmatprep.subr.bf16.mxu1 %v2077_v2 }
  0xf2   :  { %1289 = vmatmul.mubr.bf16.gmra.mrb[24].mxu1 %v2073_v32 }
  0xf3   :  { %1968 = vmatpush1.bf16.msra.mxu1 %v2380_v52  ;;  %1880 = vmatprep.mubr.msk.bf16.mxu1 %vm428_vm0, %v2074_v33 }
  0xf4   :  { %1957 = vmatprep.subr.bf16.mxu1 %v2077_v2 }
  0xf7   :  { %1969 = vmatpush1.bf16.msra.mxu1 %v2390_v54 }
  0xf8   :  { %1958 = vmatprep.subr.bf16.mxu1 %v2077_v2 }
  0xfa   :  { %1297 = vmatmul.mubr.bf16.gmra.mrb[28].mxu1 %v2076_v34 }
  0xfb   :  { %1970 = vmatpush1.bf16.msra.mxu1 %v2402_v57  ;;  %1911 = vmatprep.mubr.msk.bf16.mxu1 %vm428_vm0, %v2071_v31 }
  0xfc   :  { %1959 = vmatprep.subr.bf16.mxu1 %v2077_v2 }
  0xff   :  { %1971 = vmatpush1.bf16.msra.mxu1 %v2413_v61 }
 0x100   :  { %1960 = vmatprep.subr.bf16.mxu1 %v2077_v2 }
 0x103   :  { %1972 = vmatpush1.bf16.msra.mxu1 %v2420_v63 }
 0x104   :  { %1961 = vmatprep.subr.bf16.mxu1 %v2077_v2 }
 0x107   :  { %1973 = vmatpush1.bf16.msra.mxu1 %v2425_v1  ;;  %v1609_v1 = vld [vmem:[%s2664_s3 + $0x28] sm:$0xff] }
 0x108   :  { %1962 = vmatprep.subr.bf16.mxu1 %v2077_v2 }
 0x10b   :  { %1974 = vmatpush1.bf16.msra.mxu1 %v2430_v4  ;;  %v1608_v4 = vld [vmem:[%s2664_s3 + $0x20] sm:$0xff] }
 0x10c   :  { %1963 = vmatprep.subr.bf16.mxu1 %v2077_v2 }
 0x10f   :  { %1975 = vmatpush1.bf16.msra.mxu1 %v2435_v6 }
 0x112   :  { %1523 = vmatmul.mubr.bf16.vlgmr.msra.gmra.mrb[32].mxu1 %v2073_v32 }
 0x113   :  { %1912 = vmatprep.mubr.msk.bf16.mxu1 %vm428_vm0, %v2074_v33  ;;  %v2539_v35 = vpop.f32.mrb[0].mxu0 }
 0x114   :  { %506 = vst [vmem:[#allocation2] sm:$0xff] %v2539_v35  ;;  %v477_v36 = vpop.f32.mrb[1].mxu0 }
 0x115   :  { %v2542_v37 = vpop.f32.mrb[2].mxu0 }
 0x116   :  { %507 = vst [vmem:[#allocation2 + $0x8] sm:$0xff] %v2542_v37  ;;  %v480_v38 = vpop.f32.mrb[3].mxu0 }
 0x117   :  { %v2599_v38 = vpop.permute.xlu1 %1619 }
 0x11a   :  { %1531 = vmatmul.mubr.bf16.gmra.mrb[36].mxu1 %v2076_v34 }
 0x11b   :  { %v2545_v39 = vpop.f32.mrb[4].mxu0 }
 0x11c   :  { %508 = vst [vmem:[#allocation2 + $0x10] sm:$0xff] %v2545_v39  ;;  %v485_v2 = vpop.f32.mrb[5].mxu0 }
 0x11d   :  { %v2548_v40 = vpop.f32.mrb[6].mxu0  ;;  %v2603_v2 = vpop.permute.xlu1 %1624 }
 0x11e   :  { %509 = vst [vmem:[#allocation2 + $0x18] sm:$0xff] %v2548_v40  ;;  %v488_v41 = vpop.f32.mrb[7].mxu0 }
 0x123   :  { %v2551_v42 = vpop.f32.mrb[8].mxu0 }
 0x124   :  { %510 = vst [vmem:[#allocation2 + $0x20] sm:$0xff] %v2551_v42  ;;  %v493_v43 = vpop.f32.mrb[9].mxu0 }
 0x125   :  { %v2554_v44 = vpop.f32.mrb[10].mxu0 }
 0x126   :  { %511 = vst [vmem:[#allocation2 + $0x28] sm:$0xff] %v2554_v44  ;;  %v496_v45 = vpop.f32.mrb[11].mxu0 }
 0x12b   :  { %v2557_v46 = vpop.f32.mrb[12].mxu0 }
 0x12c   :  { %512 = vst [vmem:[#allocation2 + $0x30] sm:$0xff] %v2557_v46  ;;  %v501_v47 = vpop.f32.mrb[13].mxu0 }
 0x12d   :  { %v2560_v48 = vpop.f32.mrb[14].mxu0 }
 0x12e   :  { %513 = vst [vmem:[#allocation2 + $0x38] sm:$0xff] %v2560_v48  ;;  %v504_v49 = vpop.f32.mrb[15].mxu0 }
 0x143   :  { %v967_v50 = vpop.f32.mrb[16].mxu0 }
 0x144   :  { %1014 = vrot.lane.b32.xlu0 %v967_v50, %s2078_s9  ;;  %v969_v51 = vpop.f32.mrb[17].mxu0 }
 0x145   :  { %v970_v52 = vpop.f32.mrb[18].mxu0 }
 0x146   :  { %1016 = vrot.lane.b32.xlu1 %v970_v52, %s2078_s9  ;;  %v972_v53 = vpop.f32.mrb[19].mxu0 }
 0x14b   :  { %v975_v54 = vpop.f32.mrb[20].mxu0 }
 0x14c   :  { %1018 = vrot.lane.b32.xlu0 %v975_v54, %s2078_s9  ;;  %v977_v55 = vpop.f32.mrb[21].mxu0 }
 0x14d   :  { %v978_v56 = vpop.f32.mrb[22].mxu0 }
 0x14e   :  { %1020 = vrot.lane.b32.xlu1 %v978_v56, %s2078_s9  ;;  %v980_v57 = vpop.f32.mrb[23].mxu0 }
 0x153   :  { %v983_v58 = vpop.f32.mrb[24].mxu0 }
 0x154   :  { %1022 = vrot.lane.b32.xlu0 %v983_v58, %s2078_s9  ;;  %v985_v59 = vpop.f32.mrb[25].mxu0 }
 0x155   :  { %v986_v60 = vpop.f32.mrb[26].mxu0 }
 0x156   :  { %1024 = vrot.lane.b32.xlu1 %v986_v60, %s2078_s9  ;;  %v988_v61 = vpop.f32.mrb[27].mxu0 }
 0x15b   :  { %v991_v62 = vpop.f32.mrb[28].mxu0 }
 0x15c   :  { %1026 = vrot.lane.b32.xlu0 %v991_v62, %s2078_s9  ;;  %v993_v63 = vpop.f32.mrb[29].mxu0 }
 0x15d   :  { %v994_v0 = vpop.f32.mrb[30].mxu0 }
 0x15e   :  { %1028 = vrot.lane.b32.xlu1 %v994_v0, %s2078_s9  ;;  %v996_v3 = vpop.f32.mrb[31].mxu0 }
 0x160   :  { %1639 = vperm.xlu0 %1979, %v1609_v1  }
 0x162   :  { %1634 = vperm.xlu1 %1980, %v1608_v4  }
 0x173   :  { %v1508_v5 = vpop.f32.mrb[32].mxu0 }
 0x174   :  { %1555 = vrot.lane.b32.xlu0 %v1508_v5, %s2079_s0  ;;  %v1510_v6 = vpop.f32.mrb[33].mxu0 }
 0x175   :  { %v1511_v7 = vpop.f32.mrb[34].mxu0 }
 0x176   :  { %1557 = vrot.lane.b32.xlu1 %v1511_v7, %s2079_s0  ;;  %v1513_v8 = vpop.f32.mrb[35].mxu0 }
 0x17b   :  { %v1516_v9 = vpop.f32.mrb[36].mxu0 }
 0x17c   :  { %1559 = vrot.lane.b32.xlu0 %v1516_v9, %s2079_s0  ;;  %v1518_v10 = vpop.f32.mrb[37].mxu0 }
 0x17d   :  { %v1519_v11 = vpop.f32.mrb[38].mxu0 }
 0x17e   :  { %1561 = vrot.lane.b32.xlu1 %v1519_v11, %s2079_s0  ;;  %v1521_v12 = vpop.f32.mrb[39].mxu0 }
 0x185   :  { %v733_v13 = vpop.f32.mrb[0].mxu1 }
 0x186   :  { %v764_v14 = vadd.f32 %v733_v13, %v2539_v35  ;;  %v735_v15 = vpop.f32.mrb[1].mxu1 }
 0x187   :  { %v736_v16 = vpop.f32.mrb[2].mxu1 }
 0x188   :  { %773 = vst.msk [vmem:[#allocation2] sm:$0xff] %vm772_vm1, %v764_v14  ;;  %v765_v17 = vadd.f32 %v736_v16, %v2542_v37  ;;  %v738_v18 = vpop.f32.mrb[3].mxu1  ;;  %v2597_v37 = vpop.permute.xlu0 %1614 }
 0x18a   :  { %774 = vst.msk [vmem:[#allocation2 + $0x8] sm:$0xff] %vm772_vm1, %v765_v17 }
 0x18d   :  { %v741_v19 = vpop.f32.mrb[4].mxu1 }
 0x18e   :  { %v766_v20 = vadd.f32 %v741_v19, %v2545_v39  ;;  %v743_v21 = vpop.f32.mrb[5].mxu1  ;;  %v2601_v39 = vpop.permute.xlu0 %1629 }
 0x18f   :  { %v744_v22 = vpop.f32.mrb[6].mxu1  ;;  %v998_v41 = vld [vmem:[#allocation2] sm:$0xff] }
 0x190   :  { %775 = vst.msk [vmem:[#allocation2 + $0x10] sm:$0xff] %vm772_vm1, %v766_v20  ;;  %v767_v23 = vadd.f32 %v744_v22, %v2548_v40  ;;  %v746_v24 = vpop.f32.mrb[7].mxu1 }
 0x192   :  { %776 = vst.msk [vmem:[#allocation2 + $0x18] sm:$0xff] %vm772_vm1, %v767_v23 }
 0x195   :  { %v749_v25 = vpop.f32.mrb[8].mxu1 }
 0x196   :  { %v768_v26 = vadd.f32 %v749_v25, %v2551_v42  ;;  %v751_v27 = vpop.f32.mrb[9].mxu1 }
 0x197   :  { %v752_v28 = vpop.f32.mrb[10].mxu1  ;;  %v1000_v51 = vld [vmem:[#allocation2 + $0x10] sm:$0xff] }
 0x198   :  { %777 = vst.msk [vmem:[#allocation2 + $0x20] sm:$0xff] %vm772_vm1, %v768_v26  ;;  %v769_v29 = vadd.f32 %v752_v28, %v2554_v44  ;;  %v754_v30 = vpop.f32.mrb[11].mxu1 }
 0x199   :  { %v1001_v56 = vld [vmem:[#allocation2 + $0x18] sm:$0xff] }
 0x19a   :  { %778 = vst.msk [vmem:[#allocation2 + $0x28] sm:$0xff] %vm772_vm1, %v769_v29 }
 0x19d   :  { %v757_v31 = vpop.f32.mrb[12].mxu1 }
 0x19e   :  { %v770_v32 = vadd.f32 %v757_v31, %v2557_v46  ;;  %v759_v33 = vpop.f32.mrb[13].mxu1  ;;  %v999_v46 = vld [vmem:[#allocation2 + $0x8] sm:$0xff] }
 0x19f   :  { %v760_v34 = vpop.f32.mrb[14].mxu1  ;;  %v1002_v1 = vld [vmem:[#allocation2 + $0x20] sm:$0xff] }
 0x1a0   :  { %779 = vst.msk [vmem:[#allocation2 + $0x30] sm:$0xff] %vm772_vm1, %v770_v32  ;;  %v771_v35 = vadd.f32 %v760_v34, %v2560_v48  ;;  %v762_v36 = vpop.f32.mrb[15].mxu1 }
 0x1a1   :  { %v1003_v8 = vld [vmem:[#allocation2 + $0x28] sm:$0xff] }
 0x1a2   :  { %780 = vst.msk [vmem:[#allocation2 + $0x38] sm:$0xff] %vm772_vm1, %v771_v35 }
 0x1a7   :  { %v1004_v16 = vld [vmem:[#allocation2 + $0x30] sm:$0xff] }
 0x1a9   :  { %v1005_v22 = vld [vmem:[#allocation2 + $0x38] sm:$0xff] }
 0x1b5   :  { %v1274_v40 = vpop.f32.mrb[16].mxu1 }
 0x1b6   :  { %v1015_v42 = vpop.permute.xlu0 %1014  ;;  %v1276_v43 = vpop.f32.mrb[17].mxu1 }
 0x1b7   :  { %v1038_v44 = vadd.f32 %v1015_v42, %v998_v41  ;;  %v1277_v45 = vpop.f32.mrb[18].mxu1 }
 0x1b8   :  { %v1017_v47 = vpop.permute.xlu1 %1016  ;;  %v1279_v48 = vpop.f32.mrb[19].mxu1 }
 0x1b9   :  { %1047 = vst.msk [vmem:[#allocation2] sm:$0xff] %vm1046_vm2, %v1038_v44  ;;  %v1039_v49 = vadd.f32 %v1017_v47, %v999_v46 }
 0x1bb   :  { %1048 = vst.msk [vmem:[#allocation2 + $0x8] sm:$0xff] %vm1046_vm2, %v1039_v49 }
 0x1bd   :  { %v1282_v50 = vpop.f32.mrb[20].mxu1 }
 0x1be   :  { %v1019_v52 = vpop.permute.xlu0 %1018  ;;  %v1284_v53 = vpop.f32.mrb[21].mxu1 }
 0x1bf   :  { %v1040_v54 = vadd.f32 %v1019_v52, %v1000_v51  ;;  %v1285_v55 = vpop.f32.mrb[22].mxu1 }
 0x1c0   :  { %v1021_v57 = vpop.permute.xlu1 %1020  ;;  %v1287_v58 = vpop.f32.mrb[23].mxu1  ;;  %v1055_v59 = vld [vmem:[#allocation2] sm:$0xff] }
 0x1c1   :  { %1049 = vst.msk [vmem:[#allocation2 + $0x10] sm:$0xff] %vm1046_vm2, %v1040_v54  ;;  %v1041_v60 = vadd.f32 %v1021_v57, %v1001_v56  ;;  %v1305_v61 = vadd.f32 %v1274_v40, %v1055_v59  ;;  %v1611_v54 = vld [vmem:[%s2664_s3 + $0x38] sm:$0xff] }
 0x1c2   :  { %v1056_v62 = vld [vmem:[#allocation2 + $0x8] sm:$0xff] }
 0x1c3   :  { %1050 = vst.msk [vmem:[#allocation2 + $0x18] sm:$0xff] %vm1046_vm2, %v1041_v60  ;;  %v1306_v63 = vadd.f32 %v1277_v45, %v1056_v62 }
 0x1c4   :  { %1314 = vst.msk [vmem:[#allocation2] sm:$0xff] %vm1313_vm3, %v1305_v61  ;;  %v1610_v61 = vld [vmem:[%s2664_s3 + $0x30] sm:$0xff] }
 0x1c5   :  { %v1290_v0 = vpop.f32.mrb[24].mxu1  ;;  %1315 = vst.msk [vmem:[#allocation2 + $0x8] sm:$0xff] %vm1313_vm3, %v1306_v63 }
 0x1c6   :  { %v1023_v3 = vpop.permute.xlu0 %1022  ;;  %v1292_v4 = vpop.f32.mrb[25].mxu1 }
 0x1c7   :  { %v1042_v5 = vadd.f32 %v1023_v3, %v1002_v1  ;;  %v1293_v6 = vpop.f32.mrb[26].mxu1 }
 0x1c8   :  { %v1057_v7 = vld [vmem:[#allocation2 + $0x10] sm:$0xff]  ;;  %v1025_v9 = vpop.permute.xlu1 %1024  ;;  %v1295_v10 = vpop.f32.mrb[27].mxu1 }
 0x1c9   :  { %1051 = vst.msk [vmem:[#allocation2 + $0x20] sm:$0xff] %vm1046_vm2, %v1042_v5  ;;  %v1307_v11 = vadd.f32 %v1282_v50, %v1057_v7  ;;  %v1043_v12 = vadd.f32 %v1025_v9, %v1003_v8 }
 0x1ca   :  { %v1058_v13 = vld [vmem:[#allocation2 + $0x18] sm:$0xff] }
 0x1cb   :  { %1316 = vst.msk [vmem:[#allocation2 + $0x10] sm:$0xff] %vm1313_vm3, %v1307_v11  ;;  %v1308_v14 = vadd.f32 %v1285_v55, %v1058_v13  ;;  %v1539_v36 = vld [vmem:[#allocation2] sm:$0xff] }
 0x1cc   :  { %1052 = vst.msk [vmem:[#allocation2 + $0x28] sm:$0xff] %vm1046_vm2, %v1043_v12  ;;  %v1540_v44 = vld [vmem:[#allocation2 + $0x8] sm:$0xff] }
 0x1cd   :  { %1317 = vst.msk [vmem:[#allocation2 + $0x18] sm:$0xff] %vm1313_vm3, %v1308_v14  ;;  %v1298_v15 = vpop.f32.mrb[28].mxu1 }
 0x1ce   :  { %v1027_v17 = vpop.permute.xlu0 %1026  ;;  %v1300_v18 = vpop.f32.mrb[29].mxu1 }
 0x1cf   :  { %v1044_v19 = vadd.f32 %v1027_v17, %v1004_v16  ;;  %v1301_v20 = vpop.f32.mrb[30].mxu1 }
 0x1d0   :  { %v1059_v21 = vld [vmem:[#allocation2 + $0x20] sm:$0xff]  ;;  %v1029_v23 = vpop.permute.xlu1 %1028  ;;  %v1303_v24 = vpop.f32.mrb[31].mxu1 }
 0x1d1   :  { %1053 = vst.msk [vmem:[#allocation2 + $0x30] sm:$0xff] %vm1046_vm2, %v1044_v19  ;;  %v1309_v25 = vadd.f32 %v1290_v0, %v1059_v21  ;;  %v1045_v26 = vadd.f32 %v1029_v23, %v1005_v22 }
 0x1d2   :  { %v1541_v49 = vld [vmem:[#allocation2 + $0x10] sm:$0xff] }
 0x1d3   :  { %v1060_v27 = vld [vmem:[#allocation2 + $0x28] sm:$0xff]  ;;  %1318 = vst.msk [vmem:[#allocation2 + $0x20] sm:$0xff] %vm1313_vm3, %v1309_v25 }
 0x1d4   :  { %1054 = vst.msk [vmem:[#allocation2 + $0x38] sm:$0xff] %vm1046_vm2, %v1045_v26  ;;  %v1310_v28 = vadd.f32 %v1293_v6, %v1060_v27  ;;  %v1542_v56 = vld [vmem:[#allocation2 + $0x18] sm:$0xff] }
 0x1d6   :  { %1319 = vst.msk [vmem:[#allocation2 + $0x28] sm:$0xff] %vm1313_vm3, %v1310_v28 }
 0x1d8   :  { %v1061_v29 = vld [vmem:[#allocation2 + $0x30] sm:$0xff] }
 0x1d9   :  { %v1311_v30 = vadd.f32 %v1298_v15, %v1061_v29 }
 0x1da   :  { %v1543_v13 = vld [vmem:[#allocation2 + $0x20] sm:$0xff] }
 0x1db   :  { %v1062_v31 = vld [vmem:[#allocation2 + $0x38] sm:$0xff]  ;;  %1320 = vst.msk [vmem:[#allocation2 + $0x30] sm:$0xff] %vm1313_vm3, %v1311_v30 }
 0x1dc   :  { %v1312_v32 = vadd.f32 %v1301_v20, %v1062_v31 }
 0x1dd   :  { %v1544_v15 = vld [vmem:[#allocation2 + $0x28] sm:$0xff] }
 0x1de   :  { %1321 = vst.msk [vmem:[#allocation2 + $0x38] sm:$0xff] %vm1313_vm3, %v1312_v32 }
 0x1df   :  { %v2621_v33 = vpop.permute.xlu0 %1639 }
 0x1e1   :  { %v2623_v34 = vpop.permute.xlu1 %1634 }
 0x1e5   :  { %v1524_v35 = vpop.f32.mrb[32].mxu1  ;;  %v1546_v21 = vld [vmem:[#allocation2 + $0x38] sm:$0xff] }
 0x1e6   :  { %v1556_v40 = vpop.permute.xlu0 %1555  ;;  %v1526_v41 = vpop.f32.mrb[33].mxu1  ;;  %1563 = vrot.lane.b32.xlu0 %v1524_v35, %s2079_s0 }
 0x1e7   :  { %v1579_v42 = vadd.f32 %v1556_v40, %v1539_v36  ;;  %v1527_v43 = vpop.f32.mrb[34].mxu1 }
 0x1e8   :  { %v1558_v45 = vpop.permute.xlu1 %1557  ;;  %v1529_v46 = vpop.f32.mrb[35].mxu1  ;;  %1565 = vrot.lane.b32.xlu1 %v1527_v43, %s2079_s0 }
 0x1e9   :  { %1588 = vst.msk [vmem:[#allocation2] sm:$0xff] %vm1587_vm4, %v1579_v42  ;;  %v1580_v47 = vadd.f32 %v1558_v45, %v1540_v44 }
 0x1eb   :  { %1589 = vst.msk [vmem:[#allocation2 + $0x8] sm:$0xff] %vm1587_vm4, %v1580_v47 }
 0x1ed   :  { %v1532_v48 = vpop.f32.mrb[36].mxu1 }
 0x1ee   :  { %v1560_v50 = vpop.permute.xlu0 %1559  ;;  %v1534_v51 = vpop.f32.mrb[37].mxu1  ;;  %1567 = vrot.lane.b32.xlu0 %v1532_v48, %s2079_s0 }
 0x1ef   :  { %v1581_v52 = vadd.f32 %v1560_v50, %v1541_v49  ;;  %v1535_v53 = vpop.f32.mrb[38].mxu1 }
 0x1f0   :  { %v1596_v55 = vld [vmem:[#allocation2] sm:$0xff]  ;;  %v1562_v57 = vpop.permute.xlu1 %1561  ;;  %v1537_v58 = vpop.f32.mrb[39].mxu1  ;;  %1569 = vrot.lane.b32.xlu1 %v1535_v53, %s2079_s0 }
 0x1f1   :  { %v1652_v59 = vadd.f32 %v2597_v37, %v1596_v55  ;;  %1590 = vst.msk [vmem:[#allocation2 + $0x10] sm:$0xff] %vm1587_vm4, %v1581_v52  ;;  %v1582_v60 = vadd.f32 %v1562_v57, %v1542_v56 }
 0x1f2   :  { %v1597_v62 = vld [vmem:[#allocation2 + $0x8] sm:$0xff]  ;;  %1649 = vperm.xlu0 %1979, %v1611_v54  }
 0x1f3   :  { %v1668_v63 = vmul.f32 0.3, %v1652_v59  ;;  %v1653_v0 = vadd.f32 %v2599_v38, %v1597_v62  ;;  %1591 = vst.msk [vmem:[#allocation2 + $0x18] sm:$0xff] %vm1587_vm4, %v1582_v60  ;;  %vm1660_vm5 = vcmp.ge.f32.partialorder %v1652_v59, 0.0 }
 0x1f4   :  { %1644 = vperm.xlu1 %1980, %v1610_v61  }
 0x1f5   :  { %vm1661_vm6 = vcmp.ge.f32.partialorder %v1653_v0, 0.0  ;;  %v1669_v1 = vmul.f32 0.3, %v1653_v0  ;;  %v1676_v3 = vsel %vm1660_vm5, %v1652_v59, %v1668_v63 }
 0x1f7   :  { %v1677_v37 = vsel %vm1661_vm6, %v1653_v0, %v1669_v1 }
 0x1f8   :  { %v1932_v4 = vpack.c.bf16 %v1677_v37, %v1676_v3  ;;  %v1598_v5 = vld [vmem:[#allocation2 + $0x10] sm:$0xff] }
 0x1f9   :  { %v1654_v6 = vadd.f32 %v2603_v2, %v1598_v5 }
 0x1fa   :  { %1933 = vst [vmem:[%s2665_s4] sm:$0xff] %v1932_v4   ;;  %v1599_v7 = vld [vmem:[#allocation2 + $0x18] sm:$0xff] }
 0x1fb   :  { %v1670_v8 = vmul.f32 0.3, %v1654_v6  ;;  %v1655_v38 = vadd.f32 %v2601_v39, %v1599_v7  ;;  %vm1662_vm7 = vcmp.ge.f32.partialorder %v1654_v6, 0.0  ;;  %v1545_v39 = vld [vmem:[#allocation2 + $0x30] sm:$0xff] }
 0x1fd   :  { %vm1663_vm8 = vcmp.ge.f32.partialorder %v1655_v38, 0.0  ;;  %v1671_v9 = vmul.f32 0.3, %v1655_v38  ;;  %v1678_v10 = vsel %vm1662_vm7, %v1654_v6, %v1670_v8 }
 0x1ff   :  { %v1679_v11 = vsel %vm1663_vm8, %v1655_v38, %v1671_v9 }
 0x200   :  { %v1937_v12 = vpack.c.bf16 %v1679_v11, %v1678_v10 }
 0x202   :  { %1949 = vst [vmem:[%s2665_s4 + $0x8] sm:$0xff] %v1937_v12  }
 0x258   :  { %v1564_v2 = vpop.permute.xlu0 %1563 }
 0x259   :  { %v1583_v14 = vadd.f32 %v1564_v2, %v1543_v13 }
 0x25a   :  { %v1566_v16 = vpop.permute.xlu1 %1565 }
 0x25b   :  { %1592 = vst.msk [vmem:[#allocation2 + $0x20] sm:$0xff] %vm1587_vm4, %v1583_v14  ;;  %v1584_v17 = vadd.f32 %v1566_v16, %v1544_v15 }
 0x25d   :  { %1593 = vst.msk [vmem:[#allocation2 + $0x28] sm:$0xff] %vm1587_vm4, %v1584_v17 }
 0x260   :  { %v1568_v18 = vpop.permute.xlu0 %1567 }
 0x261   :  { %v1585_v19 = vadd.f32 %v1568_v18, %v1545_v39 }
 0x262   :  { %v1600_v20 = vld [vmem:[#allocation2 + $0x20] sm:$0xff]  ;;  %v1570_v22 = vpop.permute.xlu1 %1569 }
 0x263   :  { %v1656_v23 = vadd.f32 %v2623_v34, %v1600_v20  ;;  %1594 = vst.msk [vmem:[#allocation2 + $0x30] sm:$0xff] %vm1587_vm4, %v1585_v19  ;;  %v1586_v24 = vadd.f32 %v1570_v22, %v1546_v21 }
 0x264   :  { %v1601_v25 = vld [vmem:[#allocation2 + $0x28] sm:$0xff] }
 0x265   :  { %v1672_v26 = vmul.f32 0.3, %v1656_v23  ;;  %v1657_v27 = vadd.f32 %v2621_v33, %v1601_v25  ;;  %1595 = vst.msk [vmem:[#allocation2 + $0x38] sm:$0xff] %vm1587_vm4, %v1586_v24  ;;  %vm1664_vm9 = vcmp.ge.f32.partialorder %v1656_v23, 0.0 }
 0x267   :  { %vm1665_vm10 = vcmp.ge.f32.partialorder %v1657_v27, 0.0  ;;  %v1673_v28 = vmul.f32 0.3, %v1657_v27  ;;  %v1680_v29 = vsel %vm1664_vm9, %v1656_v23, %v1672_v26 }
 0x269   :  { %v1681_v30 = vsel %vm1665_vm10, %v1657_v27, %v1673_v28 }
 0x26a   :  { %v1942_v31 = vpack.c.bf16 %v1681_v30, %v1680_v29  ;;  %v1602_v36 = vld [vmem:[#allocation2 + $0x30] sm:$0xff] }
 0x26c   :  { %1950 = vst [vmem:[%s2665_s4 + $0x10] sm:$0xff] %v1942_v31   ;;  %v1603_v34 = vld [vmem:[#allocation2 + $0x38] sm:$0xff] }
 0x271   :  { %v1650_v32 = vpop.permute.xlu0 %1649 }
 0x272   :  { %v1659_v35 = vadd.f32 %v1650_v32, %v1603_v34 }
 0x273   :  { %v1645_v40 = vpop.permute.xlu1 %1644 }
 0x274   :  { %v1675_v41 = vmul.f32 0.3, %v1659_v35  ;;  %v1658_v42 = vadd.f32 %v1645_v40, %v1602_v36  ;;  %vm1667_vm11 = vcmp.ge.f32.partialorder %v1659_v35, 0.0 }
 0x276   :  { %vm1666_vm12 = vcmp.ge.f32.partialorder %v1658_v42, 0.0  ;;  %v1674_v33 = vmul.f32 0.3, %v1658_v42  ;;  %v1683_v43 = vsel %vm1667_vm11, %v1659_v35, %v1675_v41 }
 0x278   :  { %v1682_v44 = vsel %vm1666_vm12, %v1658_v42, %v1674_v33 }
 0x279   :  { %v1947_v45 = vpack.c.bf16 %v1683_v43, %v1682_v44 }
 0x27b   :  { %1951 = vst [vmem:[%s2665_s4 + $0x18] sm:$0xff] %v1947_v45  }

// kernel: wav_encoder_forward.7
= control target key start
LH: loop header
LB: loop body
LE: loop exit
PB: predicated region body
PF: predicated region fallthrough
CT: control target
= control target key end

     0   :  { %s3038_s9 = smov 127   ;;  %vm1201_vm0 = vcmask 1039360   ;;  %vm1560_vm1 = vcmask 1048568   ;;  %vm1952_vm2 = vcmask 1031168   ;;  %vm2311_vm3 = vcmask 1048560   ;;  %s3539_s0 = inlined_call_operand.vmem [shape: bf16[384,256], index: 0, kind: input, shape index: {}, may-alias: {0,1}]   ;;  %s3540_s1 = inlined_call_operand.vmem [shape: bf16[384,256], index: 1, kind: input, shape index: {}, may-alias: {0,1}]   ;;  %s3541_s2 = inlined_call_operand.vmem [shape: bf16[3,32,384], index: 2, kind: input, shape index: {}]   ;;  %s3542_s3 = inlined_call_operand.vmem [shape: f32[32,1], index: 3, kind: input, shape index: {}]   ;;  %s3543_s4 = inlined_call_operand.vmem [shape: f32[32,128], index: 4, kind: output, shape index: {}]  }
   0x1   :  { %v62_v0 = vld [vmem:[%s3539_s0 + $0x90] sm:$0xf]  ;;  %v64_v1 = vld [vmem:[%s3539_s0 + $0x98] sm:$0xf]  ;;  %v58_v2 = vld [vmem:[%s3539_s0 + $0x80] sm:$0xf] }
   0x2   :  { %63 = vst [vmem:[#allocation3 + $0x48] sm:$0xf] %v62_v0  ;;  %65 = vst [vmem:[#allocation3 + $0x4c] sm:$0xf] %v64_v1  ;;  %v60_v3 = vld [vmem:[%s3539_s0 + $0x88] sm:$0xf] }
   0x3   :  { %v30_v4 = vld [vmem:[%s3539_s0 + $0x10] sm:$0xf]  ;;  %59 = vst [vmem:[#allocation3 + $0x40] sm:$0xf] %v58_v2  ;;  %61 = vst [vmem:[#allocation3 + $0x44] sm:$0xf] %v60_v3 }
   0x4   :  { %31 = vst [vmem:[#allocation3 + $0x8] sm:$0xf] %v30_v4  ;;  %v32_v5 = vld [vmem:[%s3539_s0 + $0x18] sm:$0xf]  ;;  %v26_v6 = vld [vmem:[%s3539_s0] sm:$0xf] }
   0x5   :  { %v28_v7 = vld [vmem:[%s3539_s0 + $0x8] sm:$0xf]  ;;  %33 = vst [vmem:[#allocation3 + $0xc] sm:$0xf] %v32_v5  ;;  %27 = vst [vmem:[#allocation3] sm:$0xf] %v26_v6 }
   0x6   :  { %29 = vst [vmem:[#allocation3 + $0x4] sm:$0xf] %v28_v7  ;;  %v34_v8 = vld [vmem:[%s3539_s0 + $0x20] sm:$0xf]  ;;  %v36_v9 = vld [vmem:[%s3539_s0 + $0x28] sm:$0xf] }
   0x7   :  { %v66_v10 = vld [vmem:[%s3539_s0 + $0xa0] sm:$0xf]  ;;  %35 = vst [vmem:[#allocation3 + $0x10] sm:$0xf] %v34_v8  ;;  %37 = vst [vmem:[#allocation3 + $0x14] sm:$0xf] %v36_v9 }
   0x8   :  { %67 = vst [vmem:[#allocation3 + $0x50] sm:$0xf] %v66_v10  ;;  %v68_v11 = vld [vmem:[%s3539_s0 + $0xa8] sm:$0xf]  ;;  %v70_v12 = vld [vmem:[%s3539_s0 + $0xb0] sm:$0xf] }
   0x9   :  { %v72_v13 = vld [vmem:[%s3539_s0 + $0xb8] sm:$0xf]  ;;  %69 = vst [vmem:[#allocation3 + $0x54] sm:$0xf] %v68_v11  ;;  %71 = vst [vmem:[#allocation3 + $0x58] sm:$0xf] %v70_v12 }
   0xa   :  { %73 = vst [vmem:[#allocation3 + $0x5c] sm:$0xf] %v72_v13  ;;  %v90_v14 = vld [vmem:[%s3539_s0 + $0x100] sm:$0xf]  ;;  %v92_v15 = vld [vmem:[%s3539_s0 + $0x108] sm:$0xf] }
   0xb   :  { %v94_v16 = vld [vmem:[%s3539_s0 + $0x110] sm:$0xf]  ;;  %91 = vst [vmem:[#allocation3 + $0x80] sm:$0xf] %v90_v14  ;;  %93 = vst [vmem:[#allocation3 + $0x84] sm:$0xf] %v92_v15 }
   0xc   :  { %95 = vst [vmem:[#allocation3 + $0x88] sm:$0xf] %v94_v16  ;;  %v96_v17 = vld [vmem:[%s3539_s0 + $0x118] sm:$0xf]  ;;  %v38_v18 = vld [vmem:[%s3539_s0 + $0x30] sm:$0xf] }
   0xd   :  { %v40_v19 = vld [vmem:[%s3539_s0 + $0x38] sm:$0xf]  ;;  %97 = vst [vmem:[#allocation3 + $0x8c] sm:$0xf] %v96_v17  ;;  %39 = vst [vmem:[#allocation3 + $0x18] sm:$0xf] %v38_v18 }
   0xe   :  { %41 = vst [vmem:[#allocation3 + $0x1c] sm:$0xf] %v40_v19  ;;  %v42_v20 = vld [vmem:[%s3539_s0 + $0x40] sm:$0xf]  ;;  %v44_v21 = vld [vmem:[%s3539_s0 + $0x48] sm:$0xf] }
   0xf   :  { %v74_v22 = vld [vmem:[%s3539_s0 + $0xc0] sm:$0xf]  ;;  %v2890_v23 = vld [vmem:[#allocation3 + $0x48] sm:$0xff]   ;;  %43 = vst [vmem:[#allocation3 + $0x20] sm:$0xf] %v42_v20  ;;  %v2894_v27 = vld [vmem:[#allocation3 + $0x10] sm:$0xff]  }
  0x10   :  { %45 = vst [vmem:[#allocation3 + $0x24] sm:$0xf] %v44_v21  ;;  %75 = vst [vmem:[#allocation3 + $0x60] sm:$0xf] %v74_v22  ;;  %v2891_v24 = vld [vmem:[#allocation3 + $0x40] sm:$0xff]   ;;  %1045 = vrot.lane.b32.xlu1 %v2890_v23, %s3038_s9  ;;  %v2892_v25 = vld [vmem:[#allocation3 + $0x8] sm:$0xff]  }
  0x11   :  { %1043 = vrot.lane.b32.xlu0 %v2891_v24, %s3038_s9  ;;  %v2893_v26 = vld [vmem:[#allocation3] sm:$0xff]   ;;  %v2895_v28 = vld [vmem:[#allocation3 + $0x50] sm:$0xff]   ;;  %v2896_v29 = vld [vmem:[#allocation3 + $0x58] sm:$0xff]  }
  0x12   :  { %v2897_v30 = vld [vmem:[#allocation3 + $0x80] sm:$0xff]   ;;  %v76_v31 = vld [vmem:[%s3539_s0 + $0xc8] sm:$0xf]  ;;  %v78_v32 = vld [vmem:[%s3539_s0 + $0xd0] sm:$0xf] }
  0x13   :  { %77 = vst [vmem:[#allocation3 + $0x64] sm:$0xf] %v76_v31  ;;  %79 = vst [vmem:[#allocation3 + $0x68] sm:$0xf] %v78_v32  ;;  %v80_v34 = vld [vmem:[%s3539_s0 + $0xd8] sm:$0xf] }
  0x14   :  { %1029 = vrot.lane.b32.xlu1 %v2892_v25, %s3038_s9  ;;  %v2898_v33 = vld [vmem:[#allocation3 + $0x88] sm:$0xff]   ;;  %v98_v35 = vld [vmem:[%s3539_s0 + $0x120] sm:$0xf]  ;;  %81 = vst [vmem:[#allocation3 + $0x6c] sm:$0xf] %v80_v34  ;;  %v2918_v16 = vld [vmem:[#allocation3 + $0x10] sm:$0xff]  }
  0x15   :  { %1027 = vrot.lane.b32.xlu0 %v2893_v26, %s3038_s9  ;;  %v100_v36 = vld [vmem:[%s3539_s0 + $0x128] sm:$0xf]  ;;  %v2899_v37 = vld [vmem:[#allocation3 + $0x18] sm:$0xff]   ;;  %99 = vst [vmem:[#allocation3 + $0x90] sm:$0xf] %v98_v35  ;;  %v2914_v8 = vld [vmem:[#allocation3] sm:$0xff]  }
  0x16   :  { %101 = vst [vmem:[#allocation3 + $0x94] sm:$0xf] %v100_v36  ;;  %v102_v38 = vld [vmem:[%s3539_s0 + $0x130] sm:$0xf]  ;;  %v104_v39 = vld [vmem:[%s3539_s0 + $0x138] sm:$0xf] }
  0x17   :  { %v46_v40 = vld [vmem:[%s3539_s0 + $0x50] sm:$0xf]  ;;  %103 = vst [vmem:[#allocation3 + $0x98] sm:$0xf] %v102_v38  ;;  %105 = vst [vmem:[#allocation3 + $0x9c] sm:$0xf] %v104_v39 }
  0x18   :  { %1031 = vrot.lane.b32.xlu1 %v2894_v27, %s3038_s9  ;;  %47 = vst [vmem:[#allocation3 + $0x28] sm:$0xf] %v46_v40  ;;  %v48_v41 = vld [vmem:[%s3539_s0 + $0x58] sm:$0xf]  ;;  %v50_v42 = vld [vmem:[%s3539_s0 + $0x60] sm:$0xf] }
  0x19   :  { %1047 = vrot.lane.b32.xlu0 %v2895_v28, %s3038_s9  ;;  %v52_v43 = vld [vmem:[%s3539_s0 + $0x68] sm:$0xf]  ;;  %49 = vst [vmem:[#allocation3 + $0x2c] sm:$0xf] %v48_v41  ;;  %51 = vst [vmem:[#allocation3 + $0x30] sm:$0xf] %v50_v42 }
  0x1a   :  { %53 = vst [vmem:[#allocation3 + $0x34] sm:$0xf] %v52_v43  ;;  %v82_v44 = vld [vmem:[%s3539_s0 + $0xe0] sm:$0xf]  ;;  %v84_v45 = vld [vmem:[%s3539_s0 + $0xe8] sm:$0xf] }
  0x1b   :  { %v86_v46 = vld [vmem:[%s3539_s0 + $0xf0] sm:$0xf]  ;;  %v2900_v47 = vld [vmem:[#allocation3 + $0x20] sm:$0xff]   ;;  %83 = vst [vmem:[#allocation3 + $0x70] sm:$0xf] %v82_v44  ;;  %v2902_v58 = vld [vmem:[#allocation3 + $0x68] sm:$0xff]  }
  0x1c   :  { %1049 = vrot.lane.b32.xlu1 %v2896_v29, %s3038_s9  ;;  %85 = vst [vmem:[#allocation3 + $0x74] sm:$0xf] %v84_v45  ;;  %87 = vst [vmem:[#allocation3 + $0x78] sm:$0xf] %v86_v46  ;;  %v88_v48 = vld [vmem:[%s3539_s0 + $0xf8] sm:$0xf] }
  0x1d   :  { %1059 = vrot.lane.b32.xlu0 %v2897_v30, %s3038_s9  ;;  %v106_v49 = vld [vmem:[%s3539_s0 + $0x140] sm:$0xf]  ;;  %v108_v50 = vld [vmem:[%s3539_s0 + $0x148] sm:$0xf]  ;;  %89 = vst [vmem:[#allocation3 + $0x7c] sm:$0xf] %v88_v48 }
  0x1e   :  { %107 = vst [vmem:[#allocation3 + $0xa0] sm:$0xf] %v106_v49  ;;  %109 = vst [vmem:[#allocation3 + $0xa4] sm:$0xf] %v108_v50  ;;  %v110_v51 = vld [vmem:[%s3539_s0 + $0x150] sm:$0xf] }
  0x1f   :  { %v112_v52 = vld [vmem:[%s3539_s0 + $0x158] sm:$0xf]  ;;  %v54_v53 = vld [vmem:[%s3539_s0 + $0x70] sm:$0xf]  ;;  %111 = vst [vmem:[#allocation3 + $0xa8] sm:$0xf] %v110_v51 }
  0x20   :  { %1061 = vrot.lane.b32.xlu1 %v2898_v33, %s3038_s9  ;;  %113 = vst [vmem:[#allocation3 + $0xac] sm:$0xf] %v112_v52  ;;  %55 = vst [vmem:[#allocation3 + $0x38] sm:$0xf] %v54_v53  ;;  %v56_v54 = vld [vmem:[%s3539_s0 + $0x78] sm:$0xf] }
  0x21   :  { %v114_v55 = vld [vmem:[%s3539_s0 + $0x160] sm:$0xf]  ;;  %v116_v56 = vld [vmem:[%s3539_s0 + $0x168] sm:$0xf]  ;;  %1033 = vrot.lane.b32.xlu0 %v2899_v37, %s3038_s9  ;;  %57 = vst [vmem:[#allocation3 + $0x3c] sm:$0xf] %v56_v54 }
  0x22   :  { %v2901_v57 = vld [vmem:[#allocation3 + $0x60] sm:$0xff]   ;;  %115 = vst [vmem:[#allocation3 + $0xb0] sm:$0xf] %v114_v55  ;;  %117 = vst [vmem:[#allocation3 + $0xb4] sm:$0xf] %v116_v56  ;;  %v2903_v59 = vld [vmem:[#allocation3 + $0x90] sm:$0xff]  }
  0x23   :  { %v2904_v60 = vld [vmem:[#allocation3 + $0x98] sm:$0xff]   ;;  %v2905_v61 = vld [vmem:[#allocation3 + $0x28] sm:$0xff]   ;;  %v2906_v62 = vld [vmem:[#allocation3 + $0x30] sm:$0xff]  }
  0x24   :  { %1035 = vrot.lane.b32.xlu1 %v2900_v47, %s3038_s9  ;;  %v2907_v63 = vld [vmem:[#allocation3 + $0x70] sm:$0xff]   ;;  %v120_v1 = vld [vmem:[%s3539_s0 + $0x178] sm:$0xf]  ;;  %v2926_v9 = vld [vmem:[#allocation3 + $0x40] sm:$0xff]  }
  0x25   :  { %1051 = vrot.lane.b32.xlu0 %v2901_v57, %s3038_s9  ;;  %v118_v0 = vld [vmem:[%s3539_s0 + $0x170] sm:$0xf]  ;;  %121 = vst [vmem:[#allocation3 + $0xbc] sm:$0xf] %v120_v1  ;;  %v2908_v2 = vld [vmem:[#allocation3 + $0x78] sm:$0xff]   ;;  %v2909_v3 = vld [vmem:[#allocation3 + $0xa0] sm:$0xff]   ;;  %2595 = vmatprep.subr.bf16.mxu0 %v2926_v9 }
  0x26   :  { %119 = vst [vmem:[#allocation3 + $0xb8] sm:$0xf] %v118_v0  ;;  %v2927_v10 = vld [vmem:[#allocation3] sm:$0xff]   ;;  %v2916_v12 = vld [vmem:[#allocation3 + $0x8] sm:$0xff]   ;;  %s3039_s0 = smov 126   ;;  %v2919_v17 = vld [vmem:[#allocation3 + $0x50] sm:$0xff]  }
  0x27   :  { %v2910_v4 = vld [vmem:[#allocation3 + $0xa8] sm:$0xff]   ;;  %v2915_v11 = vld [vmem:[#allocation3 + $0x40] sm:$0xff]   ;;  %2596 = vmatpush3.bf16.msra.mxu0 %v2927_v10  ;;  %v2934_v18 = vld [vmem:[#allocation3 + $0x50] sm:$0xff]  }
  0x28   :  { %1053 = vrot.lane.b32.xlu1 %v2902_v58, %s3038_s9  ;;  %v2911_v5 = vld [vmem:[#allocation3 + $0x38] sm:$0xff]   ;;  %v2930_v13 = vld [vmem:[#allocation3 + $0x48] sm:$0xff]   ;;  %v2935_v19 = vld [vmem:[#allocation3 + $0x10] sm:$0xff]  }
  0x29   :  { %1063 = vrot.lane.b32.xlu0 %v2903_v59, %s3038_s9  ;;  %v2912_v7 = vld [vmem:[#allocation3 + $0xb0] sm:$0xff]   ;;  %v2931_v14 = vld [vmem:[#allocation3 + $0x8] sm:$0xff]   ;;  %2597 = vmatprep.subr.bf16.mxu0 %v2930_v13  ;;  %v2936_v20 = vld [vmem:[#allocation3 + $0x80] sm:$0xff]  }
  0x2a   :  { %v2917_v15 = vld [vmem:[#allocation3 + $0x48] sm:$0xff]   ;;  %v2920_v21 = vld [vmem:[#allocation3 + $0x58] sm:$0xff]   ;;  %v2921_v22 = vld [vmem:[#allocation3 + $0x80] sm:$0xff]   ;;  %2785 = vmatprep.subr.bf16.mxu1 %v2936_v20 }
  0x2b   :  { %2598 = vmatpush3.bf16.msra.mxu0 %v2931_v14  ;;  %2786 = vmatpush3.bf16.msra.mxu1 %v2936_v20  ;;  %v2939_v23 = vld [vmem:[#allocation3 + $0x58] sm:$0xff]   ;;  %v2941_v25 = vld [vmem:[#allocation3 + $0x88] sm:$0xff]   ;;  %v2944_v28 = vld [vmem:[#allocation3 + $0x60] sm:$0xff]  }
  0x2c   :  { %1065 = vrot.lane.b32.xlu1 %v2904_v60, %s3038_s9  ;;  %2599 = vmatprep.subr.bf16.mxu0 %v2934_v18  ;;  %v2940_v24 = vld [vmem:[#allocation3 + $0x18] sm:$0xff]   ;;  %v2922_v26 = vld [vmem:[#allocation3 + $0x88] sm:$0xff]   ;;  %v2945_v29 = vld [vmem:[#allocation3 + $0x20] sm:$0xff]  }
  0x2d   :  { %1037 = vrot.lane.b32.xlu0 %v2905_v61, %s3038_s9  ;;  %v2913_v6 = vld [vmem:[#allocation3 + $0xb8] sm:$0xff]   ;;  %2787 = vmatprep.subr.bf16.mxu1 %v2941_v25  ;;  %v2946_v30 = vld [vmem:[#allocation3 + $0x90] sm:$0xff]   ;;  %v2924_v31 = vld [vmem:[#allocation3 + $0x20] sm:$0xff]  }
  0x2e   :  { %v2923_v27 = vld [vmem:[#allocation3 + $0x18] sm:$0xff]   ;;  %v2925_v32 = vld [vmem:[#allocation3 + $0x60] sm:$0xff]   ;;  %v2928_v33 = vld [vmem:[#allocation3 + $0x68] sm:$0xff]  }
  0x2f   :  { %2600 = vmatpush3.bf16.msra.mxu0 %v2935_v19  ;;  %2788 = vmatpush3.bf16.msra.mxu1 %v2941_v25  ;;  %v2949_v34 = vld [vmem:[#allocation3 + $0x68] sm:$0xff]   ;;  %v2951_v36 = vld [vmem:[#allocation3 + $0x98] sm:$0xff]   ;;  %v2929_v37 = vld [vmem:[#allocation3 + $0x90] sm:$0xff]  }
  0x30   :  { %1039 = vrot.lane.b32.xlu1 %v2906_v62, %s3038_s9  ;;  %2601 = vmatprep.subr.bf16.mxu0 %v2939_v23  ;;  %v2950_v35 = vld [vmem:[#allocation3 + $0x28] sm:$0xff]   ;;  %v2932_v38 = vld [vmem:[#allocation3 + $0x98] sm:$0xff]   ;;  %v2953_v39 = vld [vmem:[#allocation3 + $0x70] sm:$0xff]  }
  0x31   :  { %1055 = vrot.lane.b32.xlu0 %v2907_v63, %s3038_s9  ;;  %2789 = vmatprep.subr.bf16.mxu1 %v2946_v30  ;;  %v2954_v40 = vld [vmem:[#allocation3 + $0x30] sm:$0xff]   ;;  %v2955_v41 = vld [vmem:[#allocation3 + $0xa0] sm:$0xff]   ;;  %v2933_v42 = vld [vmem:[#allocation3 + $0x28] sm:$0xff]  }
  0x32   :  { %v2937_v43 = vld [vmem:[#allocation3 + $0x30] sm:$0xff]   ;;  %v2957_v44 = vld [vmem:[#allocation3 + $0x78] sm:$0xff]   ;;  %v2959_v47 = vld [vmem:[#allocation3 + $0xa8] sm:$0xff]  }
  0x33   :  { %2602 = vmatpush3.bf16.msra.mxu0 %v2940_v24  ;;  %2790 = vmatpush3.bf16.msra.mxu1 %v2946_v30  ;;  %v2938_v45 = vld [vmem:[#allocation3 + $0x70] sm:$0xff]   ;;  %v2958_v46 = vld [vmem:[#allocation3 + $0x38] sm:$0xff]   ;;  %v2960_v48 = vld [vmem:[%s3541_s2] ss:$12 sps:$4 sm:$0xff]  }
  0x34   :  { %1057 = vrot.lane.b32.xlu1 %v2908_v2, %s3038_s9  ;;  %2603 = vmatprep.subr.bf16.mxu0 %v2944_v28  ;;  %v2962_v49 = vld [vmem:[%s3541_s2 + $0x4] ss:$12 sps:$4 sm:$0xff]   ;;  %v2942_v50 = vld [vmem:[#allocation3 + $0x78] sm:$0xff]   ;;  %v2965_v53 = vld [vmem:[%s3541_s2 + $0x8] ss:$12 sps:$4 sm:$0xff]  }
  0x35   :  { %1067 = vrot.lane.b32.xlu0 %v2909_v3, %s3038_s9  ;;  %2791 = vmatprep.subr.bf16.mxu1 %v2951_v36  ;;  %v2963_v51 = vld [vmem:[#allocation3 + $0xb0] sm:$0xff]   ;;  %v2964_v52 = vld [vmem:[#allocation3 + $0xb8] sm:$0xff]   ;;  %v2943_v54 = vld [vmem:[#allocation3 + $0xa0] sm:$0xff]  }
  0x36   :  { %744 = vmatprep.mubr.bf16.mxu0 %v2962_v49  ;;  %v2947_v55 = vld [vmem:[#allocation3 + $0xa8] sm:$0xff]   ;;  %2801 = vmatprep.mubr.bf16.mxu1 %v2965_v53  ;;  %v2948_v57 = vld [vmem:[#allocation3 + $0x38] sm:$0xff]   ;;  %v3274_v60 = vld [vmem:[%s3541_s2 + $0x34] ss:$12 sps:$4 sm:$0xff]  }
  0x37   :  { %2604 = vmatpush3.bf16.msra.mxu0 %v2945_v29  ;;  %2792 = vmatpush3.bf16.msra.mxu1 %v2951_v36  ;;  %v2967_v56 = vld [vmem:[%s3541_s2 + $0x1c] ss:$12 sps:$4 sm:$0xff]   ;;  %v2969_v58 = vld [vmem:[%s3541_s2 + $0x18] ss:$12 sps:$4 sm:$0xff]   ;;  %v2966_v59 = vld [vmem:[%s3541_s2 + $0x20] ss:$12 sps:$4 sm:$0xff]  }
  0x38   :  { %1069 = vrot.lane.b32.xlu1 %v2910_v4, %s3038_s9  ;;  %2605 = vmatprep.subr.bf16.mxu0 %v2949_v34  ;;  %v2381_v61 = vld [vmem:[%s3540_s1 + $0x84] sm:$0xf]  ;;  %v2382_v62 = vld [vmem:[%s3540_s1 + $0x8c] sm:$0xf]  ;;  %v2383_v1 = vld [vmem:[%s3540_s1 + $0x94] sm:$0xf] }
  0x39   :  { %1041 = vrot.lane.b32.xlu0 %v2911_v5, %s3038_s9  ;;  %2793 = vmatprep.subr.bf16.mxu1 %v2955_v41  ;;  %291 = vst [vmem:[#allocation4 + $0x40] sm:$0xf] %v2381_v61  ;;  %293 = vst [vmem:[#allocation4 + $0x44] sm:$0xf] %v2382_v62  ;;  %v2365_v63 = vld [vmem:[%s3540_s1 + $0x4] sm:$0xf] }
  0x3a   :  { %v2366_v0 = vld [vmem:[%s3540_s1 + $0xc] sm:$0xf]  ;;  %259 = vst [vmem:[#allocation4] sm:$0xf] %v2365_v63  ;;  %295 = vst [vmem:[#allocation4 + $0x48] sm:$0xf] %v2383_v1 }
  0x3b   :  { %2606 = vmatpush3.bf16.msra.mxu0 %v2950_v35  ;;  %2794 = vmatpush3.bf16.msra.mxu1 %v2955_v41  ;;  %261 = vst [vmem:[#allocation4 + $0x4] sm:$0xf] %v2366_v0  ;;  %v2384_v2 = vld [vmem:[%s3540_s1 + $0x9c] sm:$0xf]  ;;  %v2367_v3 = vld [vmem:[%s3540_s1 + $0x14] sm:$0xf] }
  0x3c   :  { %1073 = vrot.lane.b32.xlu1 %v2913_v6, %s3038_s9  ;;  %2607 = vmatprep.subr.bf16.mxu0 %v2953_v39  ;;  %v2368_v4 = vld [vmem:[%s3540_s1 + $0x1c] sm:$0xf]  ;;  %v2952_v5 = vld [vmem:[#allocation3 + $0xb0] sm:$0xff]   ;;  %297 = vst [vmem:[#allocation4 + $0x4c] sm:$0xf] %v2384_v2 }
  0x3d   :  { %1071 = vrot.lane.b32.xlu0 %v2912_v7, %s3038_s9  ;;  %2795 = vmatprep.subr.bf16.mxu1 %v2959_v47  ;;  %263 = vst [vmem:[#allocation4 + $0x8] sm:$0xf] %v2367_v3  ;;  %265 = vst [vmem:[#allocation4 + $0xc] sm:$0xf] %v2368_v4  ;;  %v2956_v6 = vld [vmem:[#allocation3 + $0xb8] sm:$0xff]  }
  0x3e   :  { %v2980_v7 = vld [vmem:[%s3541_s2 + $0x38] ss:$12 sps:$4 sm:$0xff]   ;;  %v2386_v9 = vld [vmem:[%s3540_s1 + $0xac] sm:$0xf]  ;;  %v2387_v14 = vld [vmem:[%s3540_s1 + $0xb4] sm:$0xf] }
  0x3f   :  { %2608 = vmatpush3.bf16.msra.mxu0 %v2954_v40  ;;  %2796 = vmatpush3.bf16.msra.mxu1 %v2959_v47  ;;  %301 = vst [vmem:[#allocation4 + $0x54] sm:$0xf] %v2386_v9  ;;  %v2369_v10 = vld [vmem:[%s3540_s1 + $0x24] sm:$0xf]  ;;  %v2398_v13 = vld [vmem:[%s3540_s1 + $0x10c] sm:$0xf] }
  0x40   :  { %1778 = vrot.lane.b32.xlu1 %v2914_v8, %s3039_s0  ;;  %2609 = vmatprep.subr.bf16.mxu0 %v2957_v44  ;;  %v2385_v8 = vld [vmem:[%s3540_s1 + $0xa4] sm:$0xf]  ;;  %267 = vst [vmem:[#allocation4 + $0x10] sm:$0xf] %v2369_v10  ;;  %325 = vst [vmem:[#allocation4 + $0x84] sm:$0xf] %v2398_v13 }
  0x41   :  { %1794 = vrot.lane.b32.xlu0 %v2915_v11, %s3039_s0  ;;  %2797 = vmatprep.subr.bf16.mxu1 %v2963_v51  ;;  %299 = vst [vmem:[#allocation4 + $0x50] sm:$0xf] %v2385_v8  ;;  %v2370_v11 = vld [vmem:[%s3540_s1 + $0x2c] sm:$0xf]  ;;  %303 = vst [vmem:[#allocation4 + $0x58] sm:$0xf] %v2387_v14 }
  0x42   :  { %269 = vst [vmem:[#allocation4 + $0x14] sm:$0xf] %v2370_v11  ;;  %v2399_v18 = vld [vmem:[%s3540_s1 + $0x114] sm:$0xf]  ;;  %v2400_v19 = vld [vmem:[%s3540_s1 + $0x11c] sm:$0xf] }
  0x43   :  { %2610 = vmatpush3.bf16.msra.mxu0 %v2958_v46  ;;  %2798 = vmatpush3.bf16.msra.mxu1 %v2963_v51  ;;  %327 = vst [vmem:[#allocation4 + $0x88] sm:$0xf] %v2399_v18  ;;  %v2389_v20 = vld [vmem:[%s3540_s1 + $0xc4] sm:$0xf]  ;;  %329 = vst [vmem:[#allocation4 + $0x8c] sm:$0xf] %v2400_v19 }
  0x44   :  { %1780 = vrot.lane.b32.xlu1 %v2916_v12, %s3039_s0  ;;  %2799 = vmatprep.subr.bf16.mxu1 %v2964_v52  ;;  %v2397_v12 = vld [vmem:[%s3540_s1 + $0x104] sm:$0xf]  ;;  %307 = vst [vmem:[#allocation4 + $0x60] sm:$0xf] %v2389_v20  ;;  %v2374_v23 = vld [vmem:[%s3540_s1 + $0x4c] sm:$0xf] }
  0x45   :  { %1796 = vrot.lane.b32.xlu0 %v2917_v15, %s3039_s0  ;;  %323 = vst [vmem:[#allocation4 + $0x80] sm:$0xf] %v2397_v12  ;;  %v2388_v15 = vld [vmem:[%s3540_s1 + $0xbc] sm:$0xf]  ;;  %277 = vst [vmem:[#allocation4 + $0x24] sm:$0xf] %v2374_v23 }
  0x46   :  { %745 = vmatmul.mubr.bf16.vlgmr.msra.gmra.mrb[0].mxu0 %v2960_v48  ;;  %305 = vst [vmem:[#allocation4 + $0x5c] sm:$0xf] %v2388_v15  ;;  %v2401_v24 = vld [vmem:[%s3540_s1 + $0x124] sm:$0xf]  ;;  %v2402_v25 = vld [vmem:[%s3540_s1 + $0x12c] sm:$0xf] }
  0x47   :  { %752 = vmatprep.mubr.bf16.mxu0 %v2967_v56  ;;  %2800 = vmatpush3.bf16.msra.mxu1 %v2964_v52  ;;  %331 = vst [vmem:[#allocation4 + $0x90] sm:$0xf] %v2401_v24  ;;  %333 = vst [vmem:[#allocation4 + $0x94] sm:$0xf] %v2402_v25  ;;  %v2375_v28 = vld [vmem:[%s3540_s1 + $0x54] sm:$0xf] }
  0x48   :  { %1782 = vrot.lane.b32.xlu1 %v2918_v16, %s3039_s0  ;;  %v2371_v16 = vld [vmem:[%s3540_s1 + $0x34] sm:$0xf]  ;;  %v2376_v29 = vld [vmem:[%s3540_s1 + $0x5c] sm:$0xf]  ;;  %279 = vst [vmem:[#allocation4 + $0x28] sm:$0xf] %v2375_v28 }
  0x49   :  { %1798 = vrot.lane.b32.xlu0 %v2919_v17, %s3039_s0  ;;  %v2372_v17 = vld [vmem:[%s3540_s1 + $0x3c] sm:$0xf]  ;;  %271 = vst [vmem:[#allocation4 + $0x18] sm:$0xf] %v2371_v16  ;;  %281 = vst [vmem:[#allocation4 + $0x2c] sm:$0xf] %v2376_v29 }
  0x4a   :  { %2802 = vmatmul.mubr.bf16.vlgmr.msra.gmra.mrb[0].mxu1 %v2966_v59  ;;  %273 = vst [vmem:[#allocation4 + $0x1c] sm:$0xf] %v2372_v17  ;;  %v2403_v30 = vld [vmem:[%s3540_s1 + $0x134] sm:$0xf]  ;;  %v2394_v34 = vld [vmem:[%s3540_s1 + $0xec] sm:$0xf] }
  0x4b   :  { %2821 = vmatprep.mubr.bf16.mxu1 %v2980_v7  ;;  %335 = vst [vmem:[#allocation4 + $0x98] sm:$0xf] %v2403_v30  ;;  %v2377_v35 = vld [vmem:[%s3540_s1 + $0x64] sm:$0xf]  ;;  %v2378_v36 = vld [vmem:[%s3540_s1 + $0x6c] sm:$0xf] }
  0x4c   :  { %1800 = vrot.lane.b32.xlu1 %v2920_v21, %s3039_s0  ;;  %v2390_v21 = vld [vmem:[%s3540_s1 + $0xcc] sm:$0xf]  ;;  %317 = vst [vmem:[#allocation4 + $0x74] sm:$0xf] %v2394_v34  ;;  %283 = vst [vmem:[#allocation4 + $0x30] sm:$0xf] %v2377_v35 }
  0x4d   :  { %1810 = vrot.lane.b32.xlu0 %v2921_v22, %s3039_s0  ;;  %v2373_v22 = vld [vmem:[%s3540_s1 + $0x44] sm:$0xf]  ;;  %309 = vst [vmem:[#allocation4 + $0x64] sm:$0xf] %v2390_v21  ;;  %285 = vst [vmem:[#allocation4 + $0x34] sm:$0xf] %v2378_v36 }
  0x4e   :  { %753 = vmatmul.mubr.bf16.gmra.mrb[4].mxu0 %v2969_v58  ;;  %275 = vst [vmem:[#allocation4 + $0x20] sm:$0xf] %v2373_v22  ;;  %v2406_v39 = vld [vmem:[%s3540_s1 + $0x14c] sm:$0xf]  ;;  %v2395_v40 = vld [vmem:[%s3540_s1 + $0xf4] sm:$0xf] }
  0x4f   :  { %1131 = vmatprep.mubr.bf16.mxu0 %v3274_v60  ;;  %341 = vst [vmem:[#allocation4 + $0xa4] sm:$0xf] %v2406_v39  ;;  %319 = vst [vmem:[#allocation4 + $0x78] sm:$0xf] %v2395_v40  ;;  %v2396_v41 = vld [vmem:[%s3540_s1 + $0xfc] sm:$0xf] }
  0x50   :  { %1812 = vrot.lane.b32.xlu1 %v2922_v26, %s3039_s0  ;;  %v2391_v26 = vld [vmem:[%s3540_s1 + $0xd4] sm:$0xf]  ;;  %321 = vst [vmem:[#allocation4 + $0x7c] sm:$0xf] %v2396_v41  ;;  %v2408_v46 = vld [vmem:[%s3540_s1 + $0x15c] sm:$0xf] }
  0x51   :  { %1784 = vrot.lane.b32.xlu0 %v2923_v27, %s3039_s0  ;;  %311 = vst [vmem:[#allocation4 + $0x68] sm:$0xf] %v2391_v26  ;;  %v2392_v27 = vld [vmem:[%s3540_s1 + $0xdc] sm:$0xf]  ;;  %v2409_v47 = vld [vmem:[%s3540_s1 + $0x164] sm:$0xf] }
  0x52   :  { %313 = vst [vmem:[#allocation4 + $0x6c] sm:$0xf] %v2392_v27  ;;  %345 = vst [vmem:[#allocation4 + $0xac] sm:$0xf] %v2408_v46  ;;  %v2410_v49 = vld [vmem:[%s3540_s1 + $0x16c] sm:$0xf] }
  0x53   :  { %347 = vst [vmem:[#allocation4 + $0xb0] sm:$0xf] %v2409_v47  ;;  %v2412_v51 = vld [vmem:[%s3540_s1 + $0x17c] sm:$0xf]  ;;  %349 = vst [vmem:[#allocation4 + $0xb4] sm:$0xf] %v2410_v49 }
  0x54   :  { %1786 = vrot.lane.b32.xlu1 %v2924_v31, %s3039_s0  ;;  %v2404_v31 = vld [vmem:[%s3540_s1 + $0x13c] sm:$0xf]  ;;  %353 = vst [vmem:[#allocation4 + $0xbc] sm:$0xf] %v2412_v51  ;;  %v2974_v9 = vld [vmem:[#allocation4] sm:$0xff]   ;;  %v2975_v10 = vld [vmem:[#allocation4 + $0x48] sm:$0xff]  }
  0x55   :  { %1802 = vrot.lane.b32.xlu0 %v2925_v32, %s3039_s0  ;;  %v2393_v32 = vld [vmem:[%s3540_s1 + $0xe4] sm:$0xf]  ;;  %337 = vst [vmem:[#allocation4 + $0x9c] sm:$0xf] %v2404_v31  ;;  %v3432_v8 = vld [vmem:[%s3541_s2 + $0x30] ss:$12 sps:$4 sm:$0xff]  }
  0x56   :  { %315 = vst [vmem:[#allocation4 + $0x70] sm:$0xf] %v2393_v32  ;;  %v3437_v12 = vld [vmem:[%s3541_s2 + $0x4c] ss:$12 sps:$4 sm:$0xff]   ;;  %v2981_v15 = vld [vmem:[#allocation4 + $0x50] sm:$0xff]   ;;  %v2984_v16 = vld [vmem:[#allocation4 + $0x80] sm:$0xff]  }
  0x57   :  { %v2976_v14 = vld [vmem:[#allocation4 + $0x8] sm:$0xff]   ;;  %v2982_v20 = vld [vmem:[%s3541_s2 + $0x50] ss:$12 sps:$4 sm:$0xff]   ;;  %v3002_v26 = vld [vmem:[%s3541_s2 + $0x38] ss:$12 sps:$4 sm:$0xff]  }
  0x58   :  { %1804 = vrot.lane.b32.xlu1 %v2928_v33, %s3039_s0  ;;  %v3446_v18 = vld [vmem:[%s3541_s2 + $0x48] ss:$12 sps:$4 sm:$0xff]   ;;  %v2985_v22 = vld [vmem:[#allocation4 + $0x58] sm:$0xff]   ;;  %v2988_v28 = vld [vmem:[#allocation4 + $0x60] sm:$0xff]  }
  0x59   :  { %1814 = vrot.lane.b32.xlu0 %v2929_v37, %s3039_s0  ;;  %v2983_v21 = vld [vmem:[#allocation4 + $0x10] sm:$0xff]   ;;  %v2987_v23 = vld [vmem:[#allocation4 + $0x88] sm:$0xff]   ;;  %v2986_v27 = vld [vmem:[#allocation4 + $0x18] sm:$0xff]  }
  0x5a   :  { %v2990_v29 = vld [vmem:[#allocation4 + $0x90] sm:$0xff]   ;;  %v2989_v32 = vld [vmem:[#allocation4 + $0x20] sm:$0xff]  }
  0x5b   :  { %v2995_v41 = vld [vmem:[#allocation4 + $0x30] sm:$0xff]  }
  0x5c   :  { %1816 = vrot.lane.b32.xlu1 %v2932_v38, %s3039_s0  ;;  %v2405_v38 = vld [vmem:[%s3540_s1 + $0x144] sm:$0xf]  ;;  %v2993_v34 = vld [vmem:[#allocation4 + $0x98] sm:$0xff]   ;;  %v3000_v47 = vld [vmem:[#allocation4 + $0xb0] sm:$0xff]  }
  0x5d   :  { %1788 = vrot.lane.b32.xlu0 %v2933_v42, %s3039_s0  ;;  %339 = vst [vmem:[#allocation4 + $0xa0] sm:$0xf] %v2405_v38  ;;  %v2379_v42 = vld [vmem:[%s3540_s1 + $0x74] sm:$0xf] }
  0x5e   :  { %287 = vst [vmem:[#allocation4 + $0x38] sm:$0xf] %v2379_v42  ;;  %v2994_v38 = vld [vmem:[#allocation4 + $0x70] sm:$0xff]   ;;  %v2997_v42 = vld [vmem:[#allocation4 + $0x78] sm:$0xff]  }
  0x60   :  { %1790 = vrot.lane.b32.xlu1 %v2937_v43, %s3039_s0  ;;  %v2380_v43 = vld [vmem:[%s3540_s1 + $0x7c] sm:$0xf] }
  0x61   :  { %1806 = vrot.lane.b32.xlu0 %v2938_v45, %s3039_s0  ;;  %289 = vst [vmem:[#allocation4 + $0x3c] sm:$0xf] %v2380_v43  ;;  %v2407_v45 = vld [vmem:[%s3540_s1 + $0x154] sm:$0xf] }
  0x62   :  { %343 = vst [vmem:[#allocation4 + $0xa8] sm:$0xf] %v2407_v45 }
  0x64   :  { %1808 = vrot.lane.b32.xlu1 %v2942_v50, %s3039_s0  ;;  %v2411_v50 = vld [vmem:[%s3540_s1 + $0x174] sm:$0xf]  ;;  %v2996_v39 = vld [vmem:[#allocation4 + $0xa0] sm:$0xff]  }
  0x65   :  { %1818 = vrot.lane.b32.xlu0 %v2943_v54, %s3039_s0  ;;  %351 = vst [vmem:[#allocation4 + $0xb8] sm:$0xf] %v2411_v50 }
  0x68   :  { %1820 = vrot.lane.b32.xlu1 %v2947_v55, %s3039_s0  ;;  %v2998_v45 = vld [vmem:[#allocation4 + $0x38] sm:$0xff]  }
  0x69   :  { %1792 = vrot.lane.b32.xlu0 %v2948_v57, %s3039_s0  ;;  %v2999_v43 = vld [vmem:[#allocation4 + $0xa8] sm:$0xff]  }
  0x6c   :  { %1824 = vrot.lane.b32.xlu1 %v2956_v6, %s3039_s0  ;;  %v3001_v49 = vld [vmem:[#allocation4 + $0xb8] sm:$0xff]  }
  0x6d   :  { %1822 = vrot.lane.b32.xlu0 %v2952_v5, %s3039_s0  ;;  %v2973_v5 = vld [vmem:[#allocation4 + $0x40] sm:$0xff]  }
  0x82   :  { %v1046_v33 = vpop.permute.xlu1 %1045 }
  0x83   :  { %v1044_v37 = vpop.permute.xlu0 %1043 }
  0x84   :  { %2633 = vmatprep.subr.bf16.mxu0 %v1044_v37  ;;  %v2992_v37 = vld [vmem:[#allocation4 + $0x28] sm:$0xff]  }
  0x86   :  { %v1030_v44 = vpop.permute.xlu1 %1029 }
  0x87   :  { %v1028_v48 = vpop.permute.xlu0 %1027 }
  0x88   :  { %2634 = vmatpush3.bf16.msra.mxu0 %v1028_v48 }
  0x89   :  { %2635 = vmatprep.subr.bf16.mxu0 %v1046_v33  ;;  %v2991_v33 = vld [vmem:[#allocation4 + $0x68] sm:$0xff]  }
  0x8a   :  { %v1032_v52 = vpop.permute.xlu1 %1031 }
  0x8b   :  { %v1048_v53 = vpop.permute.xlu0 %1047 }
  0x8c   :  { %2636 = vmatpush3.bf16.msra.mxu0 %v1030_v44 }
  0x8d   :  { %2637 = vmatprep.subr.bf16.mxu0 %v1048_v53 }
  0x8e   :  { %v1050_v54 = vpop.permute.xlu1 %1049 }
  0x8f   :  { %v1060_v55 = vpop.permute.xlu0 %1059 }
  0x90   :  { %2638 = vmatpush3.bf16.msra.mxu0 %v1032_v52  ;;  %2805 = vmatprep.subr.bf16.mxu1 %v1060_v55  ;;  %v3003_v52 = vld [vmem:[%s3541_s2 + $0x50] ss:$12 sps:$4 sm:$0xff]  }
  0x91   :  { %2639 = vmatprep.subr.bf16.mxu0 %v1050_v54  ;;  %2806 = vmatpush3.bf16.msra.mxu1 %v1060_v55  ;;  %v3465_v54 = vld [vmem:[%s3541_s2 + $0x64] ss:$12 sps:$4 sm:$0xff]   ;;  %v3014_v55 = vld [vmem:[%s3541_s2 + $0x68] ss:$12 sps:$4 sm:$0xff]  }
  0x92   :  { %v1062_v56 = vpop.permute.xlu1 %1061 }
  0x93   :  { %v1034_v57 = vpop.permute.xlu0 %1033  ;;  %2807 = vmatprep.subr.bf16.mxu1 %v1062_v56 }
  0x94   :  { %2640 = vmatpush3.bf16.msra.mxu0 %v1034_v57 }
  0x95   :  { %2808 = vmatpush3.bf16.msra.mxu1 %v1062_v56 }
  0x96   :  { %v1036_v58 = vpop.permute.xlu1 %1035 }
  0x97   :  { %v1052_v59 = vpop.permute.xlu0 %1051 }
  0x98   :  { %2641 = vmatprep.subr.bf16.mxu0 %v1052_v59 }
  0x99   :  { %2642 = vmatpush3.bf16.msra.mxu0 %v1036_v58 }
  0x9a   :  { %v1054_v61 = vpop.permute.xlu1 %1053 }
  0x9b   :  { %v1064_v62 = vpop.permute.xlu0 %1063  ;;  %2643 = vmatprep.subr.bf16.mxu0 %v1054_v61 }
  0x9c   :  { %2809 = vmatprep.subr.bf16.mxu1 %v1064_v62 }
  0x9d   :  { %2810 = vmatpush3.bf16.msra.mxu1 %v1064_v62 }
  0x9e   :  { %v1066_v63 = vpop.permute.xlu1 %1065 }
  0x9f   :  { %v1038_v0 = vpop.permute.xlu0 %1037  ;;  %2811 = vmatprep.subr.bf16.mxu1 %v1066_v63 }
  0xa0   :  { %2644 = vmatpush3.bf16.msra.mxu0 %v1038_v0  ;;  %v3475_v0 = vld [vmem:[%s3541_s2 + $0x60] ss:$12 sps:$4 sm:$0xff]  }
  0xa1   :  { %2812 = vmatpush3.bf16.msra.mxu1 %v1066_v63  ;;  %v3007_v63 = vld [vmem:[#allocation4 + $0x40] sm:$0xff]  }
  0xa2   :  { %v1040_v1 = vpop.permute.xlu1 %1039 }
  0xa3   :  { %v1056_v2 = vpop.permute.xlu0 %1055 }
  0xa4   :  { %2645 = vmatprep.subr.bf16.mxu0 %v1056_v2  ;;  %v3008_v2 = vld [vmem:[#allocation4] sm:$0xff]  }
  0xa5   :  { %2646 = vmatpush3.bf16.msra.mxu0 %v1040_v1 }
  0xa6   :  { %v1058_v3 = vpop.permute.xlu1 %1057 }
  0xa7   :  { %v1068_v4 = vpop.permute.xlu0 %1067  ;;  %2647 = vmatprep.subr.bf16.mxu0 %v1058_v3  ;;  %v3480_v3 = vld [vmem:[%s3541_s2 + $0x7c] ss:$12 sps:$4 sm:$0xff]  }
  0xa8   :  { %2813 = vmatprep.subr.bf16.mxu1 %v1068_v4 }
  0xa9   :  { %2814 = vmatpush3.bf16.msra.mxu1 %v1068_v4  ;;  %v3009_v4 = vld [vmem:[#allocation4 + $0x48] sm:$0xff]  }
  0xaa   :  { %v1070_v6 = vpop.permute.xlu1 %1069 }
  0xab   :  { %v1042_v7 = vpop.permute.xlu0 %1041  ;;  %2815 = vmatprep.subr.bf16.mxu1 %v1070_v6 }
  0xac   :  { %2648 = vmatpush3.bf16.msra.mxu0 %v1042_v7  ;;  %v3015_v7 = vld [vmem:[#allocation4 + $0x50] sm:$0xff]  }
  0xad   :  { %2816 = vmatpush3.bf16.msra.mxu1 %v1070_v6  ;;  %2671 = vmatprep.subr.bf16.mxu0 %v2973_v5  ;;  %v3010_v6 = vld [vmem:[#allocation4 + $0x8] sm:$0xff]  }
  0xae   :  { %v1074_v11 = vpop.permute.xlu1 %1073 }
  0xaf   :  { %v1072_v13 = vpop.permute.xlu0 %1071  ;;  %1132 = vmatmul.mubr.bf16.vlgmr.msra.gmra.mrb[8].mxu0 %v3432_v8 }
  0xb0   :  { %2817 = vmatprep.subr.bf16.mxu1 %v1072_v13  ;;  %2672 = vmatpush3.bf16.msra.mxu0 %v2974_v9  ;;  %v3013_v9 = vld [vmem:[%s3541_s2 + $0x78] ss:$12 sps:$4 sm:$0xff]  }
  0xb1   :  { %2818 = vmatpush3.bf16.msra.mxu1 %v1072_v13  ;;  %2673 = vmatprep.subr.bf16.mxu0 %v2975_v10  ;;  %v3016_v10 = vld [vmem:[%s3541_s2 + $0x80] ss:$12 sps:$4 sm:$0xff]  }
  0xb2   :  { %2819 = vmatprep.subr.bf16.mxu1 %v1074_v11  ;;  %1139 = vmatprep.mubr.bf16.mxu0 %v3437_v12  ;;  %v3441_v17 = vpop.permute.xlu1 %1778  ;;  %v3021_v13 = vld [vmem:[#allocation4 + $0x88] sm:$0xff]  }
  0xb3   :  { %v1795_v19 = vpop.permute.xlu0 %1794 }
  0xb4   :  { %2674 = vmatpush3.bf16.msra.mxu0 %v2976_v14  ;;  %v3036_v14 = vld [vmem:[%s3541_s2 + $0x68] ss:$12 sps:$4 sm:$0xff]  }
  0xb5   :  { %2820 = vmatpush3.bf16.msra.mxu1 %v1074_v11  ;;  %2675 = vmatprep.subr.bf16.mxu0 %v2981_v15  ;;  %v3017_v11 = vld [vmem:[#allocation4 + $0x10] sm:$0xff]   ;;  %v3020_v15 = vld [vmem:[#allocation4 + $0x18] sm:$0xff]  }
  0xb6   :  { %2825 = vmatprep.subr.bf16.mxu1 %v2984_v16  ;;  %v1781_v24 = vpop.permute.xlu1 %1780 }
  0xb7   :  { %1140 = vmatmul.mubr.bf16.gmra.mrb[12].mxu0 %v3446_v18  ;;  %v1797_v25 = vpop.permute.xlu0 %1796 }
  0xb8   :  { %2822 = vmatmul.mubr.bf16.vlgmr.msra.gmra.mrb[4].mxu1 %v2982_v20  ;;  %2676 = vmatpush3.bf16.msra.mxu0 %v2983_v21  ;;  %v3027_v20 = vld [vmem:[#allocation4 + $0x98] sm:$0xff]   ;;  %v3026_v21 = vld [vmem:[#allocation4 + $0x28] sm:$0xff]  }
  0xb9   :  { %2826 = vmatpush3.bf16.msra.mxu1 %v2984_v16  ;;  %2677 = vmatprep.subr.bf16.mxu0 %v2985_v22  ;;  %v3022_v16 = vld [vmem:[#allocation4 + $0x60] sm:$0xff]   ;;  %v3028_v22 = vld [vmem:[#allocation4 + $0x70] sm:$0xff]  }
  0xba   :  { %2827 = vmatprep.subr.bf16.mxu1 %v2987_v23  ;;  %v1783_v30 = vpop.permute.xlu1 %1782  ;;  %1470 = vmatprep.mubr.bf16.mxu0 %v3274_v60 }
  0xbb   :  { %v1799_v31 = vpop.permute.xlu0 %1798  ;;  %2841 = vmatprep.mubr.bf16.mxu1 %v3002_v26  ;;  %v3033_v26 = vld [vmem:[#allocation4 + $0xa8] sm:$0xff]  }
  0xbc   :  { %2678 = vmatpush3.bf16.msra.mxu0 %v2986_v27  ;;  %v3032_v27 = vld [vmem:[#allocation4 + $0x38] sm:$0xff]  }
  0xbd   :  { %2828 = vmatpush3.bf16.msra.mxu1 %v2987_v23  ;;  %2679 = vmatprep.subr.bf16.mxu0 %v2988_v28  ;;  %v3030_v23 = vld [vmem:[#allocation4 + $0xa0] sm:$0xff]   ;;  %v3034_v28 = vld [vmem:[#allocation4 + $0xb0] sm:$0xff]  }
  0xbe   :  { %2829 = vmatprep.subr.bf16.mxu1 %v2990_v29  ;;  %v1801_v35 = vpop.permute.xlu1 %1800 }
  0xbf   :  { %v1811_v36 = vpop.permute.xlu0 %1810 }
  0xc0   :  { %2680 = vmatpush3.bf16.msra.mxu0 %v2989_v32 }
  0xc1   :  { %2830 = vmatpush3.bf16.msra.mxu1 %v2990_v29  ;;  %2681 = vmatprep.subr.bf16.mxu0 %v2991_v33  ;;  %v3035_v29 = vld [vmem:[#allocation4 + $0xb8] sm:$0xff]  }
  0xc2   :  { %2831 = vmatprep.subr.bf16.mxu1 %v2993_v34  ;;  %v1813_v40 = vpop.permute.xlu1 %1812 }
  0xc3   :  { %v1785_v60 = vpop.permute.xlu0 %1784 }
  0xc4   :  { %2682 = vmatpush3.bf16.msra.mxu0 %v2992_v37 }
  0xc5   :  { %2832 = vmatpush3.bf16.msra.mxu1 %v2993_v34  ;;  %2683 = vmatprep.subr.bf16.mxu0 %v2994_v38 }
  0xc6   :  { %2833 = vmatprep.subr.bf16.mxu1 %v2996_v39  ;;  %v1787_v46 = vpop.permute.xlu1 %1786 }
  0xc7   :  { %v1803_v44 = vpop.permute.xlu0 %1802 }
  0xc8   :  { %2684 = vmatpush3.bf16.msra.mxu0 %v2995_v41 }
  0xc9   :  { %2834 = vmatpush3.bf16.msra.mxu1 %v2996_v39  ;;  %2685 = vmatprep.subr.bf16.mxu0 %v2997_v42 }
  0xca   :  { %2835 = vmatprep.subr.bf16.mxu1 %v2999_v43  ;;  %v1805_v50 = vpop.permute.xlu1 %1804 }
  0xcb   :  { %v1815_v48 = vpop.permute.xlu0 %1814 }
  0xcc   :  { %2686 = vmatpush3.bf16.msra.mxu0 %v2998_v45 }
  0xcd   :  { %2836 = vmatpush3.bf16.msra.mxu1 %v2999_v43  ;;  %2709 = vmatprep.subr.bf16.mxu0 %v1795_v19  ;;  %v3025_v19 = vld [vmem:[#allocation4 + $0x68] sm:$0xff]  }
  0xce   :  { %2837 = vmatprep.subr.bf16.mxu1 %v3000_v47  ;;  %v1817_v53 = vpop.permute.xlu1 %1816 }
  0xcf   :  { %1471 = vmatmul.mubr.bf16.vlgmr.msra.gmra.mrb[16].mxu0 %v3432_v8  ;;  %v1789_v51 = vpop.permute.xlu0 %1788  ;;  %v3018_v8 = vld [vmem:[#allocation4 + $0x80] sm:$0xff]  }
  0xd0   :  { %2710 = vmatpush3.bf16.msra.mxu0 %v3441_v17  ;;  %1478 = vmatprep.mubr.bf16.mxu0 %v3437_v12  ;;  %v3019_v12 = vld [vmem:[#allocation4 + $0x58] sm:$0xff]   ;;  %v3024_v17 = vld [vmem:[#allocation4 + $0x90] sm:$0xff]  }
  0xd1   :  { %2838 = vmatpush3.bf16.msra.mxu1 %v3000_v47  ;;  %2711 = vmatprep.subr.bf16.mxu0 %v1797_v25  ;;  %v3031_v25 = vld [vmem:[#allocation4 + $0x78] sm:$0xff]  }
  0xd2   :  { %2839 = vmatprep.subr.bf16.mxu1 %v3001_v49  ;;  %v1791_v57 = vpop.permute.xlu1 %1790 }
  0xd3   :  { %v1807_v56 = vpop.permute.xlu0 %1806 }
  0xd4   :  { %2712 = vmatpush3.bf16.msra.mxu0 %v1781_v24  ;;  %v3029_v24 = vld [vmem:[#allocation4 + $0x30] sm:$0xff]  }
  0xd5   :  { %2840 = vmatpush3.bf16.msra.mxu1 %v3001_v49  ;;  %2713 = vmatprep.subr.bf16.mxu0 %v1799_v31 }
  0xd6   :  { %2845 = vmatprep.subr.bf16.mxu1 %v1811_v36  ;;  %v1809_v59 = vpop.permute.xlu1 %1808 }
  0xd7   :  { %1479 = vmatmul.mubr.bf16.gmra.mrb[20].mxu0 %v3446_v18  ;;  %v1819_v58 = vpop.permute.xlu0 %1818  ;;  %v3023_v18 = vld [vmem:[#allocation4 + $0x20] sm:$0xff]  }
  0xd8   :  { %2842 = vmatmul.mubr.bf16.vlgmr.msra.gmra.mrb[8].mxu1 %v3003_v52  ;;  %2714 = vmatpush3.bf16.msra.mxu0 %v1783_v30  ;;  %v3037_v30 = vld [vmem:[%s3541_s2 + $0x80] ss:$12 sps:$4 sm:$0xff]  }
  0xd9   :  { %2715 = vmatprep.subr.bf16.mxu0 %v1801_v35  ;;  %2846 = vmatpush3.bf16.msra.mxu1 %v1811_v36 }
  0xda   :  { %2847 = vmatprep.subr.bf16.mxu1 %v1813_v40  ;;  %1882 = vmatprep.mubr.bf16.mxu0 %v3465_v54  ;;  %v1821_v62 = vpop.permute.xlu1 %1820 }
  0xdb   :  { %2861 = vmatprep.mubr.bf16.mxu1 %v3014_v55  ;;  %v1793_v61 = vpop.permute.xlu0 %1792 }
  0xdc   :  { %2716 = vmatpush3.bf16.msra.mxu0 %v1785_v60 }
  0xdd   :  { %2717 = vmatprep.subr.bf16.mxu0 %v1803_v44  ;;  %2848 = vmatpush3.bf16.msra.mxu1 %v1813_v40 }
  0xde   :  { %2849 = vmatprep.subr.bf16.mxu1 %v1815_v48  ;;  %v1825_v5 = vpop.permute.xlu1 %1824 }
  0xdf   :  { %v1823_v1 = vpop.permute.xlu0 %1822 }
  0xe0   :  { %2718 = vmatpush3.bf16.msra.mxu0 %v1787_v46 }
  0xe1   :  { %2719 = vmatprep.subr.bf16.mxu0 %v1805_v50  ;;  %2850 = vmatpush3.bf16.msra.mxu1 %v1815_v48  ;;  %v3040_v50 = vmov 0  }
  0xe2   :  { %2851 = vmatprep.subr.bf16.mxu1 %v1817_v53  ;;  %2888 = vset.pattern.permute.xlu0 %v3040_v50 }
  0xe3   :  { %2889 = vset.pattern.permute.xlu1 %v3040_v50 }
  0xe4   :  { %2720 = vmatpush3.bf16.msra.mxu0 %v1789_v51 }
  0xe5   :  { %2721 = vmatprep.subr.bf16.mxu0 %v1807_v56  ;;  %2852 = vmatpush3.bf16.msra.mxu1 %v1817_v53 }
  0xe6   :  { %2853 = vmatprep.subr.bf16.mxu1 %v1819_v58 }
  0xe8   :  { %2722 = vmatpush3.bf16.msra.mxu0 %v1791_v57 }
  0xe9   :  { %2723 = vmatprep.subr.bf16.mxu0 %v1809_v59  ;;  %2854 = vmatpush3.bf16.msra.mxu1 %v1819_v58 }
  0xea   :  { %2855 = vmatprep.subr.bf16.mxu1 %v1821_v62 }
  0xec   :  { %2724 = vmatpush3.bf16.msra.mxu0 %v1793_v61 }
  0xed   :  { %2856 = vmatpush3.bf16.msra.mxu1 %v1821_v62  ;;  %2747 = vmatprep.subr.bf16.mxu0 %v3007_v63 }
  0xee   :  { %2857 = vmatprep.subr.bf16.mxu1 %v1823_v1 }
  0xef   :  { %1883 = vmatmul.mubr.bf16.vlgmr.msra.gmra.mrb[24].mxu0 %v3475_v0 }
  0xf0   :  { %2748 = vmatpush3.bf16.msra.mxu0 %v3008_v2  ;;  %1890 = vmatprep.mubr.bf16.mxu0 %v3480_v3 }
  0xf1   :  { %2858 = vmatpush3.bf16.msra.mxu1 %v1823_v1  ;;  %2749 = vmatprep.subr.bf16.mxu0 %v3009_v4 }
  0xf2   :  { %2859 = vmatprep.subr.bf16.mxu1 %v1825_v5 }
  0xf4   :  { %2750 = vmatpush3.bf16.msra.mxu0 %v3010_v6 }
  0xf5   :  { %2860 = vmatpush3.bf16.msra.mxu1 %v1825_v5  ;;  %2751 = vmatprep.subr.bf16.mxu0 %v3015_v7 }
  0xf6   :  { %2865 = vmatprep.subr.bf16.mxu1 %v3018_v8 }
  0xf7   :  { %1891 = vmatmul.mubr.bf16.gmra.mrb[28].mxu0 %v3013_v9 }
  0xf8   :  { %2862 = vmatmul.mubr.bf16.vlgmr.msra.gmra.mrb[12].mxu1 %v3016_v10  ;;  %2752 = vmatpush3.bf16.msra.mxu0 %v3017_v11 }
  0xf9   :  { %2866 = vmatpush3.bf16.msra.mxu1 %v3018_v8  ;;  %2753 = vmatprep.subr.bf16.mxu0 %v3019_v12 }
  0xfa   :  { %2867 = vmatprep.subr.bf16.mxu1 %v3021_v13  ;;  %2221 = vmatprep.mubr.bf16.mxu0 %v3465_v54 }
  0xfb   :  { %2881 = vmatprep.mubr.bf16.mxu1 %v3036_v14 }
  0xfc   :  { %2754 = vmatpush3.bf16.msra.mxu0 %v3020_v15 }
  0xfd   :  { %2868 = vmatpush3.bf16.msra.mxu1 %v3021_v13  ;;  %2755 = vmatprep.subr.bf16.mxu0 %v3022_v16 }
  0xfe   :  { %2869 = vmatprep.subr.bf16.mxu1 %v3024_v17 }
 0x100   :  { %2756 = vmatpush3.bf16.msra.mxu0 %v3023_v18 }
 0x101   :  { %2870 = vmatpush3.bf16.msra.mxu1 %v3024_v17  ;;  %2757 = vmatprep.subr.bf16.mxu0 %v3025_v19 }
 0x102   :  { %2871 = vmatprep.subr.bf16.mxu1 %v3027_v20 }
 0x104   :  { %2758 = vmatpush3.bf16.msra.mxu0 %v3026_v21 }
 0x105   :  { %2872 = vmatpush3.bf16.msra.mxu1 %v3027_v20  ;;  %2759 = vmatprep.subr.bf16.mxu0 %v3028_v22 }
 0x106   :  { %2873 = vmatprep.subr.bf16.mxu1 %v3030_v23 }
 0x108   :  { %2760 = vmatpush3.bf16.msra.mxu0 %v3029_v24 }
 0x109   :  { %2874 = vmatpush3.bf16.msra.mxu1 %v3030_v23  ;;  %2761 = vmatprep.subr.bf16.mxu0 %v3031_v25 }
 0x10a   :  { %2875 = vmatprep.subr.bf16.mxu1 %v3033_v26 }
 0x10c   :  { %2762 = vmatpush3.bf16.msra.mxu0 %v3032_v27 }
 0x10d   :  { %2876 = vmatpush3.bf16.msra.mxu1 %v3033_v26 }
 0x10e   :  { %2877 = vmatprep.subr.bf16.mxu1 %v3034_v28 }
 0x10f   :  { %2222 = vmatmul.mubr.bf16.vlgmr.msra.gmra.mrb[32].mxu0 %v3475_v0 }
 0x110   :  { %2229 = vmatprep.mubr.bf16.mxu0 %v3480_v3 }
 0x111   :  { %2878 = vmatpush3.bf16.msra.mxu1 %v3034_v28 }
 0x112   :  { %2879 = vmatprep.subr.bf16.mxu1 %v3035_v29 }
 0x115   :  { %2880 = vmatpush3.bf16.msra.mxu1 %v3035_v29 }
 0x117   :  { %2230 = vmatmul.mubr.bf16.gmra.mrb[36].mxu0 %v3013_v9 }
 0x118   :  { %2882 = vmatmul.mubr.bf16.vlgmr.msra.gmra.mrb[16].mxu1 %v3037_v30 }
 0x119   :  { %v2611_v31 = vpop.f32.mrb[0].mxu0 }
 0x11a   :  { %v2612_v32 = vpop.f32.mrb[1].mxu0 }
 0x11b   :  { %v2613_v33 = vadd.f32 %v2612_v32, %v2611_v31  ;;  %v2614_v34 = vpop.f32.mrb[2].mxu0  ;;  %v2320_v32 = vld [vmem:[%s3542_s3] sm:$0xff] }
 0x11c   :  { %v2615_v35 = vpop.f32.mrb[3].mxu0 }
 0x11d   :  { %v2616_v36 = vadd.f32 %v2615_v35, %v2614_v34  ;;  %v2803_v39 = vpop.f32.mrb[0].mxu1 }
 0x11e   :  { %v795_v41 = vpop.f32.mrb[1].mxu1 }
 0x11f   :  { %v796_v43 = vadd.f32 %v2613_v33, %v795_v41  ;;  %v2804_v44 = vpop.f32.mrb[2].mxu1  ;;  %v2321_v33 = vld [vmem:[%s3542_s3 + $0x8] sm:$0xff] }
 0x120   :  { %v798_v47 = vpop.f32.mrb[3].mxu1 }
 0x121   :  { %v2617_v37 = vpop.f32.mrb[4].mxu0  ;;  %810 = vst [vmem:[#allocation2] sm:$0xff] %v796_v43  ;;  %v799_v48 = vadd.f32 %v2616_v36, %v798_v47 }
 0x122   :  { %v2618_v38 = vpop.f32.mrb[5].mxu0 }
 0x123   :  { %v2619_v40 = vadd.f32 %v2618_v38, %v2617_v37  ;;  %v2620_v60 = vpop.f32.mrb[6].mxu0  ;;  %811 = vst [vmem:[#allocation2 + $0x8] sm:$0xff] %v799_v48 }
 0x124   :  { %v2621_v42 = vpop.f32.mrb[7].mxu0 }
 0x125   :  { %v804_v45 = vadd.f32 %v2803_v39, %v2619_v40  ;;  %v2622_v46 = vadd.f32 %v2621_v42, %v2620_v60 }
 0x127   :  { %812 = vst [vmem:[#allocation2 + $0x10] sm:$0xff] %v804_v45  ;;  %v807_v49 = vadd.f32 %v2804_v44, %v2622_v46 }
 0x129   :  { %813 = vst [vmem:[#allocation2 + $0x18] sm:$0xff] %v807_v49 }
 0x182   :  { %v2649_v51 = vpop.f32.mrb[8].mxu0 }
 0x183   :  { %v2650_v52 = vpop.f32.mrb[9].mxu0 }
 0x184   :  { %v2651_v53 = vadd.f32 %v2650_v52, %v2649_v51  ;;  %v2652_v54 = vpop.f32.mrb[10].mxu0 }
 0x185   :  { %v2653_v55 = vpop.f32.mrb[11].mxu0 }
 0x186   :  { %v2654_v56 = vadd.f32 %v2653_v55, %v2652_v54 }
 0x18a   :  { %v2655_v57 = vpop.f32.mrb[12].mxu0 }
 0x18b   :  { %v2656_v58 = vpop.f32.mrb[13].mxu0  ;;  %v2823_v59 = vpop.f32.mrb[4].mxu1 }
 0x18c   :  { %v2657_v61 = vadd.f32 %v2656_v58, %v2655_v57  ;;  %v2658_v62 = vpop.f32.mrb[14].mxu0  ;;  %v1182_v63 = vpop.f32.mrb[5].mxu1 }
 0x18d   :  { %v1183_v0 = vadd.f32 %v2651_v53, %v1182_v63  ;;  %v2659_v1 = vpop.f32.mrb[15].mxu0  ;;  %v2824_v2 = vpop.f32.mrb[6].mxu1 }
 0x18e   :  { %v1191_v3 = vadd.f32 %v2823_v59, %v2657_v61  ;;  %v2660_v4 = vadd.f32 %v2659_v1, %v2658_v62  ;;  %v1185_v5 = vpop.f32.mrb[7].mxu1 }
 0x18f   :  { %v1197_v6 = vadd.f32 %v1183_v0, %v796_v43  ;;  %v1186_v7 = vadd.f32 %v2654_v56, %v1185_v5 }
 0x190   :  { %v1199_v8 = vadd.f32 %v1191_v3, %v804_v45  ;;  %v1194_v9 = vadd.f32 %v2824_v2, %v2660_v4 }
 0x191   :  { %1202 = vst.msk [vmem:[#allocation2] sm:$0xff] %vm1201_vm0, %v1197_v6  ;;  %v1198_v10 = vadd.f32 %v1186_v7, %v799_v48 }
 0x192   :  { %1204 = vst.msk [vmem:[#allocation2 + $0x10] sm:$0xff] %vm1201_vm0, %v1199_v8  ;;  %v1200_v11 = vadd.f32 %v1194_v9, %v807_v49 }
 0x193   :  { %1203 = vst.msk [vmem:[#allocation2 + $0x8] sm:$0xff] %vm1201_vm0, %v1198_v10  ;;  %v2323_v10 = vld [vmem:[%s3542_s3 + $0x18] sm:$0xff] }
 0x194   :  { %1205 = vst.msk [vmem:[#allocation2 + $0x18] sm:$0xff] %vm1201_vm0, %v1200_v11  ;;  %v2322_v11 = vld [vmem:[%s3542_s3 + $0x10] sm:$0xff] }
 0x1a2   :  { %v2687_v12 = vpop.f32.mrb[16].mxu0 }
 0x1a3   :  { %v2688_v13 = vpop.f32.mrb[17].mxu0 }
 0x1a4   :  { %v2689_v14 = vadd.f32 %v2688_v13, %v2687_v12  ;;  %v2690_v15 = vpop.f32.mrb[18].mxu0  ;;  %v1536_v13 = vld [vmem:[#allocation2] sm:$0xff] }
 0x1a5   :  { %v2691_v16 = vpop.f32.mrb[19].mxu0 }
 0x1a6   :  { %v2692_v17 = vadd.f32 %v2691_v16, %v2690_v15  ;;  %v1537_v16 = vld [vmem:[#allocation2 + $0x8] sm:$0xff] }
 0x1aa   :  { %v2693_v18 = vpop.f32.mrb[20].mxu0 }
 0x1ab   :  { %v2694_v19 = vpop.f32.mrb[21].mxu0  ;;  %v2843_v20 = vpop.f32.mrb[8].mxu1 }
 0x1ac   :  { %v2695_v21 = vadd.f32 %v2694_v19, %v2693_v18  ;;  %v2696_v22 = vpop.f32.mrb[22].mxu0  ;;  %v1521_v23 = vpop.f32.mrb[9].mxu1  ;;  %v1538_v19 = vld [vmem:[#allocation2 + $0x10] sm:$0xff] }
 0x1ad   :  { %v1522_v24 = vadd.f32 %v2689_v14, %v1521_v23  ;;  %v2697_v25 = vpop.f32.mrb[23].mxu0  ;;  %v2844_v26 = vpop.f32.mrb[10].mxu1 }
 0x1ae   :  { %v1530_v27 = vadd.f32 %v2843_v20, %v2695_v21  ;;  %v2698_v28 = vadd.f32 %v2697_v25, %v2696_v22  ;;  %v1524_v29 = vpop.f32.mrb[11].mxu1  ;;  %v1539_v22 = vld [vmem:[#allocation2 + $0x18] sm:$0xff] }
 0x1af   :  { %v1525_v30 = vadd.f32 %v2692_v17, %v1524_v29  ;;  %1544 = vrot.lane.b32.xlu0 %v1522_v24, %s3038_s9 }
 0x1b0   :  { %v1533_v31 = vadd.f32 %v2844_v26, %v2698_v28 }
 0x1b1   :  { %1546 = vrot.lane.b32.xlu1 %v1525_v30, %s3038_s9 }
 0x1b3   :  { %1548 = vrot.lane.b32.xlu0 %v1530_v27, %s3038_s9 }
 0x1b5   :  { %1550 = vrot.lane.b32.xlu1 %v1533_v31, %s3038_s9 }
 0x1b7   :  { %2326 = vperm.xlu0 %2888, %v2320_v32  }
 0x1b9   :  { %2331 = vperm.xlu1 %2889, %v2321_v33  }
 0x1c2   :  { %v2725_v34 = vpop.f32.mrb[24].mxu0 }
 0x1c3   :  { %v2726_v35 = vpop.f32.mrb[25].mxu0 }
 0x1c4   :  { %v2727_v36 = vadd.f32 %v2726_v35, %v2725_v34  ;;  %v2728_v37 = vpop.f32.mrb[26].mxu0 }
 0x1c5   :  { %v2729_v38 = vpop.f32.mrb[27].mxu0 }
 0x1c6   :  { %v2730_v39 = vadd.f32 %v2729_v38, %v2728_v37 }
 0x1ca   :  { %v2731_v40 = vpop.f32.mrb[28].mxu0 }
 0x1cb   :  { %v2732_v60 = vpop.f32.mrb[29].mxu0  ;;  %v2863_v41 = vpop.f32.mrb[12].mxu1 }
 0x1cc   :  { %v2733_v42 = vadd.f32 %v2732_v60, %v2731_v40  ;;  %v2734_v43 = vpop.f32.mrb[30].mxu0  ;;  %v1933_v44 = vpop.f32.mrb[13].mxu1 }
 0x1cd   :  { %v1934_v45 = vadd.f32 %v2727_v36, %v1933_v44  ;;  %v2735_v46 = vpop.f32.mrb[31].mxu0  ;;  %v2864_v47 = vpop.f32.mrb[14].mxu1 }
 0x1ce   :  { %v1942_v48 = vadd.f32 %v2863_v41, %v2733_v42  ;;  %v2736_v49 = vadd.f32 %v2735_v46, %v2734_v43  ;;  %v1936_v50 = vpop.f32.mrb[15].mxu1 }
 0x1cf   :  { %v1937_v51 = vadd.f32 %v2730_v39, %v1936_v50 }
 0x1d0   :  { %v1945_v52 = vadd.f32 %v2864_v47, %v2736_v49 }
 0x1e2   :  { %v2763_v53 = vpop.f32.mrb[32].mxu0 }
 0x1e3   :  { %v2764_v54 = vpop.f32.mrb[33].mxu0 }
 0x1e4   :  { %v2765_v55 = vadd.f32 %v2764_v54, %v2763_v53  ;;  %v2766_v56 = vpop.f32.mrb[34].mxu0 }
 0x1e5   :  { %v2767_v57 = vpop.f32.mrb[35].mxu0 }
 0x1e6   :  { %v2768_v58 = vadd.f32 %v2767_v57, %v2766_v56 }
 0x1ea   :  { %v2769_v59 = vpop.f32.mrb[36].mxu0 }
 0x1eb   :  { %v2770_v61 = vpop.f32.mrb[37].mxu0  ;;  %v2883_v62 = vpop.f32.mrb[16].mxu1 }
 0x1ec   :  { %v2771_v63 = vadd.f32 %v2770_v61, %v2769_v59  ;;  %v2772_v0 = vpop.f32.mrb[38].mxu0  ;;  %v2272_v1 = vpop.f32.mrb[17].mxu1 }
 0x1ed   :  { %v2273_v2 = vadd.f32 %v2765_v55, %v2272_v1  ;;  %v2773_v3 = vpop.f32.mrb[39].mxu0  ;;  %v2884_v4 = vpop.f32.mrb[18].mxu1 }
 0x1ee   :  { %v2281_v5 = vadd.f32 %v2883_v62, %v2771_v63  ;;  %v2774_v6 = vadd.f32 %v2773_v3, %v2772_v0  ;;  %v2275_v7 = vpop.f32.mrb[19].mxu1 }
 0x1ef   :  { %v2276_v8 = vadd.f32 %v2768_v58, %v2275_v7  ;;  %2295 = vrot.lane.b32.xlu0 %v2273_v2, %s3039_s0 }
 0x1f0   :  { %v2284_v9 = vadd.f32 %v2884_v4, %v2774_v6 }
 0x1f1   :  { %2297 = vrot.lane.b32.xlu1 %v2276_v8, %s3039_s0 }
 0x1f3   :  { %2299 = vrot.lane.b32.xlu0 %v2281_v5, %s3039_s0 }
 0x1f5   :  { %2301 = vrot.lane.b32.xlu1 %v2284_v9, %s3039_s0 }
 0x1f7   :  { %2341 = vperm.xlu0 %2888, %v2323_v10  }
 0x1f9   :  { %2336 = vperm.xlu1 %2889, %v2322_v11  }
 0x221   :  { %v1545_v12 = vpop.permute.xlu0 %1544 }
 0x222   :  { %v1556_v14 = vadd.f32 %v1545_v12, %v1536_v13 }
 0x223   :  { %v1547_v15 = vpop.permute.xlu1 %1546 }
 0x224   :  { %1561 = vst.msk [vmem:[#allocation2] sm:$0xff] %vm1560_vm1, %v1556_v14  ;;  %v1557_v17 = vadd.f32 %v1547_v15, %v1537_v16 }
 0x225   :  { %v1549_v18 = vpop.permute.xlu0 %1548 }
 0x226   :  { %1562 = vst.msk [vmem:[#allocation2 + $0x8] sm:$0xff] %vm1560_vm1, %v1557_v17  ;;  %v1558_v20 = vadd.f32 %v1549_v18, %v1538_v19 }
 0x227   :  { %v1551_v21 = vpop.permute.xlu1 %1550 }
 0x228   :  { %1563 = vst.msk [vmem:[#allocation2 + $0x10] sm:$0xff] %vm1560_vm1, %v1558_v20  ;;  %v1559_v23 = vadd.f32 %v1551_v21, %v1539_v22 }
 0x22a   :  { %1564 = vst.msk [vmem:[#allocation2 + $0x18] sm:$0xff] %vm1560_vm1, %v1559_v23 }
 0x22b   :  { %v1565_v24 = vld [vmem:[#allocation2] sm:$0xff] }
 0x22c   :  { %v1948_v25 = vadd.f32 %v1934_v45, %v1565_v24 }
 0x22d   :  { %v1566_v26 = vld [vmem:[#allocation2 + $0x8] sm:$0xff] }
 0x22e   :  { %1953 = vst.msk [vmem:[#allocation2] sm:$0xff] %vm1952_vm2, %v1948_v25  ;;  %v1949_v27 = vadd.f32 %v1937_v51, %v1566_v26 }
 0x22f   :  { %v1567_v28 = vld [vmem:[#allocation2 + $0x10] sm:$0xff] }
 0x230   :  { %1954 = vst.msk [vmem:[#allocation2 + $0x8] sm:$0xff] %vm1952_vm2, %v1949_v27  ;;  %v1950_v29 = vadd.f32 %v1942_v48, %v1567_v28 }
 0x231   :  { %v1568_v30 = vld [vmem:[#allocation2 + $0x18] sm:$0xff] }
 0x232   :  { %1955 = vst.msk [vmem:[#allocation2 + $0x10] sm:$0xff] %vm1952_vm2, %v1950_v29  ;;  %v1951_v31 = vadd.f32 %v1945_v52, %v1568_v30 }
 0x234   :  { %1956 = vst.msk [vmem:[#allocation2 + $0x18] sm:$0xff] %vm1952_vm2, %v1951_v31 }
 0x235   :  { %v2287_v35 = vld [vmem:[#allocation2] sm:$0xff] }
 0x236   :  { %v2327_v32 = vpop.permute.xlu0 %2326 }
 0x237   :  { %v2288_v38 = vld [vmem:[#allocation2 + $0x8] sm:$0xff] }
 0x238   :  { %v2332_v33 = vpop.permute.xlu1 %2331 }
 0x239   :  { %v2289_v60 = vld [vmem:[#allocation2 + $0x10] sm:$0xff] }
 0x23b   :  { %v2290_v43 = vld [vmem:[#allocation2 + $0x18] sm:$0xff] }
 0x261   :  { %v2296_v34 = vpop.permute.xlu0 %2295 }
 0x262   :  { %v2307_v36 = vadd.f32 %v2296_v34, %v2287_v35 }
 0x263   :  { %v2298_v37 = vpop.permute.xlu1 %2297 }
 0x264   :  { %2312 = vst.msk [vmem:[#allocation2] sm:$0xff] %vm2311_vm3, %v2307_v36  ;;  %v2308_v39 = vadd.f32 %v2298_v37, %v2288_v38 }
 0x265   :  { %v2300_v40 = vpop.permute.xlu0 %2299 }
 0x266   :  { %2313 = vst.msk [vmem:[#allocation2 + $0x8] sm:$0xff] %vm2311_vm3, %v2308_v39  ;;  %v2309_v41 = vadd.f32 %v2300_v40, %v2289_v60 }
 0x267   :  { %v2302_v42 = vpop.permute.xlu1 %2301 }
 0x268   :  { %2314 = vst.msk [vmem:[#allocation2 + $0x10] sm:$0xff] %vm2311_vm3, %v2309_v41  ;;  %v2310_v44 = vadd.f32 %v2302_v42, %v2290_v43 }
 0x26a   :  { %2315 = vst.msk [vmem:[#allocation2 + $0x18] sm:$0xff] %vm2311_vm3, %v2310_v44 }
 0x26b   :  { %v2316_v45 = vld [vmem:[#allocation2] sm:$0xff] }
 0x26c   :  { %v2344_v46 = vadd.f32 %v2327_v32, %v2316_v45 }
 0x26d   :  { %v2317_v47 = vld [vmem:[#allocation2 + $0x8] sm:$0xff] }
 0x26e   :  { %2348 = vst [vmem:[%s3543_s4] sm:$0xff] %v2344_v46  ;;  %v2345_v48 = vadd.f32 %v2332_v33, %v2317_v47 }
 0x26f   :  { %v2318_v53 = vld [vmem:[#allocation2 + $0x10] sm:$0xff] }
 0x270   :  { %2349 = vst [vmem:[%s3543_s4 + $0x8] sm:$0xff] %v2345_v48 }
 0x271   :  { %v2319_v50 = vld [vmem:[#allocation2 + $0x18] sm:$0xff] }
 0x276   :  { %v2342_v49 = vpop.permute.xlu0 %2341 }
 0x277   :  { %v2347_v51 = vadd.f32 %v2342_v49, %v2319_v50 }
 0x278   :  { %v2337_v52 = vpop.permute.xlu1 %2336 }
 0x279   :  { %2351 = vst [vmem:[%s3543_s4 + $0x18] sm:$0xff] %v2347_v51  ;;  %v2346_v54 = vadd.f32 %v2337_v52, %v2318_v53 }
 0x27b   :  { %2350 = vst [vmem:[%s3543_s4 + $0x10] sm:$0xff] %v2346_v54 }

</bundles_post_ra>
